<compile_context>
chip_gen: v7x
topology: tpu7x:2x2x1
jax: 0.10.0
libtpu: 0.0.40
codegen_flags: <defaults>
</compile_context>

<pallas_src>
import functools

import jax
import jax.numpy as jnp
from jax.experimental import pallas as pl
from jax.experimental.pallas import tpu as pltpu

_BN_EPS = 1e-5
_LANE = 128
_SUBLANE = 8


def _round_up(x, m):
    return (x + m - 1) // m * m


def _pick_tile_rows(r8, want):
    """Largest multiple-of-8 tile <= want, preferring an exact divisor of r8
    so no padded rows (and no stats correction) are needed."""
    want = max(_SUBLANE, min(_round_up(want, _SUBLANE), r8))
    best_div = 0
    for t in range(_SUBLANE, want + 1, _SUBLANE):
        if r8 % t == 0:
            best_div = t
    if best_div >= min(128, r8):
        return best_div
    return want


def _vmem_plan(tile, k9, cp, cres):
    """Shrink the row tile until the double-buffered footprint is modest and
    return (tile, vmem_limit_bytes); the limit stays <= 40 MiB (v7x-safe)."""
    def est(t):
        stream1 = t * (k9 + cp) * 2                   # pass 1: bf16 taps + bf16 conv_out
        stream3 = t * (cp * 2 + cres * 2 + cp * 4)    # pass 3: conv + x_res + f32 out
        const = (k9 + cres) * cp * 2 + 8 * cp * 4     # weights + scale/shift/stats/b3
        return 2 * (max(stream1, stream3) + const) + (1 << 20)

    while est(tile) > (24 << 20) and tile > 64:
        tile = max(64, ((tile // 2) // _SUBLANE) * _SUBLANE)
    limit = int(max(16 << 20, min(est(tile) + (8 << 20), 40 << 20)))
    return tile, limit


# ------------------------- pass 1: conv + bn1 stats -------------------------
def _conv_stats_kernel(taps_ref, w1_ref, conv_ref, stats_ref, sum_ref, sq_ref):
    i = pl.program_id(0)

    @pl.when(i == 0)
    def _init():
        sum_ref[...] = jnp.zeros_like(sum_ref)
        sq_ref[...] = jnp.zeros_like(sq_ref)

    # single MXU matmul, K = 9*Cin (folded im2col taps), bf16 x bf16 -> f32
    z = jnp.dot(taps_ref[...], w1_ref[...], preferred_element_type=jnp.float32)
    conv_ref[...] = z.astype(conv_ref.dtype)
    # zero-padded rows contribute 0 to both sums -> divide by real row count later
    sum_ref[...] += jnp.sum(z, axis=0, keepdims=True)
    sq_ref[...] += jnp.sum(z * z, axis=0, keepdims=True)

    @pl.when(i == pl.num_programs(0) - 1)
    def _finish():
        stats_ref[0:1, :] = sum_ref[...]
        stats_ref[1:2, :] = sq_ref[...]


# --------------------- pass 2: bn1-apply+relu + bn2 stats --------------------
def _bn1_apply_stats_kernel(conv_ref, s1_ref, t1_ref, stats_ref, sum_ref, sq_ref):
    i = pl.program_id(0)

    @pl.when(i == 0)
    def _init():
        sum_ref[...] = jnp.zeros_like(sum_ref)
        sq_ref[...] = jnp.zeros_like(sq_ref)

    y = jnp.maximum(conv_ref[...].astype(jnp.float32) * s1_ref[...] + t1_ref[...], 0.0)
    sum_ref[...] += jnp.sum(y, axis=0, keepdims=True)
    sq_ref[...] += jnp.sum(y * y, axis=0, keepdims=True)

    @pl.when(i == pl.num_programs(0) - 1)
    def _finish():
        stats_ref[0:1, :] = sum_ref[...]
        stats_ref[1:2, :] = sq_ref[...]


# -------------------- pass 3: normalize + relu + residual --------------------
def _apply_kernel(conv_ref, s1_ref, t1_ref, s2_ref, t2_ref,
                  xres_ref, w3_ref, b3_ref, out_ref):
    y = jnp.maximum(conv_ref[...].astype(jnp.float32) * s1_ref[...] + t1_ref[...], 0.0)
    y = jnp.maximum(y * s2_ref[...] + t2_ref[...], 0.0)
    # Skip branch on the MXU: real 1x1 conv, or identity-embedding matrix for
    # the plain skip (keeps x_res un-padded / lane-slim in HBM).
    x = jnp.dot(xres_ref[...], w3_ref[...],
                preferred_element_type=jnp.float32) + b3_ref[...]
    out_ref[...] = (y + x).astype(out_ref.dtype)


def _affine_from_stats(stats, gamma, beta, count):
    """Per-channel (scale, shift) so that bn(x) == x*scale + shift."""
    mean = stats[0] / count
    var = jnp.maximum(stats[1] / count - mean * mean, 0.0)
    scale = gamma * jax.lax.rsqrt(var + _BN_EPS)
    shift = beta - mean * scale
    return scale[None, :], shift[None, :]


@functools.partial(jax.jit, static_argnames=("use_1x1conv", "stride", "tile_rows"))
def residual_forward(x_nchw, params, *, use_1x1conv=False, stride=1, tile_rows=512):
    """Pallas implementation of Residual.forward.  x_nchw: (N, Cin, H, W)."""
    N, Cin, H, W = x_nchw.shape
    Cout = params["w1"].shape[0]
    if not use_1x1conv and (Cin != Cout or stride != 1):
        raise ValueError("identity skip requires Cin == Cout and stride == 1")

    Ho = (H - 1) // stride + 1
    Wo = (W - 1) // stride + 1
    R = N * Ho * Wo                                   # real rows (BN count)

    Cinp = _round_up(Cin, _SUBLANE)                   # contraction-dim padding
    Cp = _round_up(Cout, _LANE)                       # lane-dense output channels
    K9 = 9 * Cinp

    R8 = _round_up(R, _SUBLANE)
    tile = _pick_tile_rows(R8, tile_rows)
    tile, vmem_limit = _vmem_plan(tile, K9, Cp, Cinp)
    Rp = _round_up(R8, tile)
    num_tiles = Rp // tile

    # ---- layout glue (plain JAX): NCHW -> NHWC, pad, folded im2col ----
    x_nhwc = jnp.transpose(x_nchw, (0, 2, 3, 1))
    x_nhwc = jnp.pad(x_nhwc, ((0, 0), (0, 0), (0, 0), (0, Cinp - Cin)))
    xpad = jnp.pad(x_nhwc, ((0, 0), (1, 1), (1, 1), (0, 0)))
    taps = []
    for dy in range(3):
        for dx in range(3):
            sl = xpad[:, dy:dy + stride * (Ho - 1) + 1:stride,
                      dx:dx + stride * (Wo - 1) + 1:stride, :]
            taps.append(sl.reshape(R, Cinp))
    taps = jnp.concatenate(taps, axis=1).astype(jnp.bfloat16)   # (R, 9*Cinp)
    taps = jnp.pad(taps, ((0, Rp - R), (0, 0)))

    # conv1 weight: OIHW -> (3,3,Cin,Cout) -> (9*Cinp, Cp).  b1 is dropped
    # (a per-channel bias is exactly cancelled by training-mode BatchNorm).
    w1 = jnp.transpose(params["w1"], (2, 3, 1, 0))
    w1 = jnp.pad(w1, ((0, 0), (0, 0), (0, Cinp - Cin), (0, Cp - Cout)))
    w1 = w1.reshape(K9, Cp).astype(jnp.bfloat16)

    # residual-branch input: lane-slim (R, Cinp), streamed in bf16
    x_res = x_nhwc[:, ::stride, ::stride, :].reshape(R, Cinp)
    x_res = jnp.pad(x_res, ((0, Rp - R), (0, 0))).astype(jnp.bfloat16)

    cpad = (0, Cp - Cout)
    g1 = jnp.pad(params["g1"], cpad); be1 = jnp.pad(params["be1"], cpad)
    g2 = jnp.pad(params["g2"], cpad); be2 = jnp.pad(params["be2"], cpad)

    if use_1x1conv:
        w3 = jnp.transpose(params["w3"].reshape(Cout, Cin), (1, 0))
        w3 = jnp.pad(w3, ((0, Cinp - Cin), (0, Cp - Cout)))
        b3 = jnp.pad(params["b3"], cpad)[None, :].astype(jnp.float32)
    else:
        # identity skip as an embedding matrix: exact in bf16 (0/1 entries)
        w3 = jnp.pad(jnp.eye(Cin, dtype=jnp.float32),
                     ((0, Cinp - Cin), (0, Cp - Cin)))
        b3 = jnp.zeros((1, Cp), jnp.float32)
    w3 = w3.astype(jnp.bfloat16)

    grid = (num_tiles,)
    row_spec = lambda c: pl.BlockSpec((tile, c), lambda i: (i, 0))
    full_spec = lambda r, c: pl.BlockSpec((r, c), lambda i: (0, 0))
    stat_scratch = lambda: [pltpu.VMEM((1, Cp), jnp.float32),
                            pltpu.VMEM((1, Cp), jnp.float32)]

    # ---- pass 1: conv (single K=9*Cin bf16 matmul) + bn1 sum / sum-of-squares
    conv_out, stats1 = pl.pallas_call(
        _conv_stats_kernel,
        out_shape=(jax.ShapeDtypeStruct((Rp, Cp), jnp.bfloat16),
                   jax.ShapeDtypeStruct((2, Cp), jnp.float32)),
        grid_spec=pltpu.PrefetchScalarGridSpec(
            num_scalar_prefetch=0, grid=grid,
            in_specs=[row_spec(K9), full_spec(K9, Cp)],
            out_specs=[row_spec(Cp), full_spec(2, Cp)],
            scratch_shapes=stat_scratch()),
        compiler_params=pltpu.CompilerParams(
            dimension_semantics=("arbitrary",), vmem_limit_bytes=vmem_limit),
    )(taps, w1)
    scale1, shift1 = _affine_from_stats(stats1, g1, be1, R)

    # ---- pass 2: bn1-apply + relu, accumulate bn2 stats ----
    stats2 = pl.pallas_call(
        _bn1_apply_stats_kernel,
        out_shape=jax.ShapeDtypeStruct((2, Cp), jnp.float32),
        grid_spec=pltpu.PrefetchScalarGridSpec(
            num_scalar_prefetch=0, grid=grid,
            in_specs=[row_spec(Cp), full_spec(1, Cp), full_spec(1, Cp)],
            out_specs=full_spec(2, Cp),
            scratch_shapes=stat_scratch()),
        compiler_params=pltpu.CompilerParams(
            dimension_semantics=("arbitrary",), vmem_limit_bytes=vmem_limit),
    )(conv_out, scale1, shift1)

    # padded conv rows are exactly zero, so each contributed relu(shift1) /
    # relu(shift1)^2 per channel to stats2 -> correct analytically in JAX.
    pad_rows = Rp - R
    if pad_rows:
        pad_y = jnp.maximum(shift1, 0.0)                       # (1, Cp)
        stats2 = stats2 - pad_rows * jnp.concatenate([pad_y, pad_y * pad_y], axis=0)
    scale2, shift2 = _affine_from_stats(stats2, g2, be2, R)

    # ---- pass 3: bn1+relu, bn2+relu, residual add, lane-dense store ----
    out_flat = pl.pallas_call(
        _apply_kernel,
        out_shape=jax.ShapeDtypeStruct((Rp, Cp), x_nchw.dtype),
        grid_spec=pltpu.PrefetchScalarGridSpec(
            num_scalar_prefetch=0, grid=grid,
            in_specs=[row_spec(Cp)] + [full_spec(1, Cp)] * 4
                     + [row_spec(Cinp), full_spec(Cinp, Cp), full_spec(1, Cp)],
            out_specs=row_spec(Cp)),
        compiler_params=pltpu.CompilerParams(
            dimension_semantics=("parallel",), vmem_limit_bytes=vmem_limit),
    )(conv_out, scale1, shift1, scale2, shift2, x_res, w3, b3)

    out = out_flat[:R, :Cout].reshape(N, Ho, Wo, Cout)
    return jnp.transpose(out, (0, 3, 1, 2))


# ---------------- pure-JAX reference (for a correctness check) ----------------
def _reference(x_nchw, params, use_1x1conv, stride):
    def bn(z, g, b):
        m = z.mean(axis=(0, 2, 3), keepdims=True)
        v = jnp.square(z - m).mean(axis=(0, 2, 3), keepdims=True)
        return ((z - m) * jax.lax.rsqrt(v + _BN_EPS)
                * g.reshape(1, -1, 1, 1) + b.reshape(1, -1, 1, 1))

    y = jax.lax.conv_general_dilated(
        x_nchw, params["w1"], (stride, stride), ((1, 1), (1, 1)),
        dimension_numbers=("NCHW", "OIHW", "NCHW")) + params["b1"].reshape(1, -1, 1, 1)
    y = jnp.maximum(bn(y, params["g1"], params["be1"]), 0.0)
    y = jnp.maximum(bn(y, params["g2"], params["be2"]), 0.0)
    x = x_nchw
    if use_1x1conv:
        x = jax.lax.conv_general_dilated(
            x_nchw, params["w3"], (stride, stride), ((0, 0), (0, 0)),
            dimension_numbers=("NCHW", "OIHW", "NCHW")) + params["b3"].reshape(1, -1, 1, 1)
    return y + x


if __name__ == "__main__":
    key = jax.random.PRNGKey(0)

    def make_params(k, cin, cout):
        k1, k2, k3, k4 = jax.random.split(k, 4)
        return {
            "w1": 0.1 * jax.random.normal(k1, (cout, cin, 3, 3), jnp.float32),
            "b1": 0.1 * jax.random.normal(k2, (cout,), jnp.float32),
            # BatchNorm2d defaults: weight=1, bias=0
            "g1": jnp.ones((cout,), jnp.float32),
            "be1": jnp.zeros((cout,), jnp.float32),
            "g2": jnp.ones((cout,), jnp.float32),
            "be2": jnp.zeros((cout,), jnp.float32),
            # conv3 params (only used when use_1x1conv=True)
            "w3": 0.1 * jax.random.normal(k3, (cout, cin, 1, 1), jnp.float32),
            "b3": 0.1 * jax.random.normal(k4, (cout,), jnp.float32),
        }

    configs = [
        # default Residual(4, 4): identity skip, single 512-row tile
        dict(Cin=4, Cout=4, H=16, W=16, use_1x1conv=False, stride=1, tile_rows=512),
        # downsampling Residual(4, 8, use_1x1conv=True, stride=2)
        dict(Cin=4, Cout=8, H=16, W=16, use_1x1conv=True, stride=2, tile_rows=512),
        # odd shapes: multi-tile grid with padded rows (exercises stats2 fix-up)
        dict(Cin=3, Cout=3, H=13, W=13, use_1x1conv=False, stride=1, tile_rows=128),
    ]
    N = 2
    for idx, cfg in enumerate(configs):
        kp, kx, key = jax.random.split(key, 3)
        params = make_params(kp, cfg["Cin"], cfg["Cout"])
        x = jax.random.normal(kx, (N, cfg["Cin"], cfg["H"], cfg["W"]), jnp.float32)

        out = residual_forward(x, params, use_1x1conv=cfg["use_1x1conv"],
                               stride=cfg["stride"], tile_rows=cfg["tile_rows"])
        out = jax.block_until_ready(out)

        ref = _reference(x, params, cfg["use_1x1conv"], cfg["stride"])
        assert out.shape == ref.shape and out.dtype == ref.dtype
        err = float(jnp.max(jnp.abs(out - ref)))
        # bf16 streamed conv inputs -> slightly looser tolerance than pure f32
        assert jnp.allclose(out, ref, atol=3e-2, rtol=3e-2), \
            f"mismatch in config {idx}: max abs err {err}"

    print("KERNEL_OK")
</pallas_src>

<mosaic_0001>
module attributes {stable_mosaic.version = 11 : i64} {
  func.func @_conv_stats_kernel(%arg0: i32, %arg1: memref<512x72xbf16, #tpu.memory_space<vmem>>, %arg2: memref<72x128xbf16, #tpu.memory_space<vmem>>, %arg3: memref<512x128xbf16, #tpu.memory_space<vmem>>, %arg4: memref<2x128xf32, #tpu.memory_space<vmem>>, %arg5: memref<1x128xf32, #tpu.memory_space<vmem>>, %arg6: memref<1x128xf32, #tpu.memory_space<vmem>>) attributes {dimension_semantics = [#tpu.dimension_semantics<arbitrary>], iteration_bounds = array<i64: 1>, scalar_prefetch = 0 : i64, scratch_operands = 2 : i64, tpu.core_type = #tpu.core_type<tc>, window_params = [{transform_indices = @transform_0, window_bounds = array<i64: 512, 72>}, {pipeline_mode = #tpu.pipeline_mode<synchronous>, transform_indices = @transform_1, window_bounds = array<i64: 72, 128>}, {transform_indices = @transform_2, window_bounds = array<i64: 512, 128>}, {pipeline_mode = #tpu.pipeline_mode<synchronous>, transform_indices = @transform_3, window_bounds = array<i64: 2, 128>}]} {
    %c0_i32 = arith.constant 0 : i32
    %0 = arith.cmpi eq, %arg0, %c0_i32 : i32
    %1 = arith.extui %0 : i1 to i32
    %c0_i32_0 = arith.constant 0 : i32
    %2 = arith.cmpi ne, %1, %c0_i32_0 : i32
    scf.if %2 {
      %cst_18 = arith.constant 0.000000e+00 : f32
      %22 = vector.broadcast %cst_18 : f32 to vector<1x128xf32>
      %c0_19 = arith.constant 0 : index
      %c0_20 = arith.constant 0 : index
      %23 = vector.load %arg5[%c0_19, %c0_20] : memref<1x128xf32, #tpu.memory_space<vmem>>, vector<1x128xf32>
      tpu.vector_store %arg5[%c0_19, %c0_20], %22 {strides = array<i32>} : memref<1x128xf32, #tpu.memory_space<vmem>>, vector<1x128xf32>,
      %cst_21 = arith.constant 0.000000e+00 : f32
      %24 = vector.broadcast %cst_21 : f32 to vector<1x128xf32>
      %c0_22 = arith.constant 0 : index
      %c0_23 = arith.constant 0 : index
      %25 = vector.load %arg6[%c0_22, %c0_23] : memref<1x128xf32, #tpu.memory_space<vmem>>, vector<1x128xf32>
      tpu.vector_store %arg6[%c0_22, %c0_23], %24 {strides = array<i32>} : memref<1x128xf32, #tpu.memory_space<vmem>>, vector<1x128xf32>,
    } else {
    }
    %c0 = arith.constant 0 : index
    %c0_1 = arith.constant 0 : index
    %3 = vector.load %arg1[%c0, %c0_1] : memref<512x72xbf16, #tpu.memory_space<vmem>>, vector<512x72xbf16>
    %c0_2 = arith.constant 0 : index
    %c0_3 = arith.constant 0 : index
    %4 = vector.load %arg2[%c0_2, %c0_3] : memref<72x128xbf16, #tpu.memory_space<vmem>>, vector<72x128xbf16>
    %cst = arith.constant dense<0.000000e+00> : vector<512x128xf32>
    %5 = tpu.matmul %3, %4, %cst {dimension_numbers = #tpu.dot_dimension_numbers<[1], [0], [0], [1], [0, 0, 1, 1], [], []>} : vector<512x72xbf16>, vector<72x128xbf16>, vector<512x128xf32> -> vector<512x128xf32>
    %6 = arith.truncf %5 : vector<512x128xf32> to vector<512x128xbf16>
    %c0_4 = arith.constant 0 : index
    %c0_5 = arith.constant 0 : index
    %7 = vector.load %arg3[%c0_4, %c0_5] : memref<512x128xbf16, #tpu.memory_space<vmem>>, vector<512x128xbf16>
    tpu.vector_store %arg3[%c0_4, %c0_5], %6 {strides = array<i32>} : memref<512x128xbf16, #tpu.memory_space<vmem>>, vector<512x128xbf16>,
    %c0_6 = arith.constant 0 : index
    %c0_7 = arith.constant 0 : index
    %8 = vector.load %arg5[%c0_6, %c0_7] : memref<1x128xf32, #tpu.memory_space<vmem>>, vector<1x128xf32>
    %cst_8 = arith.constant dense<0.000000e+00> : vector<128xf32>
    %9 = vector.multi_reduction <add>, %5, %cst_8 [0] : vector<512x128xf32> to vector<128xf32>
    %10 = vector.shape_cast %9 : vector<128xf32> to vector<1x128xf32>
    %11 = arith.addf %8, %10 : vector<1x128xf32>
    %c0_9 = arith.constant 0 : index
    %c0_10 = arith.constant 0 : index
    %12 = vector.load %arg5[%c0_9, %c0_10] : memref<1x128xf32, #tpu.memory_space<vmem>>, vector<1x128xf32>
    tpu.vector_store %arg5[%c0_9, %c0_10], %11 {strides = array<i32>} : memref<1x128xf32, #tpu.memory_space<vmem>>, vector<1x128xf32>,
    %c0_11 = arith.constant 0 : index
    %c0_12 = arith.constant 0 : index
    %13 = vector.load %arg6[%c0_11, %c0_12] : memref<1x128xf32, #tpu.memory_space<vmem>>, vector<1x128xf32>
    %14 = arith.mulf %5, %5 : vector<512x128xf32>
    %cst_13 = arith.constant dense<0.000000e+00> : vector<128xf32>
    %15 = vector.multi_reduction <add>, %14, %cst_13 [0] : vector<512x128xf32> to vector<128xf32>
    %16 = vector.shape_cast %15 : vector<128xf32> to vector<1x128xf32>
    %17 = arith.addf %13, %16 : vector<1x128xf32>
    %c0_14 = arith.constant 0 : index
    %c0_15 = arith.constant 0 : index
    %18 = vector.load %arg6[%c0_14, %c0_15] : memref<1x128xf32, #tpu.memory_space<vmem>>, vector<1x128xf32>
    tpu.vector_store %arg6[%c0_14, %c0_15], %17 {strides = array<i32>} : memref<1x128xf32, #tpu.memory_space<vmem>>, vector<1x128xf32>,
    %c0_i32_16 = arith.constant 0 : i32
    %19 = arith.cmpi eq, %arg0, %c0_i32_16 : i32
    %20 = arith.extui %19 : i1 to i32
    %c0_i32_17 = arith.constant 0 : i32
    %21 = arith.cmpi ne, %20, %c0_i32_17 : i32
    scf.if %21 {
      %c0_18 = arith.constant 0 : index
      %c0_19 = arith.constant 0 : index
      %22 = vector.load %arg5[%c0_18, %c0_19] : memref<1x128xf32, #tpu.memory_space<vmem>>, vector<1x128xf32>
      %c0_20 = arith.constant 0 : index
      %c0_21 = arith.constant 0 : index
      %23 = vector.load %arg4[%c0_20, %c0_21] : memref<2x128xf32, #tpu.memory_space<vmem>>, vector<1x128xf32>
      tpu.vector_store %arg4[%c0_20, %c0_21], %22 {strides = array<i32>} : memref<2x128xf32, #tpu.memory_space<vmem>>, vector<1x128xf32>,
      %c0_22 = arith.constant 0 : index
      %c0_23 = arith.constant 0 : index
      %24 = vector.load %arg6[%c0_22, %c0_23] : memref<1x128xf32, #tpu.memory_space<vmem>>, vector<1x128xf32>
      %c1 = arith.constant 1 : index
      %c0_24 = arith.constant 0 : index
      %25 = vector.load %arg4[%c1, %c0_24] : memref<2x128xf32, #tpu.memory_space<vmem>>, vector<1x128xf32>
      tpu.vector_store %arg4[%c1, %c0_24], %24 {strides = array<i32>} : memref<2x128xf32, #tpu.memory_space<vmem>>, vector<1x128xf32>,
    } else {
    }
    return
  }
  func.func @transform_0(%arg0: i32) -> (i32, i32) {
    %c0_i32 = arith.constant 0 : i32
    %c0_i32_0 = arith.constant 0 : i32
    return %arg0, %c0_i32 : i32, i32
  }
  func.func @transform_1(%arg0: i32) -> (i32, i32) {
    %c0_i32 = arith.constant 0 : i32
    %c0_i32_0 = arith.constant 0 : i32
    %c0_i32_1 = arith.constant 0 : i32
    return %c0_i32, %c0_i32_0 : i32, i32
  }
  func.func @transform_2(%arg0: i32) -> (i32, i32) {
    %c0_i32 = arith.constant 0 : i32
    %c0_i32_0 = arith.constant 0 : i32
    return %arg0, %c0_i32 : i32, i32
  }
  func.func @transform_3(%arg0: i32) -> (i32, i32) {
    %c0_i32 = arith.constant 0 : i32
    %c0_i32_0 = arith.constant 0 : i32
    %c0_i32_1 = arith.constant 0 : i32
    return %c0_i32, %c0_i32_0 : i32, i32
  }
}

module attributes {stable_mosaic.version = 11 : i64} {
  func.func @_bn1_apply_stats_kernel(%arg0: i32, %arg1: memref<512x128xbf16, #tpu.memory_space<vmem>>, %arg2: memref<1x128xf32, #tpu.memory_space<vmem>>, %arg3: memref<1x128xf32, #tpu.memory_space<vmem>>, %arg4: memref<2x128xf32, #tpu.memory_space<vmem>>, %arg5: memref<1x128xf32, #tpu.memory_space<vmem>>, %arg6: memref<1x128xf32, #tpu.memory_space<vmem>>) attributes {dimension_semantics = [#tpu.dimension_semantics<arbitrary>], iteration_bounds = array<i64: 1>, scalar_prefetch = 0 : i64, scratch_operands = 2 : i64, tpu.core_type = #tpu.core_type<tc>, window_params = [{transform_indices = @transform_0, window_bounds = array<i64: 512, 128>}, {pipeline_mode = #tpu.pipeline_mode<synchronous>, transform_indices = @transform_1, window_bounds = array<i64: 1, 128>}, {pipeline_mode = #tpu.pipeline_mode<synchronous>, transform_indices = @transform_2, window_bounds = array<i64: 1, 128>}, {pipeline_mode = #tpu.pipeline_mode<synchronous>, transform_indices = @transform_3, window_bounds = array<i64: 2, 128>}]} {
    %c0_i32 = arith.constant 0 : i32
    %0 = arith.cmpi eq, %arg0, %c0_i32 : i32
    %1 = arith.extui %0 : i1 to i32
    %c0_i32_0 = arith.constant 0 : i32
    %2 = arith.cmpi ne, %1, %c0_i32_0 : i32
    scf.if %2 {
      %cst_18 = arith.constant 0.000000e+00 : f32
      %27 = vector.broadcast %cst_18 : f32 to vector<1x128xf32>
      %c0_19 = arith.constant 0 : index
      %c0_20 = arith.constant 0 : index
      %28 = vector.load %arg5[%c0_19, %c0_20] : memref<1x128xf32, #tpu.memory_space<vmem>>, vector<1x128xf32>
      tpu.vector_store %arg5[%c0_19, %c0_20], %27 {strides = array<i32>} : memref<1x128xf32, #tpu.memory_space<vmem>>, vector<1x128xf32>,
      %cst_21 = arith.constant 0.000000e+00 : f32
      %29 = vector.broadcast %cst_21 : f32 to vector<1x128xf32>
      %c0_22 = arith.constant 0 : index
      %c0_23 = arith.constant 0 : index
      %30 = vector.load %arg6[%c0_22, %c0_23] : memref<1x128xf32, #tpu.memory_space<vmem>>, vector<1x128xf32>
      tpu.vector_store %arg6[%c0_22, %c0_23], %29 {strides = array<i32>} : memref<1x128xf32, #tpu.memory_space<vmem>>, vector<1x128xf32>,
    } else {
    }
    %c0 = arith.constant 0 : index
    %c0_1 = arith.constant 0 : index
    %3 = vector.load %arg1[%c0, %c0_1] : memref<512x128xbf16, #tpu.memory_space<vmem>>, vector<512x128xbf16>
    %4 = arith.extf %3 : vector<512x128xbf16> to vector<512x128xf32>
    %c0_2 = arith.constant 0 : index
    %c0_3 = arith.constant 0 : index
    %5 = vector.load %arg2[%c0_2, %c0_3] : memref<1x128xf32, #tpu.memory_space<vmem>>, vector<1x128xf32>
    %6 = vector.broadcast %5 : vector<1x128xf32> to vector<512x128xf32>
    %7 = arith.mulf %4, %6 : vector<512x128xf32>
    %c0_4 = arith.constant 0 : index
    %c0_5 = arith.constant 0 : index
    %8 = vector.load %arg3[%c0_4, %c0_5] : memref<1x128xf32, #tpu.memory_space<vmem>>, vector<1x128xf32>
    %9 = vector.broadcast %8 : vector<1x128xf32> to vector<512x128xf32>
    %10 = arith.addf %7, %9 : vector<512x128xf32>
    %cst = arith.constant 0.000000e+00 : f32
    %11 = vector.broadcast %cst : f32 to vector<512x128xf32>
    %12 = arith.maximumf %10, %11 : vector<512x128xf32>
    %c0_6 = arith.constant 0 : index
    %c0_7 = arith.constant 0 : index
    %13 = vector.load %arg5[%c0_6, %c0_7] : memref<1x128xf32, #tpu.memory_space<vmem>>, vector<1x128xf32>
    %cst_8 = arith.constant dense<0.000000e+00> : vector<128xf32>
    %14 = vector.multi_reduction <add>, %12, %cst_8 [0] : vector<512x128xf32> to vector<128xf32>
    %15 = vector.shape_cast %14 : vector<128xf32> to vector<1x128xf32>
    %16 = arith.addf %13, %15 : vector<1x128xf32>
    %c0_9 = arith.constant 0 : index
    %c0_10 = arith.constant 0 : index
    %17 = vector.load %arg5[%c0_9, %c0_10] : memref<1x128xf32, #tpu.memory_space<vmem>>, vector<1x128xf32>
    tpu.vector_store %arg5[%c0_9, %c0_10], %16 {strides = array<i32>} : memref<1x128xf32, #tpu.memory_space<vmem>>, vector<1x128xf32>,
    %c0_11 = arith.constant 0 : index
    %c0_12 = arith.constant 0 : index
    %18 = vector.load %arg6[%c0_11, %c0_12] : memref<1x128xf32, #tpu.memory_space<vmem>>, vector<1x128xf32>
    %19 = arith.mulf %12, %12 : vector<512x128xf32>
    %cst_13 = arith.constant dense<0.000000e+00> : vector<128xf32>
    %20 = vector.multi_reduction <add>, %19, %cst_13 [0] : vector<512x128xf32> to vector<128xf32>
    %21 = vector.shape_cast %20 : vector<128xf32> to vector<1x128xf32>
    %22 = arith.addf %18, %21 : vector<1x128xf32>
    %c0_14 = arith.constant 0 : index
    %c0_15 = arith.constant 0 : index
    %23 = vector.load %arg6[%c0_14, %c0_15] : memref<1x128xf32, #tpu.memory_space<vmem>>, vector<1x128xf32>
    tpu.vector_store %arg6[%c0_14, %c0_15], %22 {strides = array<i32>} : memref<1x128xf32, #tpu.memory_space<vmem>>, vector<1x128xf32>,
    %c0_i32_16 = arith.constant 0 : i32
    %24 = arith.cmpi eq, %arg0, %c0_i32_16 : i32
    %25 = arith.extui %24 : i1 to i32
    %c0_i32_17 = arith.constant 0 : i32
    %26 = arith.cmpi ne, %25, %c0_i32_17 : i32
    scf.if %26 {
      %c0_18 = arith.constant 0 : index
      %c0_19 = arith.constant 0 : index
      %27 = vector.load %arg5[%c0_18, %c0_19] : memref<1x128xf32, #tpu.memory_space<vmem>>, vector<1x128xf32>
      %c0_20 = arith.constant 0 : index
      %c0_21 = arith.constant 0 : index
      %28 = vector.load %arg4[%c0_20, %c0_21] : memref<2x128xf32, #tpu.memory_space<vmem>>, vector<1x128xf32>
      tpu.vector_store %arg4[%c0_20, %c0_21], %27 {strides = array<i32>} : memref<2x128xf32, #tpu.memory_space<vmem>>, vector<1x128xf32>,
      %c0_22 = arith.constant 0 : index
      %c0_23 = arith.constant 0 : index
      %29 = vector.load %arg6[%c0_22, %c0_23] : memref<1x128xf32, #tpu.memory_space<vmem>>, vector<1x128xf32>
      %c1 = arith.constant 1 : index
      %c0_24 = arith.constant 0 : index
      %30 = vector.load %arg4[%c1, %c0_24] : memref<2x128xf32, #tpu.memory_space<vmem>>, vector<1x128xf32>
      tpu.vector_store %arg4[%c1, %c0_24], %29 {strides = array<i32>} : memref<2x128xf32, #tpu.memory_space<vmem>>, vector<1x128xf32>,
    } else {
    }
    return
  }
  func.func @transform_0(%arg0: i32) -> (i32, i32) {
    %c0_i32 = arith.constant 0 : i32
    %c0_i32_0 = arith.constant 0 : i32
    return %arg0, %c0_i32 : i32, i32
  }
  func.func @transform_1(%arg0: i32) -> (i32, i32) {
    %c0_i32 = arith.constant 0 : i32
    %c0_i32_0 = arith.constant 0 : i32
    %c0_i32_1 = arith.constant 0 : i32
    return %c0_i32, %c0_i32_0 : i32, i32
  }
  func.func @transform_2(%arg0: i32) -> (i32, i32) {
    %c0_i32 = arith.constant 0 : i32
    %c0_i32_0 = arith.constant 0 : i32
    %c0_i32_1 = arith.constant 0 : i32
    return %c0_i32, %c0_i32_0 : i32, i32
  }
  func.func @transform_3(%arg0: i32) -> (i32, i32) {
    %c0_i32 = arith.constant 0 : i32
    %c0_i32_0 = arith.constant 0 : i32
    %c0_i32_1 = arith.constant 0 : i32
    return %c0_i32, %c0_i32_0 : i32, i32
  }
}

module attributes {stable_mosaic.version = 11 : i64} {
  func.func @_apply_kernel(%arg0: i32, %arg1: memref<512x128xbf16, #tpu.memory_space<vmem>>, %arg2: memref<1x128xf32, #tpu.memory_space<vmem>>, %arg3: memref<1x128xf32, #tpu.memory_space<vmem>>, %arg4: memref<1x128xf32, #tpu.memory_space<vmem>>, %arg5: memref<1x128xf32, #tpu.memory_space<vmem>>, %arg6: memref<512x8xbf16, #tpu.memory_space<vmem>>, %arg7: memref<8x128xbf16, #tpu.memory_space<vmem>>, %arg8: memref<1x128xf32, #tpu.memory_space<vmem>>, %arg9: memref<512x128xf32, #tpu.memory_space<vmem>>) attributes {dimension_semantics = [#tpu.dimension_semantics<parallel>], iteration_bounds = array<i64: 1>, scalar_prefetch = 0 : i64, scratch_operands = 0 : i64, tpu.core_type = #tpu.core_type<tc>, window_params = [{transform_indices = @transform_0, window_bounds = array<i64: 512, 128>}, {pipeline_mode = #tpu.pipeline_mode<synchronous>, transform_indices = @transform_1, window_bounds = array<i64: 1, 128>}, {pipeline_mode = #tpu.pipeline_mode<synchronous>, transform_indices = @transform_2, window_bounds = array<i64: 1, 128>}, {pipeline_mode = #tpu.pipeline_mode<synchronous>, transform_indices = @transform_3, window_bounds = array<i64: 1, 128>}, {pipeline_mode = #tpu.pipeline_mode<synchronous>, transform_indices = @transform_4, window_bounds = array<i64: 1, 128>}, {transform_indices = @transform_5, window_bounds = array<i64: 512, 8>}, {pipeline_mode = #tpu.pipeline_mode<synchronous>, transform_indices = @transform_6, window_bounds = array<i64: 8, 128>}, {pipeline_mode = #tpu.pipeline_mode<synchronous>, transform_indices = @transform_7, window_bounds = array<i64: 1, 128>}, {transform_indices = @transform_8, window_bounds = array<i64: 512, 128>}]} {
    %c0 = arith.constant 0 : index
    %c0_0 = arith.constant 0 : index
    %0 = vector.load %arg1[%c0, %c0_0] : memref<512x128xbf16, #tpu.memory_space<vmem>>, vector<512x128xbf16>
    %1 = arith.extf %0 : vector<512x128xbf16> to vector<512x128xf32>
    %c0_1 = arith.constant 0 : index
    %c0_2 = arith.constant 0 : index
    %2 = vector.load %arg2[%c0_1, %c0_2] : memref<1x128xf32, #tpu.memory_space<vmem>>, vector<1x128xf32>
    %3 = vector.broadcast %2 : vector<1x128xf32> to vector<512x128xf32>
    %4 = arith.mulf %1, %3 : vector<512x128xf32>
    %c0_3 = arith.constant 0 : index
    %c0_4 = arith.constant 0 : index
    %5 = vector.load %arg3[%c0_3, %c0_4] : memref<1x128xf32, #tpu.memory_space<vmem>>, vector<1x128xf32>
    %6 = vector.broadcast %5 : vector<1x128xf32> to vector<512x128xf32>
    %7 = arith.addf %4, %6 : vector<512x128xf32>
    %cst = arith.constant 0.000000e+00 : f32
    %8 = vector.broadcast %cst : f32 to vector<512x128xf32>
    %9 = arith.maximumf %7, %8 : vector<512x128xf32>
    %c0_5 = arith.constant 0 : index
    %c0_6 = arith.constant 0 : index
    %10 = vector.load %arg4[%c0_5, %c0_6] : memref<1x128xf32, #tpu.memory_space<vmem>>, vector<1x128xf32>
    %11 = vector.broadcast %10 : vector<1x128xf32> to vector<512x128xf32>
    %12 = arith.mulf %9, %11 : vector<512x128xf32>
    %c0_7 = arith.constant 0 : index
    %c0_8 = arith.constant 0 : index
    %13 = vector.load %arg5[%c0_7, %c0_8] : memref<1x128xf32, #tpu.memory_space<vmem>>, vector<1x128xf32>
    %14 = vector.broadcast %13 : vector<1x128xf32> to vector<512x128xf32>
    %15 = arith.addf %12, %14 : vector<512x128xf32>
    %cst_9 = arith.constant 0.000000e+00 : f32
    %16 = vector.broadcast %cst_9 : f32 to vector<512x128xf32>
    %17 = arith.maximumf %15, %16 : vector<512x128xf32>
    %c0_10 = arith.constant 0 : index
    %c0_11 = arith.constant 0 : index
    %18 = vector.load %arg6[%c0_10, %c0_11] : memref<512x8xbf16, #tpu.memory_space<vmem>>, vector<512x8xbf16>
    %c0_12 = arith.constant 0 : index
    %c0_13 = arith.constant 0 : index
    %19 = vector.load %arg7[%c0_12, %c0_13] : memref<8x128xbf16, #tpu.memory_space<vmem>>, vector<8x128xbf16>
    %cst_14 = arith.constant dense<0.000000e+00> : vector<512x128xf32>
    %20 = tpu.matmul %18, %19, %cst_14 {dimension_numbers = #tpu.dot_dimension_numbers<[1], [0], [0], [1], [0, 0, 1, 1], [], []>} : vector<512x8xbf16>, vector<8x128xbf16>, vector<512x128xf32> -> vector<512x128xf32>
    %c0_15 = arith.constant 0 : index
    %c0_16 = arith.constant 0 : index
    %21 = vector.load %arg8[%c0_15, %c0_16] : memref<1x128xf32, #tpu.memory_space<vmem>>, vector<1x128xf32>
    %22 = vector.broadcast %21 : vector<1x128xf32> to vector<512x128xf32>
    %23 = arith.addf %20, %22 : vector<512x128xf32>
    %24 = arith.addf %17, %23 : vector<512x128xf32>
    %c0_17 = arith.constant 0 : index
    %c0_18 = arith.constant 0 : index
    %25 = vector.load %arg9[%c0_17, %c0_18] : memref<512x128xf32, #tpu.memory_space<vmem>>, vector<512x128xf32>
    tpu.vector_store %arg9[%c0_17, %c0_18], %24 {strides = array<i32>} : memref<512x128xf32, #tpu.memory_space<vmem>>, vector<512x128xf32>,
    return
  }
  func.func @transform_0(%arg0: i32) -> (i32, i32) {
    %c0_i32 = arith.constant 0 : i32
    %c0_i32_0 = arith.constant 0 : i32
    return %arg0, %c0_i32 : i32, i32
  }
  func.func @transform_1(%arg0: i32) -> (i32, i32) {
    %c0_i32 = arith.constant 0 : i32
    %c0_i32_0 = arith.constant 0 : i32
    %c0_i32_1 = arith.constant 0 : i32
    return %c0_i32, %c0_i32_0 : i32, i32
  }
  func.func @transform_2(%arg0: i32) -> (i32, i32) {
    %c0_i32 = arith.constant 0 : i32
    %c0_i32_0 = arith.constant 0 : i32
    %c0_i32_1 = arith.constant 0 : i32
    return %c0_i32, %c0_i32_0 : i32, i32
  }
  func.func @transform_3(%arg0: i32) -> (i32, i32) {
    %c0_i32 = arith.constant 0 : i32
    %c0_i32_0 = arith.constant 0 : i32
    %c0_i32_1 = arith.constant 0 : i32
    return %c0_i32, %c0_i32_0 : i32, i32
  }
  func.func @transform_4(%arg0: i32) -> (i32, i32) {
    %c0_i32 = arith.constant 0 : i32
    %c0_i32_0 = arith.constant 0 : i32
    %c0_i32_1 = arith.constant 0 : i32
    return %c0_i32, %c0_i32_0 : i32, i32
  }
  func.func @transform_5(%arg0: i32) -> (i32, i32) {
    %c0_i32 = arith.constant 0 : i32
    %c0_i32_0 = arith.constant 0 : i32
    return %arg0, %c0_i32 : i32, i32
  }
  func.func @transform_6(%arg0: i32) -> (i32, i32) {
    %c0_i32 = arith.constant 0 : i32
    %c0_i32_0 = arith.constant 0 : i32
    %c0_i32_1 = arith.constant 0 : i32
    return %c0_i32, %c0_i32_0 : i32, i32
  }
  func.func @transform_7(%arg0: i32) -> (i32, i32) {
    %c0_i32 = arith.constant 0 : i32
    %c0_i32_0 = arith.constant 0 : i32
    %c0_i32_1 = arith.constant 0 : i32
    return %c0_i32, %c0_i32_0 : i32, i32
  }
  func.func @transform_8(%arg0: i32) -> (i32, i32) {
    %c0_i32 = arith.constant 0 : i32
    %c0_i32_0 = arith.constant 0 : i32
    return %arg0, %c0_i32 : i32, i32
  }
}

</mosaic_0001>

<bundles_post_ra>
// kernel: residual_forward.4
= control target key start
LH: loop header
LB: loop body
LE: loop exit
PB: predicated region body
PF: predicated region fallthrough
CT: control target
= control target key end

     0   :  { %v735_v0 = vmov 0.0   ;;  %s1093_s0 = inlined_call_operand.vmem [shape: bf16[512,128], index: 0, kind: input, shape index: {}]   ;;  %s1094_s1 = inlined_call_operand.vmem [shape: f32[1,128], index: 1, kind: input, shape index: {}]   ;;  %s1095_s2 = inlined_call_operand.vmem [shape: f32[1,128], index: 2, kind: input, shape index: {}]   ;;  %s1096_s3 = inlined_call_operand.vmem [shape: f32[2,128], index: 3, kind: output, shape index: {}]  }
   0x1   :  { %18 = vst [vmem:[#allocation2] sm:$0x1] %v735_v0  ;;  %19 = vst [vmem:[#allocation3] sm:$0x1] %v735_v0  ;;  %v719_v1 = vld [vmem:[%s1093_s0 + $0x88] sm:$0xff]   ;;  %v720_v2 = vld [vmem:[%s1093_s0 + $0x90] sm:$0xff]  }
   0x2   :  { %v721_v3 = vld [vmem:[%s1093_s0 + $0x98] sm:$0xff]   ;;  %v722_v4 = vld [vmem:[%s1093_s0 + $0xa0] sm:$0xff]   ;;  %v723_v5 = vld [vmem:[%s1093_s0 + $0xa8] sm:$0xff]   ;;  %v645_v7 = vunpack.c.l.bf16 %v719_v1  ;;  %v646_v8 = vunpack.c.h.bf16 %v719_v1  ;;  %v649_v9 = vunpack.c.l.bf16 %v720_v2  ;;  %v650_v10 = vunpack.c.h.bf16 %v720_v2 }
   0x3   :  { %v724_v6 = vld [vmem:[%s1093_s0 + $0xb0] sm:$0xff]   ;;  %v725_v11 = vld [vmem:[%s1093_s0 + $0xb8] sm:$0xff]   ;;  %v726_v12 = vld [vmem:[%s1093_s0 + $0xc0] sm:$0xff]   ;;  %v653_v13 = vunpack.c.l.bf16 %v721_v3  ;;  %v654_v14 = vunpack.c.h.bf16 %v721_v3  ;;  %v657_v15 = vunpack.c.l.bf16 %v722_v4  ;;  %v658_v16 = vunpack.c.h.bf16 %v722_v4 }
   0x4   :  { %v727_v17 = vld [vmem:[%s1093_s0 + $0xc8] sm:$0xff]   ;;  %v728_v18 = vld [vmem:[%s1093_s0 + $0xd0] sm:$0xff]   ;;  %v661_v19 = vunpack.c.l.bf16 %v723_v5  ;;  %v662_v20 = vunpack.c.h.bf16 %v723_v5  ;;  %v665_v21 = vunpack.c.l.bf16 %v724_v6  ;;  %v666_v22 = vunpack.c.h.bf16 %v724_v6  ;;  %v729_v23 = vld [vmem:[%s1093_s0 + $0xd8] sm:$0xff]  }
   0x5   :  { %v730_v24 = vld [vmem:[%s1093_s0 + $0xe0] sm:$0xff]   ;;  %v669_v25 = vunpack.c.l.bf16 %v725_v11  ;;  %v670_v26 = vunpack.c.h.bf16 %v725_v11  ;;  %v673_v27 = vunpack.c.l.bf16 %v726_v12  ;;  %v674_v28 = vunpack.c.h.bf16 %v726_v12  ;;  %v731_v29 = vld [vmem:[%s1093_s0 + $0xe8] sm:$0xff]   ;;  %v732_v30 = vld [vmem:[%s1093_s0 + $0xf0] sm:$0xff]  }
   0x6   :  { %v677_v31 = vunpack.c.l.bf16 %v727_v17  ;;  %v678_v32 = vunpack.c.h.bf16 %v727_v17  ;;  %v681_v33 = vunpack.c.l.bf16 %v728_v18  ;;  %v682_v34 = vunpack.c.h.bf16 %v728_v18  ;;  %v733_v35 = vld [vmem:[%s1093_s0 + $0xf8] sm:$0xff]   ;;  %v804_v44 = vld [vmem:[%s1094_s1] ss:$0 sm:$0xff] }
   0x7   :  { %v685_v36 = vunpack.c.l.bf16 %v729_v23  ;;  %v686_v37 = vunpack.c.h.bf16 %v729_v23  ;;  %v689_v38 = vunpack.c.l.bf16 %v730_v24  ;;  %v690_v39 = vunpack.c.h.bf16 %v730_v24 }
   0x8   :  { %v693_v40 = vunpack.c.l.bf16 %v731_v29  ;;  %v694_v41 = vunpack.c.h.bf16 %v731_v29  ;;  %v697_v42 = vunpack.c.l.bf16 %v732_v30  ;;  %v698_v43 = vunpack.c.h.bf16 %v732_v30 }
   0x9   :  { %v701_v45 = vunpack.c.l.bf16 %v733_v35  ;;  %v702_v46 = vunpack.c.h.bf16 %v733_v35  ;;  %v189_v47 = vmul.f32 %v645_v7, %v804_v44  ;;  %v190_v48 = vmul.f32 %v646_v8, %v804_v44 }
   0xa   :  { %v191_v49 = vmul.f32 %v649_v9, %v804_v44  ;;  %v192_v50 = vmul.f32 %v650_v10, %v804_v44  ;;  %v193_v51 = vmul.f32 %v653_v13, %v804_v44  ;;  %v194_v52 = vmul.f32 %v654_v14, %v804_v44  ;;  %v835_v9 = vld [vmem:[%s1093_s0 + $0x80] sm:$0xff]  }
   0xb   :  { %v195_v53 = vmul.f32 %v657_v15, %v804_v44  ;;  %v196_v54 = vmul.f32 %v658_v16, %v804_v44  ;;  %v197_v55 = vmul.f32 %v661_v19, %v804_v44  ;;  %v198_v56 = vmul.f32 %v662_v20, %v804_v44  ;;  %v846_v16 = vld [vmem:[%s1095_s2] ss:$0 sm:$0xff] }
   0xc   :  { %v199_v57 = vmul.f32 %v665_v21, %v804_v44  ;;  %v200_v58 = vmul.f32 %v666_v22, %v804_v44  ;;  %v201_v59 = vmul.f32 %v669_v25, %v804_v44  ;;  %v202_v60 = vmul.f32 %v670_v26, %v804_v44 }
   0xd   :  { %v203_v61 = vmul.f32 %v673_v27, %v804_v44  ;;  %v204_v62 = vmul.f32 %v674_v28, %v804_v44  ;;  %v205_v63 = vmul.f32 %v677_v31, %v804_v44  ;;  %v206_v0 = vmul.f32 %v678_v32, %v804_v44 }
   0xe   :  { %v207_v1 = vmul.f32 %v681_v33, %v804_v44  ;;  %v208_v2 = vmul.f32 %v682_v34, %v804_v44  ;;  %v209_v3 = vmul.f32 %v685_v36, %v804_v44  ;;  %v210_v4 = vmul.f32 %v686_v37, %v804_v44 }
   0xf   :  { %v211_v5 = vmul.f32 %v689_v38, %v804_v44  ;;  %v212_v6 = vmul.f32 %v690_v39, %v804_v44  ;;  %v213_v7 = vmul.f32 %v693_v40, %v804_v44  ;;  %v214_v8 = vmul.f32 %v694_v41, %v804_v44 }
  0x10   :  { %v215_v10 = vmul.f32 %v697_v42, %v804_v44  ;;  %v216_v11 = vmul.f32 %v698_v43, %v804_v44  ;;  %v217_v12 = vmul.f32 %v701_v45, %v804_v44  ;;  %v218_v13 = vmul.f32 %v702_v46, %v804_v44  ;;  %v576_v45 = vld [vmem:[%s1093_s0] sm:$0xff]  }
  0x11   :  { %v642_v14 = vunpack.c.h.bf16 %v835_v9  ;;  %v852_v18 = vadd.f32 %v846_v16, %v189_v47  ;;  %v855_v19 = vadd.f32 %v846_v16, %v190_v48  ;;  %v858_v20 = vadd.f32 %v846_v16, %v191_v49 }
  0x12   :  { %v861_v21 = vadd.f32 %v846_v16, %v192_v50  ;;  %v864_v22 = vadd.f32 %v846_v16, %v193_v51  ;;  %v867_v23 = vadd.f32 %v846_v16, %v194_v52  ;;  %v870_v24 = vadd.f32 %v846_v16, %v195_v53  ;;  %v703_v50 = vld [vmem:[%s1093_s0 + $0x8] sm:$0xff]  }
  0x13   :  { %v188_v15 = vmul.f32 %v642_v14, %v804_v44  ;;  %v873_v25 = vadd.f32 %v846_v16, %v196_v54  ;;  %v876_v26 = vadd.f32 %v846_v16, %v197_v55  ;;  %v879_v27 = vadd.f32 %v846_v16, %v198_v56  ;;  %v704_v54 = vld [vmem:[%s1093_s0 + $0x10] sm:$0xff]  }
  0x14   :  { %v882_v28 = vadd.f32 %v846_v16, %v199_v57  ;;  %v885_v29 = vadd.f32 %v846_v16, %v200_v58  ;;  %v888_v30 = vadd.f32 %v846_v16, %v201_v59  ;;  %v891_v31 = vadd.f32 %v846_v16, %v202_v60  ;;  %v705_v60 = vld [vmem:[%s1093_s0 + $0x18] sm:$0xff]  }
  0x15   :  { %v849_v17 = vadd.f32 %v846_v16, %v188_v15  ;;  %v894_v32 = vadd.f32 %v846_v16, %v203_v61  ;;  %v897_v33 = vadd.f32 %v846_v16, %v204_v62  ;;  %v900_v34 = vadd.f32 %v846_v16, %v205_v63 }
  0x16   :  { %v903_v35 = vadd.f32 %v846_v16, %v206_v0  ;;  %v906_v36 = vadd.f32 %v846_v16, %v207_v1  ;;  %v909_v37 = vadd.f32 %v846_v16, %v208_v2  ;;  %v912_v38 = vadd.f32 %v846_v16, %v209_v3  ;;  %v706_v2 = vld [vmem:[%s1093_s0 + $0x20] sm:$0xff]  }
  0x17   :  { %v915_v39 = vadd.f32 %v846_v16, %v210_v4  ;;  %v918_v40 = vadd.f32 %v846_v16, %v211_v5  ;;  %v921_v41 = vadd.f32 %v846_v16, %v212_v6  ;;  %v924_v42 = vadd.f32 %v846_v16, %v213_v7 }
  0x18   :  { %v927_v43 = vadd.f32 %v846_v16, %v214_v8  ;;  %v933_v46 = vadd.f32 %v846_v16, %v215_v10  ;;  %v936_v47 = vadd.f32 %v846_v16, %v216_v11  ;;  %v939_v48 = vadd.f32 %v846_v16, %v217_v12  ;;  %v707_v12 = vld [vmem:[%s1093_s0 + $0x28] sm:$0xff]  }
  0x19   :  { %1097 = vst [vmem:[#allocation4_spill] sm:$0xff] %v921_v41  ;;  %1098 = vst [vmem:[#allocation5_spill] sm:$0xff] %v924_v42  ;;  %v942_v49 = vadd.f32 %v846_v16, %v218_v13  ;;  %v577_v51 = vunpack.c.l.bf16 %v576_v45  ;;  %v578_v52 = vunpack.c.h.bf16 %v576_v45  ;;  %v581_v53 = vunpack.c.l.bf16 %v703_v50 }
  0x1a   :  { %1099 = vst [vmem:[#allocation6_spill] sm:$0xff] %v927_v43  ;;  %1100 = vst [vmem:[#allocation7_spill] sm:$0xff] %v933_v46  ;;  %v582_v55 = vunpack.c.h.bf16 %v703_v50  ;;  %v585_v58 = vunpack.c.l.bf16 %v704_v54  ;;  %v586_v61 = vunpack.c.h.bf16 %v704_v54  ;;  %v589_v1 = vunpack.c.l.bf16 %v705_v60 }
  0x1b   :  { %1101 = vst [vmem:[#allocation8_spill] sm:$0xff] %v936_v47  ;;  %1102 = vst [vmem:[#allocation9_spill] sm:$0xff] %v939_v48  ;;  %v155_v56 = vmul.f32 %v577_v51, %v804_v44  ;;  %v156_v57 = vmul.f32 %v578_v52, %v804_v44  ;;  %v157_v59 = vmul.f32 %v581_v53, %v804_v44  ;;  %v590_v5 = vunpack.c.h.bf16 %v705_v60 }
  0x1c   :  { %1103 = vst [vmem:[#allocation10_spill] sm:$0xff] %v942_v49  ;;  %v158_v62 = vmul.f32 %v582_v55, %v804_v44  ;;  %v159_v3 = vmul.f32 %v585_v58, %v804_v44  ;;  %v160_v6 = vmul.f32 %v586_v61, %v804_v44  ;;  %v593_v11 = vunpack.c.l.bf16 %v706_v2 }
  0x1d   :  { %v226_v63 = vadd.f32 %v846_v16, %v155_v56  ;;  %v227_v0 = vadd.f32 %v846_v16, %v156_v57  ;;  %v228_v4 = vadd.f32 %v846_v16, %v157_v59  ;;  %v161_v13 = vmul.f32 %v589_v1, %v804_v44  ;;  %v708_v56 = vld [vmem:[%s1093_s0 + $0x30] sm:$0xff]  }
  0x1e   :  { %v229_v7 = vadd.f32 %v846_v16, %v158_v62  ;;  %v230_v14 = vadd.f32 %v846_v16, %v159_v3  ;;  %v594_v50 = vunpack.c.h.bf16 %v706_v2  ;;  %v162_v51 = vmul.f32 %v590_v5, %v804_v44  ;;  %v709_v3 = vld [vmem:[%s1093_s0 + $0x38] sm:$0xff]  }
  0x1f   :  { %v290_v8 = vmax.f32 %v226_v63, 0.0  ;;  %v291_v10 = vmax.f32 %v227_v0, 0.0  ;;  %v292_v15 = vmax.f32 %v228_v4, 0.0  ;;  %v231_v52 = vadd.f32 %v846_v16, %v160_v6 }
  0x20   :  { %v293_v53 = vmax.f32 %v229_v7, 0.0  ;;  %v597_v55 = vunpack.c.l.bf16 %v707_v12  ;;  %v163_v57 = vmul.f32 %v593_v11, %v804_v44  ;;  %v232_v58 = vadd.f32 %v846_v16, %v161_v13 }
  0x21   :  { %v355_v45 = vadd.f32 %v291_v10, %v290_v8  ;;  %v294_v59 = vmax.f32 %v230_v14, 0.0  ;;  %v598_v61 = vunpack.c.h.bf16 %v707_v12  ;;  %v164_v62 = vmul.f32 %v594_v50, %v804_v44 }
  0x22   :  { %v233_v63 = vadd.f32 %v846_v16, %v162_v51  ;;  %v295_v0 = vmax.f32 %v231_v52, 0.0  ;;  %v601_v2 = vunpack.c.l.bf16 %v708_v56  ;;  %v165_v4 = vmul.f32 %v597_v55, %v804_v44  ;;  %v710_v51 = vld [vmem:[%s1093_s0 + $0x40] sm:$0xff]  }
  0x23   :  { %v356_v54 = vadd.f32 %v355_v45, %v292_v15  ;;  %v234_v5 = vadd.f32 %v846_v16, %v163_v57  ;;  %v296_v6 = vmax.f32 %v232_v58, 0.0  ;;  %v602_v11 = vunpack.c.h.bf16 %v708_v56 }
  0x24   :  { %v166_v12 = vmul.f32 %v598_v61, %v804_v44  ;;  %v235_v13 = vadd.f32 %v846_v16, %v164_v62  ;;  %v297_v14 = vmax.f32 %v233_v63, 0.0  ;;  %v605_v50 = vunpack.c.l.bf16 %v709_v3 }
  0x25   :  { %v357_v60 = vadd.f32 %v356_v54, %v293_v53  ;;  %v167_v52 = vmul.f32 %v601_v2, %v804_v44  ;;  %v236_v54 = vadd.f32 %v846_v16, %v165_v4  ;;  %v298_v55 = vmax.f32 %v234_v5, 0.0  ;;  %v711_v2 = vld [vmem:[%s1093_s0 + $0x48] sm:$0xff]  }
  0x26   :  { %v606_v58 = vunpack.c.h.bf16 %v709_v3  ;;  %v168_v56 = vmul.f32 %v602_v11, %v804_v44  ;;  %v299_v61 = vmax.f32 %v235_v13, 0.0  ;;  %v427_v63 = vmul.f32 %v290_v8, %v290_v8 }
  0x27   :  { %v358_v1 = vadd.f32 %v357_v60, %v294_v59  ;;  %v237_v60 = vadd.f32 %v846_v16, %v166_v12  ;;  %v169_v49 = vmul.f32 %v605_v50, %v804_v44  ;;  %v238_v4 = vadd.f32 %v846_v16, %v167_v52  ;;  %v712_v52 = vld [vmem:[%s1093_s0 + $0x50] sm:$0xff]  }
  0x28   :  { %v300_v5 = vmax.f32 %v236_v54, 0.0  ;;  %v429_v3 = vmul.f32 %v292_v15, %v292_v15  ;;  %v610_v48 = vunpack.c.h.bf16 %v710_v51  ;;  %v170_v11 = vmul.f32 %v606_v58, %v804_v44 }
  0x29   :  { %v359_v7 = vadd.f32 %v358_v1, %v295_v0  ;;  %v428_v1 = vmul.f32 %v291_v10, %v291_v10  ;;  %v239_v12 = vadd.f32 %v846_v16, %v168_v56  ;;  %v301_v13 = vmax.f32 %v237_v60, 0.0 }
  0x2a   :  { %v430_v10 = vmul.f32 %v293_v53, %v293_v53  ;;  %v613_v47 = vunpack.c.l.bf16 %v711_v2  ;;  %v240_v46 = vadd.f32 %v846_v16, %v169_v49  ;;  %v302_v54 = vmax.f32 %v238_v4, 0.0  ;;  %v713_v4 = vld [vmem:[%s1093_s0 + $0x58] sm:$0xff]  }
  0x2b   :  { %v360_v45 = vadd.f32 %v359_v7, %v296_v6  ;;  %v609_v7 = vunpack.c.l.bf16 %v710_v51  ;;  %v431_v51 = vmul.f32 %v294_v59, %v294_v59  ;;  %v614_v58 = vunpack.c.h.bf16 %v711_v2 }
  0x2c   :  { %v172_v56 = vmul.f32 %v610_v48, %v804_v44  ;;  %v241_v60 = vadd.f32 %v846_v16, %v170_v11  ;;  %v303_v53 = vmax.f32 %v239_v12, 0.0  ;;  %v173_v49 = vmul.f32 %v613_v47, %v804_v44 }
  0x2d   :  { %v361_v57 = vadd.f32 %v360_v45, %v297_v14  ;;  %v171_v50 = vmul.f32 %v609_v7, %v804_v44  ;;  %v617_v7 = vunpack.c.l.bf16 %v712_v52  ;;  %v304_v59 = vmax.f32 %v240_v46, 0.0  ;;  %v714_v46 = vld [vmem:[%s1093_s0 + $0x60] sm:$0xff]  }
  0x2e   :  { %v433_v2 = vmul.f32 %v296_v6, %v296_v6  ;;  %v618_v48 = vunpack.c.h.bf16 %v712_v52  ;;  %v174_v11 = vmul.f32 %v614_v58, %v804_v44  ;;  %v243_v12 = vadd.f32 %v846_v16, %v172_v56 }
  0x2f   :  { %v362_v62 = vadd.f32 %v361_v57, %v298_v55  ;;  %v491_v57 = vadd.f32 %v428_v1, %v427_v63  ;;  %v432_v1 = vmul.f32 %v295_v0, %v295_v0  ;;  %v242_v43 = vadd.f32 %v846_v16, %v171_v50 }
  0x30   :  { %v305_v0 = vmax.f32 %v241_v60, 0.0  ;;  %v621_v47 = vunpack.c.l.bf16 %v713_v4  ;;  %v175_v50 = vmul.f32 %v617_v7, %v804_v44  ;;  %v435_v52 = vmul.f32 %v298_v55, %v298_v55 }
  0x31   :  { %v363_v45 = vadd.f32 %v362_v62, %v299_v61  ;;  %v492_v62 = vadd.f32 %v491_v57, %v429_v3  ;;  %v434_v57 = vmul.f32 %v297_v14, %v297_v14  ;;  %v306_v6 = vmax.f32 %v242_v43, 0.0  ;;  %v715_v43 = vld [vmem:[%s1093_s0 + $0x68] sm:$0xff]  }
  0x32   :  { %v622_v58 = vunpack.c.h.bf16 %v713_v4  ;;  %v176_v56 = vmul.f32 %v618_v48, %v804_v44  ;;  %v245_v60 = vadd.f32 %v846_v16, %v174_v11  ;;  %v307_v14 = vmax.f32 %v243_v12, 0.0 }
  0x33   :  { %v364_v8 = vadd.f32 %v363_v45, %v300_v5  ;;  %v493_v45 = vadd.f32 %v492_v62, %v430_v10  ;;  %v244_v62 = vadd.f32 %v846_v16, %v173_v49  ;;  %v625_v7 = vunpack.c.l.bf16 %v714_v46 }
  0x34   :  { %v177_v49 = vmul.f32 %v621_v47, %v804_v44  ;;  %v437_v4 = vmul.f32 %v300_v5, %v300_v5  ;;  %v626_v48 = vunpack.c.h.bf16 %v714_v46  ;;  %v178_v11 = vmul.f32 %v622_v58, %v804_v44 }
  0x35   :  { %v365_v15 = vadd.f32 %v364_v8, %v301_v13  ;;  %v494_v8 = vadd.f32 %v493_v45, %v431_v51  ;;  %v436_v45 = vmul.f32 %v299_v61, %v299_v61  ;;  %v308_v55 = vmax.f32 %v244_v62, 0.0  ;;  %v716_v62 = vld [vmem:[%s1093_s0 + $0x70] sm:$0xff]  }
  0x36   :  { %v247_v12 = vadd.f32 %v846_v16, %v176_v56  ;;  %v309_v61 = vmax.f32 %v245_v60, 0.0  ;;  %v629_v47 = vunpack.c.l.bf16 %v715_v43  ;;  %v439_v46 = vmul.f32 %v302_v54, %v302_v54 }
  0x37   :  { %v366_v63 = vadd.f32 %v365_v15, %v302_v54  ;;  %v495_v15 = vadd.f32 %v494_v8, %v432_v1  ;;  %v246_v8 = vadd.f32 %v846_v16, %v175_v50  ;;  %v179_v50 = vmul.f32 %v625_v7, %v804_v44 }
  0x38   :  { %v630_v58 = vunpack.c.h.bf16 %v715_v43  ;;  %v180_v56 = vmul.f32 %v626_v48, %v804_v44  ;;  %v249_v60 = vadd.f32 %v846_v16, %v178_v11  ;;  %v633_v7 = vunpack.c.l.bf16 %v716_v62 }
  0x39   :  { %v367_v3 = vadd.f32 %v366_v63, %v303_v53  ;;  %v496_v63 = vadd.f32 %v495_v15, %v433_v2  ;;  %v438_v15 = vmul.f32 %v301_v13, %v301_v13  ;;  %v310_v5 = vmax.f32 %v246_v8, 0.0  ;;  %v717_v8 = vld [vmem:[%s1093_s0 + $0x78] sm:$0xff]  }
  0x3a   :  { %v311_v13 = vmax.f32 %v247_v12, 0.0  ;;  %v441_v43 = vmul.f32 %v304_v59, %v304_v59  ;;  %v634_v48 = vunpack.c.h.bf16 %v716_v62  ;;  %v182_v11 = vmul.f32 %v630_v58, %v804_v44 }
  0x3b   :  { %v368_v10 = vadd.f32 %v367_v3, %v304_v59  ;;  %v497_v3 = vadd.f32 %v496_v63, %v434_v57  ;;  %v248_v63 = vadd.f32 %v846_v16, %v177_v49  ;;  %v181_v49 = vmul.f32 %v629_v47, %v804_v44 }
  0x3c   :  { %v251_v12 = vadd.f32 %v846_v16, %v180_v56  ;;  %v637_v47 = vunpack.c.l.bf16 %v717_v8  ;;  %v638_v59 = vunpack.c.h.bf16 %v717_v8  ;;  %v184_v62 = vmul.f32 %v634_v48, %v804_v44 }
  0x3d   :  { %v369_v51 = vadd.f32 %v368_v10, %v305_v0  ;;  %v498_v10 = vadd.f32 %v497_v3, %v435_v52  ;;  %v440_v3 = vmul.f32 %v303_v53, %v303_v53  ;;  %v312_v54 = vmax.f32 %v248_v63, 0.0 }
  0x3e   :  { %v313_v53 = vmax.f32 %v249_v60, 0.0  ;;  %v443_v63 = vmul.f32 %v306_v6, %v306_v6  ;;  %v315_v58 = vmax.f32 %v251_v12, 0.0  ;;  %v444_v60 = vmul.f32 %v307_v14, %v307_v14 }
  0x3f   :  { %v370_v1 = vadd.f32 %v369_v51, %v306_v6  ;;  %v499_v51 = vadd.f32 %v498_v10, %v436_v45  ;;  %v250_v10 = vadd.f32 %v846_v16, %v179_v50  ;;  %v183_v50 = vmul.f32 %v633_v7, %v804_v44 }
  0x40   :  { %v186_v8 = vmul.f32 %v638_v59, %v804_v44 }
  0x41   :  { %v371_v2 = vadd.f32 %v370_v1, %v307_v14  ;;  %v500_v1 = vadd.f32 %v499_v51, %v437_v4  ;;  %v442_v51 = vmul.f32 %v305_v0, %v305_v0  ;;  %v314_v42 = vmax.f32 %v250_v10, 0.0 }
  0x42   :  { %v641_v0 = vunpack.c.l.bf16 %v835_v9  ;;  %v254_v7 = vadd.f32 %v846_v16, %v183_v50 }
  0x43   :  { %v372_v57 = vadd.f32 %v371_v2, %v308_v55  ;;  %v501_v2 = vadd.f32 %v500_v1, %v438_v15  ;;  %v252_v1 = vadd.f32 %v846_v16, %v181_v49 }
  0x44   :  { %v187_v14 = vmul.f32 %v641_v0, %v804_v44  ;;  %v318_v12 = vmax.f32 %v254_v7, 0.0 }
  0x45   :  { %v373_v52 = vadd.f32 %v372_v57, %v309_v61  ;;  %v502_v57 = vadd.f32 %v501_v2, %v439_v46  ;;  %v253_v46 = vadd.f32 %v846_v16, %v182_v11  ;;  %v316_v49 = vmax.f32 %v252_v1, 0.0 }
  0x46   :  { %v446_v11 = vmul.f32 %v309_v61, %v309_v61  ;;  %v448_v1 = vmul.f32 %v311_v13, %v311_v13  ;;  %v449_v61 = vmul.f32 %v312_v54, %v312_v54 }
  0x47   :  { %v374_v45 = vadd.f32 %v373_v52, %v310_v5  ;;  %v503_v52 = vadd.f32 %v502_v57, %v440_v3  ;;  %v185_v3 = vmul.f32 %v637_v47, %v804_v44  ;;  %v317_v57 = vmax.f32 %v253_v46, 0.0 }
  0x48   :  { %v257_v47 = vadd.f32 %v846_v16, %v186_v8  ;;  %v324_v8 = vmax.f32 %v852_v18, 0.0  ;;  %v328_v18 = vmax.f32 %v864_v22, 0.0  ;;  %v332_v22 = vmax.f32 %v876_v26, 0.0 }
  0x49   :  { %v375_v4 = vadd.f32 %v374_v45, %v311_v13  ;;  %v504_v45 = vadd.f32 %v503_v52, %v441_v43  ;;  %v255_v43 = vadd.f32 %v846_v16, %v184_v62  ;;  %v256_v9 = vadd.f32 %v846_v16, %v185_v3 }
  0x4a   :  { %v336_v26 = vmax.f32 %v888_v30, 0.0  ;;  %v340_v30 = vmax.f32 %v900_v34, 0.0  ;;  %v344_v34 = vmax.f32 %v912_v38, 0.0 }
  0x4b   :  { %v376_v15 = vadd.f32 %v375_v4, %v312_v54  ;;  %v505_v2 = vadd.f32 %v504_v45, %v442_v51  ;;  %v445_v4 = vmul.f32 %v308_v55, %v308_v55  ;;  %v447_v51 = vmul.f32 %v310_v5, %v310_v5 }
  0x4c   :  { %v319_v55 = vmax.f32 %v255_v43, 0.0  ;;  %v258_v45 = vadd.f32 %v846_v16, %v187_v14  ;;  %v320_v59 = vmax.f32 %v256_v9, 0.0  ;;  %v451_v5 = vmul.f32 %v314_v42, %v314_v42 }
  0x4d   :  { %v377_v41 = vadd.f32 %v376_v15, %v313_v53  ;;  %v506_v6 = vadd.f32 %v505_v2, %v443_v63  ;;  %v453_v43 = vmul.f32 %v316_v49, %v316_v49  ;;  %v325_v54 = vmax.f32 %v855_v19, 0.0 }
  0x4e   :  { %v322_v0 = vmax.f32 %v258_v45, 0.0  ;;  %v326_v14 = vmax.f32 %v858_v20, 0.0  ;;  %v329_v19 = vmax.f32 %v867_v23, 0.0  ;;  %v330_v20 = vmax.f32 %v870_v24, 0.0 }
  0x4f   :  { %v378_v56 = vadd.f32 %v377_v41, %v314_v42  ;;  %v507_v41 = vadd.f32 %v506_v6, %v444_v60  ;;  %v450_v60 = vmul.f32 %v313_v53, %v313_v53  ;;  %v452_v6 = vmul.f32 %v315_v58, %v315_v58 }
  0x50   :  { %v455_v42 = vmul.f32 %v318_v12, %v318_v12  ;;  %v333_v23 = vmax.f32 %v879_v27, 0.0  ;;  %v334_v24 = vmax.f32 %v882_v28, 0.0  ;;  %v337_v27 = vmax.f32 %v891_v31, 0.0 }
  0x51   :  { %v379_v10 = vadd.f32 %v378_v56, %v315_v58  ;;  %v508_v52 = vadd.f32 %v507_v41, %v445_v4  ;;  %v321_v56 = vmax.f32 %v257_v47, 0.0  ;;  %v454_v41 = vmul.f32 %v317_v57, %v317_v57 }
  0x52   :  { %v456_v58 = vmul.f32 %v319_v55, %v319_v55  ;;  %v338_v28 = vmax.f32 %v894_v32, 0.0  ;;  %v341_v31 = vmax.f32 %v903_v35, 0.0  ;;  %v342_v32 = vmax.f32 %v906_v36, 0.0 }
  0x53   :  { %v380_v48 = vadd.f32 %v379_v10, %v316_v49  ;;  %v509_v63 = vadd.f32 %v508_v52, %v446_v11  ;;  %v323_v10 = vmax.f32 %v849_v17, 0.0  ;;  %v327_v17 = vmax.f32 %v861_v21, 0.0 }
  0x54   :  { %v457_v49 = vmul.f32 %v320_v59, %v320_v59  ;;  %v331_v21 = vmax.f32 %v873_v25, 0.0  ;;  %v335_v25 = vmax.f32 %v885_v29, 0.0  ;;  %v339_v29 = vmax.f32 %v897_v33, 0.0 }
  0x55   :  { %v381_v15 = vadd.f32 %v380_v48, %v317_v57  ;;  %v510_v46 = vadd.f32 %v509_v63, %v447_v51  ;;  %v458_v57 = vmul.f32 %v321_v56, %v321_v56  ;;  %v343_v33 = vmax.f32 %v909_v37, 0.0 }
  0x56   :  { %v345_v35 = vmax.f32 %v915_v39, 0.0  ;;  %v346_v36 = vmax.f32 %v918_v40, 0.0 }
  0x57   :  { %v382_v50 = vadd.f32 %v381_v15, %v318_v12  ;;  %v511_v2 = vadd.f32 %v510_v46, %v448_v1  ;;  %v459_v12 = vmul.f32 %v322_v0, %v322_v0 }
  0x59   :  { %v383_v62 = vadd.f32 %v382_v50, %v319_v55  ;;  %v512_v7 = vadd.f32 %v511_v2, %v449_v61  ;;  %v460_v55 = vmul.f32 %v323_v10, %v323_v10 }
  0x5b   :  { %v384_v44 = vadd.f32 %v383_v62, %v320_v59  ;;  %v513_v13 = vadd.f32 %v512_v7, %v450_v60  ;;  %v461_v59 = vmul.f32 %v324_v8, %v324_v8 }
  0x5d   :  { %v385_v3 = vadd.f32 %v384_v44, %v321_v56  ;;  %v514_v48 = vadd.f32 %v513_v13, %v451_v5  ;;  %v462_v56 = vmul.f32 %v325_v54, %v325_v54 }
  0x5f   :  { %v386_v4 = vadd.f32 %v385_v3, %v322_v0  ;;  %v515_v53 = vadd.f32 %v514_v48, %v452_v6  ;;  %v463_v0 = vmul.f32 %v326_v14, %v326_v14  ;;  %v466_v48 = vmul.f32 %v329_v19, %v329_v19 }
  0x61   :  { %v387_v16 = vadd.f32 %v386_v4, %v323_v10  ;;  %v516_v15 = vadd.f32 %v515_v53, %v453_v43  ;;  %v464_v10 = vmul.f32 %v327_v17, %v327_v17 }
  0x63   :  { %v388_v11 = vadd.f32 %v387_v16, %v324_v8  ;;  %v517_v52 = vadd.f32 %v516_v15, %v454_v41  ;;  %v465_v8 = vmul.f32 %v328_v18, %v328_v18  ;;  %v467_v41 = vmul.f32 %v330_v20, %v330_v20 }
  0x65   :  { %v389_v9 = vadd.f32 %v388_v11, %v325_v54  ;;  %v518_v50 = vadd.f32 %v517_v52, %v455_v42  ;;  %v470_v52 = vmul.f32 %v333_v23, %v333_v23 }
  0x67   :  { %v390_v51 = vadd.f32 %v389_v9, %v326_v14  ;;  %v519_v63 = vadd.f32 %v518_v50, %v456_v58  ;;  %v468_v9 = vmul.f32 %v331_v21, %v331_v21 }
  0x69   :  { %v391_v47 = vadd.f32 %v390_v51, %v327_v17  ;;  %v520_v62 = vadd.f32 %v519_v63, %v457_v49  ;;  %v469_v17 = vmul.f32 %v332_v22, %v332_v22  ;;  %v471_v49 = vmul.f32 %v334_v24, %v334_v24 }
  0x6b   :  { %v392_v1 = vadd.f32 %v391_v47, %v328_v18  ;;  %v521_v46 = vadd.f32 %v520_v62, %v458_v57  ;;  %v474_v62 = vmul.f32 %v337_v27, %v337_v27 }
  0x6d   :  { %v393_v45 = vadd.f32 %v392_v1, %v329_v19  ;;  %v522_v60 = vadd.f32 %v521_v46, %v459_v12  ;;  %v472_v1 = vmul.f32 %v335_v25, %v335_v25 }
  0x6f   :  { %v394_v61 = vadd.f32 %v393_v45, %v330_v20  ;;  %v523_v3 = vadd.f32 %v522_v60, %v460_v55  ;;  %v473_v20 = vmul.f32 %v336_v26, %v336_v26  ;;  %v475_v55 = vmul.f32 %v338_v28, %v338_v28 }
  0x71   :  { %v395_v44 = vadd.f32 %v394_v61, %v331_v21  ;;  %v524_v7 = vadd.f32 %v523_v3, %v461_v59  ;;  %v476_v59 = vmul.f32 %v339_v29, %v339_v29 }
  0x73   :  { %v396_v2 = vadd.f32 %v395_v44, %v332_v22  ;;  %v525_v6 = vadd.f32 %v524_v7, %v462_v56  ;;  %v1104_v22 = vld [vmem:[#allocation4_spill] sm:$0xff]  ;;  %v477_v56 = vmul.f32 %v340_v30, %v340_v30 }
  0x74   :  { %v347_v37 = vmax.f32 %v1104_v22, 0.0 }
  0x75   :  { %v397_v5 = vadd.f32 %v396_v2, %v333_v23  ;;  %v526_v16 = vadd.f32 %v525_v6, %v463_v0  ;;  %v1105_v23 = vld [vmem:[#allocation5_spill] sm:$0xff]  ;;  %v478_v0 = vmul.f32 %v341_v31, %v341_v31 }
  0x76   :  { %v348_v38 = vmax.f32 %v1105_v23, 0.0 }
  0x77   :  { %v398_v4 = vadd.f32 %v397_v5, %v334_v24  ;;  %v527_v54 = vadd.f32 %v526_v16, %v464_v10  ;;  %v1106_v24 = vld [vmem:[#allocation6_spill] sm:$0xff]  ;;  %v479_v10 = vmul.f32 %v342_v32, %v342_v32  ;;  %v480_v16 = vmul.f32 %v343_v33, %v343_v33 }
  0x78   :  { %v349_v39 = vmax.f32 %v1106_v24, 0.0 }
  0x79   :  { %v399_v13 = vadd.f32 %v398_v4, %v335_v25  ;;  %v528_v53 = vadd.f32 %v527_v54, %v465_v8  ;;  %v1107_v25 = vld [vmem:[#allocation7_spill] sm:$0xff] }
  0x7a   :  { %v350_v40 = vmax.f32 %v1107_v25, 0.0 }
  0x7b   :  { %v400_v43 = vadd.f32 %v399_v13, %v336_v26  ;;  %v529_v42 = vadd.f32 %v528_v53, %v466_v48  ;;  %v1108_v26 = vld [vmem:[#allocation8_spill] sm:$0xff] }
  0x7c   :  { %v351_v13 = vmax.f32 %v1108_v26, 0.0 }
  0x7d   :  { %v401_v11 = vadd.f32 %v400_v43, %v337_v27  ;;  %v530_v51 = vadd.f32 %v529_v42, %v467_v41  ;;  %v1109_v43 = vld [vmem:[#allocation9_spill] sm:$0xff]  ;;  %v1110_v41 = vld [vmem:[#allocation10_spill] sm:$0xff] }
  0x7e   :  { %v352_v48 = vmax.f32 %v1109_v43, 0.0  ;;  %v353_v53 = vmax.f32 %v1110_v41, 0.0 }
  0x7f   :  { %v402_v14 = vadd.f32 %v401_v11, %v338_v28  ;;  %v531_v18 = vadd.f32 %v530_v51, %v468_v9  ;;  %v481_v28 = vmul.f32 %v344_v34, %v344_v34  ;;  %v484_v51 = vmul.f32 %v347_v37, %v347_v37 }
  0x81   :  { %v403_v15 = vadd.f32 %v402_v14, %v339_v29  ;;  %v532_v50 = vadd.f32 %v531_v18, %v469_v17  ;;  %v482_v14 = vmul.f32 %v345_v35, %v345_v35 }
  0x83   :  { %v404_v58 = vadd.f32 %v403_v15, %v340_v30  ;;  %v533_v57 = vadd.f32 %v532_v50, %v470_v52  ;;  %v483_v30 = vmul.f32 %v346_v36, %v346_v36  ;;  %v485_v52 = vmul.f32 %v348_v38, %v348_v38 }
  0x85   :  { %v405_v47 = vadd.f32 %v404_v58, %v341_v31  ;;  %v534_v45 = vadd.f32 %v533_v57, %v471_v49  ;;  %v488_v57 = vmul.f32 %v351_v13, %v351_v13 }
  0x87   :  { %v406_v19 = vadd.f32 %v405_v47, %v342_v32  ;;  %v535_v21 = vadd.f32 %v534_v45, %v472_v1  ;;  %v486_v47 = vmul.f32 %v349_v39, %v349_v39  ;;  %v489_v45 = vmul.f32 %v352_v48, %v352_v48 }
  0x89   :  { %v407_v63 = vadd.f32 %v406_v19, %v343_v33  ;;  %v536_v46 = vadd.f32 %v535_v21, %v473_v20  ;;  %v487_v33 = vmul.f32 %v350_v40, %v350_v40 }
  0x8b   :  { %v408_v12 = vadd.f32 %v407_v63, %v344_v34  ;;  %v537_v60 = vadd.f32 %v536_v46, %v474_v62  ;;  %v354_v63 = vld [vmem:[#allocation2] sm:$0x1]  ;;  %v490_v62 = vmul.f32 %v353_v53, %v353_v53 }
  0x8d   :  { %v409_v61 = vadd.f32 %v408_v12, %v345_v35  ;;  %v538_v3 = vadd.f32 %v537_v60, %v475_v55  ;;  %v426_v60 = vld [vmem:[#allocation3] sm:$0x1] }
  0x8f   :  { %v410_v44 = vadd.f32 %v409_v61, %v346_v36  ;;  %v539_v7 = vadd.f32 %v538_v3, %v476_v59 }
  0x91   :  { %v411_v2 = vadd.f32 %v410_v44, %v347_v37  ;;  %v540_v6 = vadd.f32 %v539_v7, %v477_v56 }
  0x93   :  { %v412_v5 = vadd.f32 %v411_v2, %v348_v38  ;;  %v541_v27 = vadd.f32 %v540_v6, %v478_v0 }
  0x95   :  { %v413_v4 = vadd.f32 %v412_v5, %v349_v39  ;;  %v542_v11 = vadd.f32 %v541_v27, %v479_v10 }
  0x97   :  { %v414_v8 = vadd.f32 %v413_v4, %v350_v40  ;;  %v543_v9 = vadd.f32 %v542_v11, %v480_v16 }
  0x99   :  { %v415_v54 = vadd.f32 %v414_v8, %v351_v13  ;;  %v544_v15 = vadd.f32 %v543_v9, %v481_v28 }
  0x9b   :  { %v416_v29 = vadd.f32 %v415_v54, %v352_v48  ;;  %v545_v31 = vadd.f32 %v544_v15, %v482_v14 }
  0x9d   :  { %v417_v42 = vadd.f32 %v416_v29, %v353_v53  ;;  %v546_v18 = vadd.f32 %v545_v31, %v483_v30 }
  0x9f   :  { %v418_v17 = vrot.slane %v417_v42, 4  ;;  %v547_v49 = vadd.f32 %v546_v18, %v484_v51 }
  0xa1   :  { %v419_v58 = vadd.f32 %v418_v17, %v417_v42  ;;  %v548_v19 = vadd.f32 %v547_v49, %v485_v52 }
  0xa3   :  { %v420_v32 = vrot.slane %v419_v58, 2  ;;  %v549_v34 = vadd.f32 %v548_v19, %v486_v47 }
  0xa5   :  { %v421_v50 = vadd.f32 %v420_v32, %v419_v58  ;;  %v550_v35 = vadd.f32 %v549_v34, %v487_v33 }
  0xa7   :  { %v422_v1 = vrot.slane %v421_v50, 1  ;;  %v551_v21 = vadd.f32 %v550_v35, %v488_v57 }
  0xa9   :  { %v423_v20 = vadd.f32 %v422_v1, %v421_v50  ;;  %v552_v36 = vadd.f32 %v551_v21, %v489_v45 }
  0xab   :  { %v424_v12 = vadd.f32 %v423_v20, %v354_v63  ;;  %v553_v61 = vadd.f32 %v552_v36, %v490_v62 }
  0xad   :  { %425 = vst [vmem:[#allocation2] sm:$0x1] %v424_v12  ;;  %v554_v55 = vrot.slane %v553_v61, 4 }
  0xaf   :  { %v555_v46 = vadd.f32 %v554_v55, %v553_v61 }
  0xb1   :  { %v556_v37 = vrot.slane %v555_v46, 2 }
  0xb3   :  { %v557_v44 = vadd.f32 %v556_v37, %v555_v46 }
  0xb4   :  { %v565_v22 = vld [vmem:[#allocation2] sm:$0x1] }
  0xb5   :  { %566 = vst [vmem:[%s1096_s3] sm:$0x1] %v565_v22  ;;  %v558_v59 = vrot.slane %v557_v44, 1 }
  0xb7   :  { %v559_v23 = vadd.f32 %v558_v59, %v557_v44 }
  0xb9   :  { %v560_v38 = vadd.f32 %v559_v23, %v426_v60 }
  0xbb   :  { %561 = vst [vmem:[#allocation3] sm:$0x1] %v560_v38 }
  0xc2   :  { %v567_v2 = vld [vmem:[#allocation3] sm:$0x1] }
  0xc3   :  { %568 = vst [vmem:[%s1096_s3 + $0x1] sm:$0x1] %v567_v2 }

// kernel: residual_forward.3
= control target key start
LH: loop header
LB: loop body
LE: loop exit
PB: predicated region body
PF: predicated region fallthrough
CT: control target
= control target key end

     0   :  { %vm280_vm0 = vcmask 588800   ;;  %vm377_vm1 = vcmask 1043456   ;;  %v1762_v38 = vmov 0.0   ;;  %s2220_s1 = inlined_call_operand.vmem [shape: bf16[72,128], index: 1, kind: input, shape index: {}]   ;;  %s2221_s0 = inlined_call_operand.vmem [shape: bf16[512,72], index: 0, kind: input, shape index: {}]   ;;  %s2222_s2 = inlined_call_operand.vmem [shape: bf16[512,128], index: 2, kind: output, shape index: {0}]   ;;  %s2223_s3 = inlined_call_operand.vmem [shape: f32[2,128], index: 3, kind: output, shape index: {1}]  }
   0x1   :  { %v1725_v0 = vld [vmem:[%s2220_s1] sm:$0xff]   ;;  %v1726_v1 = vld [vmem:[%s2220_s1 + $0x8] sm:$0xff]   ;;  %v1727_v2 = vld [vmem:[%s2220_s1 + $0x10] sm:$0xff]   ;;  %18 = vst [vmem:[#allocation2] sm:$0x1] %v1762_v38 }
   0x2   :  { %1638 = vmatprep.subr.bf16.mxu0 %v1725_v0  ;;  %1712 = vmatprep.subr.bf16.mxu1 %v1725_v0  ;;  %v1730_v3 = vld [vmem:[%s2221_s0] sm:$0xff]   ;;  %v1728_v4 = vld [vmem:[%s2220_s1 + $0x18] sm:$0xff]   ;;  %v1731_v7 = vld [vmem:[%s2221_s0 + $0x8] sm:$0xff]   ;;  %19 = vst [vmem:[#allocation3] sm:$0x1] %v1762_v38 }
   0x3   :  { %1639 = vmatpush3.bf16.msra.mxu0 %v1725_v0  ;;  %1717 = vmatpush3.bf16.msra.mxu1 %v1725_v0  ;;  %v1729_v5 = vld [vmem:[%s2220_s1 + $0x20] ss:$0 sps:$4 sm:$0xff]   ;;  %v1732_v8 = vld [vmem:[%s2221_s0 + $0x10] sm:$0xff]   ;;  %v1747_v10 = vld [vmem:[%s2221_s0 + $0x88] sm:$0xff]  }
   0x4   :  { %1640 = vmatprep.subr.bf16.mxu0 %v1726_v1  ;;  %1713 = vmatprep.subr.bf16.mxu1 %v1726_v1  ;;  %v379_v6 = vsel %vm377_vm1, %v1729_v5, 0  ;;  %v1746_v9 = vld [vmem:[%s2221_s0 + $0x80] sm:$0xff]   ;;  %v1748_v11 = vld [vmem:[%s2221_s0 + $0x90] sm:$0xff]   ;;  %v1733_v12 = vld [vmem:[%s2221_s0 + $0x18] sm:$0xff]  }
   0x5   :  { %1648 = vmatprep.mubr.msk.bf16.mxu0 %vm280_vm0, %v1730_v3  ;;  %1680 = vmatprep.mubr.msk.bf16.mxu1 %vm280_vm0, %v1746_v9  ;;  %v1734_v13 = vld [vmem:[%s2221_s0 + $0x20] sm:$0xff]   ;;  %v1749_v14 = vld [vmem:[%s2221_s0 + $0x98] sm:$0xff]   ;;  %v1735_v16 = vld [vmem:[%s2221_s0 + $0x28] sm:$0xff]  }
   0x6   :  { %v1750_v15 = vld [vmem:[%s2221_s0 + $0xa0] sm:$0xff]   ;;  %v1736_v17 = vld [vmem:[%s2221_s0 + $0x30] sm:$0xff]   ;;  %v1751_v18 = vld [vmem:[%s2221_s0 + $0xa8] sm:$0xff]  }
   0x7   :  { %1641 = vmatpush3.bf16.msra.mxu0 %v1726_v1  ;;  %1718 = vmatpush3.bf16.msra.mxu1 %v1726_v1  ;;  %v1752_v19 = vld [vmem:[%s2221_s0 + $0xb0] sm:$0xff]   ;;  %v1737_v20 = vld [vmem:[%s2221_s0 + $0x38] sm:$0xff]   ;;  %v1738_v21 = vld [vmem:[%s2221_s0 + $0x40] sm:$0xff]  }
   0x8   :  { %1642 = vmatprep.subr.bf16.mxu0 %v1727_v2  ;;  %1714 = vmatprep.subr.bf16.mxu1 %v1727_v2  ;;  %v1753_v22 = vld [vmem:[%s2221_s0 + $0xb8] sm:$0xff]   ;;  %v1754_v23 = vld [vmem:[%s2221_s0 + $0xc0] sm:$0xff]   ;;  %v1739_v24 = vld [vmem:[%s2221_s0 + $0x48] sm:$0xff]  }
   0x9   :  { %v1740_v25 = vld [vmem:[%s2221_s0 + $0x50] sm:$0xff]   ;;  %v1755_v26 = vld [vmem:[%s2221_s0 + $0xc8] sm:$0xff]   ;;  %v1741_v28 = vld [vmem:[%s2221_s0 + $0x58] sm:$0xff]  }
   0xa   :  { %v1756_v27 = vld [vmem:[%s2221_s0 + $0xd0] sm:$0xff]   ;;  %v1742_v29 = vld [vmem:[%s2221_s0 + $0x60] sm:$0xff]   ;;  %v1757_v30 = vld [vmem:[%s2221_s0 + $0xd8] sm:$0xff]  }
   0xb   :  { %1643 = vmatpush3.bf16.msra.mxu0 %v1727_v2  ;;  %1719 = vmatpush3.bf16.msra.mxu1 %v1727_v2  ;;  %v1758_v31 = vld [vmem:[%s2221_s0 + $0xe0] sm:$0xff]   ;;  %v1743_v32 = vld [vmem:[%s2221_s0 + $0x68] sm:$0xff]   ;;  %v1744_v33 = vld [vmem:[%s2221_s0 + $0x70] sm:$0xff]  }
   0xc   :  { %1644 = vmatprep.subr.bf16.mxu0 %v1728_v4  ;;  %1715 = vmatprep.subr.bf16.mxu1 %v1728_v4  ;;  %v1759_v34 = vld [vmem:[%s2221_s0 + $0xe8] sm:$0xff]   ;;  %v1760_v35 = vld [vmem:[%s2221_s0 + $0xf0] sm:$0xff]   ;;  %v1745_v36 = vld [vmem:[%s2221_s0 + $0x78] sm:$0xff]  }
   0xd   :  { %v1761_v37 = vld [vmem:[%s2221_s0 + $0xf8] sm:$0xff]  }
   0xf   :  { %1645 = vmatpush3.bf16.msra.mxu0 %v1728_v4  ;;  %1720 = vmatpush3.bf16.msra.mxu1 %v1728_v4 }
  0x10   :  { %1722 = vmatprep.subr.msk.bf16.mxu0 %vm377_vm1, %v1729_v5  ;;  %1723 = vmatprep.subr.msk.bf16.mxu1 %vm377_vm1, %v1729_v5 }
  0x13   :  { %1647 = vmatpush3.bf16.msra.mxu0 %v379_v6  ;;  %1721 = vmatpush3.bf16.msra.mxu1 %v379_v6 }
  0x16   :  { %1649 = vmatmul.mubr.msk.bf16.vlgmr.msra.gmra.mrb[0].mxu0 %vm280_vm0, %v1731_v7  ;;  %1681 = vmatmul.mubr.msk.bf16.vlgmr.msra.gmra.mrb[0].mxu1 %vm280_vm0, %v1747_v10 }
  0x17   :  { %1652 = vmatprep.mubr.msk.bf16.mxu0 %vm280_vm0, %v1732_v8  ;;  %1684 = vmatprep.mubr.msk.bf16.mxu1 %vm280_vm0, %v1748_v11 }
  0x1e   :  { %1653 = vmatmul.mubr.msk.bf16.gmra.mrb[4].mxu0 %vm280_vm0, %v1733_v12  ;;  %1685 = vmatmul.mubr.msk.bf16.gmra.mrb[4].mxu1 %vm280_vm0, %v1749_v14 }
  0x1f   :  { %1656 = vmatprep.mubr.msk.bf16.mxu0 %vm280_vm0, %v1734_v13  ;;  %1688 = vmatprep.mubr.msk.bf16.mxu1 %vm280_vm0, %v1750_v15 }
  0x26   :  { %1657 = vmatmul.mubr.msk.bf16.gmra.mrb[8].mxu0 %vm280_vm0, %v1735_v16  ;;  %1689 = vmatmul.mubr.msk.bf16.gmra.mrb[8].mxu1 %vm280_vm0, %v1751_v18 }
  0x27   :  { %1660 = vmatprep.mubr.msk.bf16.mxu0 %vm280_vm0, %v1736_v17  ;;  %1692 = vmatprep.mubr.msk.bf16.mxu1 %vm280_vm0, %v1752_v19 }
  0x2e   :  { %1661 = vmatmul.mubr.msk.bf16.gmra.mrb[12].mxu0 %vm280_vm0, %v1737_v20  ;;  %1693 = vmatmul.mubr.msk.bf16.gmra.mrb[12].mxu1 %vm280_vm0, %v1753_v22 }
  0x2f   :  { %1664 = vmatprep.mubr.msk.bf16.mxu0 %vm280_vm0, %v1738_v21  ;;  %1696 = vmatprep.mubr.msk.bf16.mxu1 %vm280_vm0, %v1754_v23 }
  0x36   :  { %1665 = vmatmul.mubr.msk.bf16.gmra.mrb[16].mxu0 %vm280_vm0, %v1739_v24  ;;  %1697 = vmatmul.mubr.msk.bf16.gmra.mrb[16].mxu1 %vm280_vm0, %v1755_v26 }
  0x37   :  { %1668 = vmatprep.mubr.msk.bf16.mxu0 %vm280_vm0, %v1740_v25  ;;  %1700 = vmatprep.mubr.msk.bf16.mxu1 %vm280_vm0, %v1756_v27 }
  0x3e   :  { %1669 = vmatmul.mubr.msk.bf16.gmra.mrb[20].mxu0 %vm280_vm0, %v1741_v28  ;;  %1701 = vmatmul.mubr.msk.bf16.gmra.mrb[20].mxu1 %vm280_vm0, %v1757_v30 }
  0x3f   :  { %1672 = vmatprep.mubr.msk.bf16.mxu0 %vm280_vm0, %v1742_v29  ;;  %1704 = vmatprep.mubr.msk.bf16.mxu1 %vm280_vm0, %v1758_v31 }
  0x46   :  { %1673 = vmatmul.mubr.msk.bf16.gmra.mrb[24].mxu0 %vm280_vm0, %v1743_v32  ;;  %1705 = vmatmul.mubr.msk.bf16.gmra.mrb[24].mxu1 %vm280_vm0, %v1759_v34 }
  0x47   :  { %1676 = vmatprep.mubr.msk.bf16.mxu0 %vm280_vm0, %v1744_v33  ;;  %1708 = vmatprep.mubr.msk.bf16.mxu1 %vm280_vm0, %v1760_v35 }
  0x4e   :  { %1677 = vmatmul.mubr.msk.bf16.gmra.mrb[28].mxu0 %vm280_vm0, %v1745_v36  ;;  %1709 = vmatmul.mubr.msk.bf16.gmra.mrb[28].mxu1 %vm280_vm0, %v1761_v37 }
  0xe9   :  { %v1650_v39 = vpop.f32.mrb[0].mxu0  ;;  %v1926_v42 = vpop.f32.mrb[0].mxu1 }
  0xea   :  { %v415_v40 = vpop.f32.mrb[1].mxu0  ;;  %v1928_v45 = vpop.f32.mrb[1].mxu1  ;;  %v1065_v53 = vmul.f32 %v1650_v39, %v1650_v39 }
  0xeb   :  { %v1651_v41 = vpop.f32.mrb[2].mxu0  ;;  %v1063_v46 = vmul.f32 %v415_v40, %v415_v40  ;;  %v1930_v50 = vpop.f32.mrb[2].mxu1 }
  0xec   :  { %v1418_v43 = vpack.c.bf16 %v1651_v41, %v1650_v39  ;;  %v418_v44 = vpop.f32.mrb[3].mxu0  ;;  %v1498_v51 = vpack.c.bf16 %v1930_v50, %v1926_v42  ;;  %v1937_v52 = vpop.f32.mrb[3].mxu1  ;;  %v1066_v57 = vmul.f32 %v1651_v41, %v1651_v41 }
  0xed   :  { %v1413_v47 = vpack.c.bf16 %v418_v44, %v415_v40  ;;  %v991_v48 = vadd.f32 %v418_v44, %v415_v40  ;;  %v1064_v49 = vmul.f32 %v418_v44, %v418_v44  ;;  %v1493_v56 = vpack.c.bf16 %v1937_v52, %v1928_v45 }
  0xee   :  { %1570 = vst [vmem:[%s2222_s2 + $0x8] sm:$0xff] %v1418_v43   ;;  %1586 = vst [vmem:[%s2222_s2 + $0x88] sm:$0xff] %v1498_v51  }
  0xef   :  { %1414 = vst [vmem:[%s2222_s2] sm:$0xff] %v1413_v47   ;;  %v992_v54 = vadd.f32 %v1650_v39, %v991_v48  ;;  %v1127_v55 = vadd.f32 %v1064_v49, %v1063_v46  ;;  %1585 = vst [vmem:[%s2222_s2 + $0x80] sm:$0xff] %v1493_v56  }
  0xf1   :  { %v1128_v58 = vadd.f32 %v1127_v55, %v1065_v53  ;;  %v1654_v59 = vpop.f32.mrb[4].mxu0  ;;  %v993_v60 = vadd.f32 %v1651_v41, %v992_v54  ;;  %v1950_v2 = vpop.f32.mrb[4].mxu1 }
  0xf2   :  { %v431_v61 = vpop.f32.mrb[5].mxu0  ;;  %v1952_v5 = vpop.f32.mrb[5].mxu1  ;;  %v1069_v13 = vmul.f32 %v1654_v59, %v1654_v59 }
  0xf3   :  { %v994_v62 = vadd.f32 %v993_v60, %v431_v61  ;;  %v1067_v63 = vmul.f32 %v431_v61, %v431_v61  ;;  %v1129_v0 = vadd.f32 %v1128_v58, %v1066_v57  ;;  %v1655_v1 = vpop.f32.mrb[6].mxu0  ;;  %v1954_v10 = vpop.f32.mrb[6].mxu1 }
  0xf4   :  { %v1428_v3 = vpack.c.bf16 %v1655_v1, %v1654_v59  ;;  %v434_v4 = vpop.f32.mrb[7].mxu0  ;;  %v1508_v11 = vpack.c.bf16 %v1954_v10, %v1950_v2  ;;  %v1961_v12 = vpop.f32.mrb[7].mxu1  ;;  %v1070_v17 = vmul.f32 %v1655_v1, %v1655_v1 }
  0xf5   :  { %v1130_v6 = vadd.f32 %v1129_v0, %v1067_v63  ;;  %v1423_v7 = vpack.c.bf16 %v434_v4, %v431_v61  ;;  %v995_v8 = vadd.f32 %v994_v62, %v434_v4  ;;  %v1068_v9 = vmul.f32 %v434_v4, %v434_v4 }
  0xf6   :  { %1572 = vst [vmem:[%s2222_s2 + $0x18] sm:$0xff] %v1428_v3   ;;  %v1503_v16 = vpack.c.bf16 %v1961_v12, %v1952_v5  ;;  %1588 = vst [vmem:[%s2222_s2 + $0x98] sm:$0xff] %v1508_v11  }
  0xf7   :  { %1571 = vst [vmem:[%s2222_s2 + $0x10] sm:$0xff] %v1423_v7   ;;  %v996_v14 = vadd.f32 %v1654_v59, %v995_v8  ;;  %v1131_v15 = vadd.f32 %v1130_v6, %v1068_v9 }
  0xf8   :  { %1587 = vst [vmem:[%s2222_s2 + $0x90] sm:$0xff] %v1503_v16  }
  0xf9   :  { %v1132_v18 = vadd.f32 %v1131_v15, %v1069_v13  ;;  %v1658_v19 = vpop.f32.mrb[8].mxu0  ;;  %v997_v20 = vadd.f32 %v1655_v1, %v996_v14  ;;  %v1974_v26 = vpop.f32.mrb[8].mxu1 }
  0xfa   :  { %v447_v21 = vpop.f32.mrb[9].mxu0  ;;  %v1976_v29 = vpop.f32.mrb[9].mxu1  ;;  %v1073_v37 = vmul.f32 %v1658_v19, %v1658_v19 }
  0xfb   :  { %v998_v22 = vadd.f32 %v997_v20, %v447_v21  ;;  %v1071_v23 = vmul.f32 %v447_v21, %v447_v21  ;;  %v1133_v24 = vadd.f32 %v1132_v18, %v1070_v17  ;;  %v1659_v25 = vpop.f32.mrb[10].mxu0  ;;  %v1978_v34 = vpop.f32.mrb[10].mxu1 }
  0xfc   :  { %v1438_v27 = vpack.c.bf16 %v1659_v25, %v1658_v19  ;;  %v450_v28 = vpop.f32.mrb[11].mxu0  ;;  %v1518_v35 = vpack.c.bf16 %v1978_v34, %v1974_v26  ;;  %v1985_v36 = vpop.f32.mrb[11].mxu1  ;;  %v1074_v41 = vmul.f32 %v1659_v25, %v1659_v25 }
  0xfd   :  { %v1134_v30 = vadd.f32 %v1133_v24, %v1071_v23  ;;  %v1433_v31 = vpack.c.bf16 %v450_v28, %v447_v21  ;;  %v999_v32 = vadd.f32 %v998_v22, %v450_v28  ;;  %v1072_v33 = vmul.f32 %v450_v28, %v450_v28 }
  0xfe   :  { %1574 = vst [vmem:[%s2222_s2 + $0x28] sm:$0xff] %v1438_v27   ;;  %v1513_v40 = vpack.c.bf16 %v1985_v36, %v1976_v29  ;;  %1590 = vst [vmem:[%s2222_s2 + $0xa8] sm:$0xff] %v1518_v35  }
  0xff   :  { %1573 = vst [vmem:[%s2222_s2 + $0x20] sm:$0xff] %v1433_v31   ;;  %v1000_v38 = vadd.f32 %v1658_v19, %v999_v32  ;;  %v1135_v39 = vadd.f32 %v1134_v30, %v1072_v33 }
 0x100   :  { %1589 = vst [vmem:[%s2222_s2 + $0xa0] sm:$0xff] %v1513_v40  }
 0x101   :  { %v1136_v43 = vadd.f32 %v1135_v39, %v1073_v37  ;;  %v1662_v44 = vpop.f32.mrb[12].mxu0  ;;  %v1001_v46 = vadd.f32 %v1659_v25, %v1000_v38  ;;  %v1998_v54 = vpop.f32.mrb[12].mxu1 }
 0x102   :  { %v463_v47 = vpop.f32.mrb[13].mxu0  ;;  %v2000_v57 = vpop.f32.mrb[13].mxu1  ;;  %v1077_v1 = vmul.f32 %v1662_v44, %v1662_v44 }
 0x103   :  { %v1002_v48 = vadd.f32 %v1001_v46, %v463_v47  ;;  %v1075_v49 = vmul.f32 %v463_v47, %v463_v47  ;;  %v1137_v51 = vadd.f32 %v1136_v43, %v1074_v41  ;;  %v1663_v53 = vpop.f32.mrb[14].mxu0  ;;  %v2002_v62 = vpop.f32.mrb[14].mxu1 }
 0x104   :  { %v1448_v55 = vpack.c.bf16 %v1663_v53, %v1662_v44  ;;  %v466_v56 = vpop.f32.mrb[15].mxu0  ;;  %v1528_v63 = vpack.c.bf16 %v2002_v62, %v1998_v54  ;;  %v2009_v0 = vpop.f32.mrb[15].mxu1  ;;  %v1078_v7 = vmul.f32 %v1663_v53, %v1663_v53 }
 0x105   :  { %v1138_v58 = vadd.f32 %v1137_v51, %v1075_v49  ;;  %v1443_v59 = vpack.c.bf16 %v466_v56, %v463_v47  ;;  %v1003_v60 = vadd.f32 %v1002_v48, %v466_v56  ;;  %v1076_v61 = vmul.f32 %v466_v56, %v466_v56 }
 0x106   :  { %1576 = vst [vmem:[%s2222_s2 + $0x38] sm:$0xff] %v1448_v55   ;;  %v1523_v6 = vpack.c.bf16 %v2009_v0, %v2000_v57  ;;  %1592 = vst [vmem:[%s2222_s2 + $0xb8] sm:$0xff] %v1528_v63  }
 0x107   :  { %1575 = vst [vmem:[%s2222_s2 + $0x30] sm:$0xff] %v1443_v59   ;;  %v1004_v3 = vadd.f32 %v1662_v44, %v1003_v60  ;;  %v1139_v4 = vadd.f32 %v1138_v58, %v1076_v61 }
 0x108   :  { %1591 = vst [vmem:[%s2222_s2 + $0xb0] sm:$0xff] %v1523_v6  }
 0x109   :  { %v1140_v8 = vadd.f32 %v1139_v4, %v1077_v1  ;;  %v1666_v9 = vpop.f32.mrb[16].mxu0  ;;  %v1005_v11 = vadd.f32 %v1663_v53, %v1004_v3  ;;  %v2022_v18 = vpop.f32.mrb[16].mxu1 }
 0x10a   :  { %v479_v13 = vpop.f32.mrb[17].mxu0  ;;  %v2024_v21 = vpop.f32.mrb[17].mxu1  ;;  %v1081_v31 = vmul.f32 %v1666_v9, %v1666_v9 }
 0x10b   :  { %v1006_v14 = vadd.f32 %v1005_v11, %v479_v13  ;;  %v1079_v15 = vmul.f32 %v479_v13, %v479_v13  ;;  %v1141_v16 = vadd.f32 %v1140_v8, %v1078_v7  ;;  %v1667_v17 = vpop.f32.mrb[18].mxu0  ;;  %v2026_v27 = vpop.f32.mrb[18].mxu1 }
 0x10c   :  { %v1458_v19 = vpack.c.bf16 %v1667_v17, %v1666_v9  ;;  %v482_v20 = vpop.f32.mrb[19].mxu0  ;;  %v1538_v28 = vpack.c.bf16 %v2026_v27, %v2022_v18  ;;  %v2033_v30 = vpop.f32.mrb[19].mxu1  ;;  %v1082_v37 = vmul.f32 %v1667_v17, %v1667_v17 }
 0x10d   :  { %v1142_v22 = vadd.f32 %v1141_v16, %v1079_v15  ;;  %v1453_v23 = vpack.c.bf16 %v482_v20, %v479_v13  ;;  %v1007_v24 = vadd.f32 %v1006_v14, %v482_v20  ;;  %v1080_v25 = vmul.f32 %v482_v20, %v482_v20 }
 0x10e   :  { %1578 = vst [vmem:[%s2222_s2 + $0x48] sm:$0xff] %v1458_v19   ;;  %v1533_v35 = vpack.c.bf16 %v2033_v30, %v2024_v21  ;;  %1594 = vst [vmem:[%s2222_s2 + $0xc8] sm:$0xff] %v1538_v28  }
 0x10f   :  { %1577 = vst [vmem:[%s2222_s2 + $0x40] sm:$0xff] %v1453_v23   ;;  %v1008_v32 = vadd.f32 %v1666_v9, %v1007_v24  ;;  %v1143_v33 = vadd.f32 %v1142_v22, %v1080_v25 }
 0x110   :  { %1593 = vst [vmem:[%s2222_s2 + $0xc0] sm:$0xff] %v1533_v35  }
 0x111   :  { %v1144_v38 = vadd.f32 %v1143_v33, %v1081_v31  ;;  %v1670_v39 = vpop.f32.mrb[20].mxu0  ;;  %v1009_v40 = vadd.f32 %v1667_v17, %v1008_v32  ;;  %v2046_v48 = vpop.f32.mrb[20].mxu1 }
 0x112   :  { %v495_v41 = vpop.f32.mrb[21].mxu0  ;;  %v2048_v53 = vpop.f32.mrb[21].mxu1  ;;  %v1085_v1 = vmul.f32 %v1670_v39, %v1670_v39 }
 0x113   :  { %v1010_v43 = vadd.f32 %v1009_v40, %v495_v41  ;;  %v1083_v44 = vmul.f32 %v495_v41, %v495_v41  ;;  %v1145_v46 = vadd.f32 %v1144_v38, %v1082_v37  ;;  %v1671_v47 = vpop.f32.mrb[22].mxu0  ;;  %v2050_v60 = vpop.f32.mrb[22].mxu1 }
 0x114   :  { %v1468_v49 = vpack.c.bf16 %v1671_v47, %v1670_v39  ;;  %v498_v51 = vpop.f32.mrb[23].mxu0  ;;  %v1548_v61 = vpack.c.bf16 %v2050_v60, %v2046_v48  ;;  %v2057_v63 = vpop.f32.mrb[23].mxu1  ;;  %v1086_v7 = vmul.f32 %v1671_v47, %v1671_v47 }
 0x115   :  { %v1146_v55 = vadd.f32 %v1145_v46, %v1083_v44  ;;  %v1463_v56 = vpack.c.bf16 %v498_v51, %v495_v41  ;;  %v1011_v58 = vadd.f32 %v1010_v43, %v498_v51  ;;  %v1084_v59 = vmul.f32 %v498_v51, %v498_v51 }
 0x116   :  { %1580 = vst [vmem:[%s2222_s2 + $0x58] sm:$0xff] %v1468_v49   ;;  %v1543_v6 = vpack.c.bf16 %v2057_v63, %v2048_v53  ;;  %1596 = vst [vmem:[%s2222_s2 + $0xd8] sm:$0xff] %v1548_v61  }
 0x117   :  { %1579 = vst [vmem:[%s2222_s2 + $0x50] sm:$0xff] %v1463_v56   ;;  %v1012_v3 = vadd.f32 %v1670_v39, %v1011_v58  ;;  %v1147_v4 = vadd.f32 %v1146_v55, %v1084_v59 }
 0x118   :  { %1595 = vst [vmem:[%s2222_s2 + $0xd0] sm:$0xff] %v1543_v6  }
 0x119   :  { %v1148_v8 = vadd.f32 %v1147_v4, %v1085_v1  ;;  %v1674_v9 = vpop.f32.mrb[24].mxu0  ;;  %v1013_v11 = vadd.f32 %v1671_v47, %v1012_v3  ;;  %v2070_v19 = vpop.f32.mrb[24].mxu1 }
 0x11a   :  { %v511_v13 = vpop.f32.mrb[25].mxu0  ;;  %v2072_v23 = vpop.f32.mrb[25].mxu1  ;;  %v1089_v37 = vmul.f32 %v1674_v9, %v1674_v9 }
 0x11b   :  { %v1014_v14 = vadd.f32 %v1013_v11, %v511_v13  ;;  %v1087_v15 = vmul.f32 %v511_v13, %v511_v13  ;;  %v1149_v16 = vadd.f32 %v1148_v8, %v1086_v7  ;;  %v1675_v17 = vpop.f32.mrb[26].mxu0  ;;  %v2074_v32 = vpop.f32.mrb[26].mxu1 }
 0x11c   :  { %v1478_v20 = vpack.c.bf16 %v1675_v17, %v1674_v9  ;;  %v514_v22 = vpop.f32.mrb[27].mxu0  ;;  %v1558_v33 = vpack.c.bf16 %v2074_v32, %v2070_v19  ;;  %v2081_v35 = vpop.f32.mrb[27].mxu1  ;;  %v1090_v41 = vmul.f32 %v1675_v17, %v1675_v17 }
 0x11d   :  { %v1150_v24 = vadd.f32 %v1149_v16, %v1087_v15  ;;  %v1473_v25 = vpack.c.bf16 %v514_v22, %v511_v13  ;;  %v1015_v28 = vadd.f32 %v1014_v14, %v514_v22  ;;  %v1088_v31 = vmul.f32 %v514_v22, %v514_v22 }
 0x11e   :  { %1582 = vst [vmem:[%s2222_s2 + $0x68] sm:$0xff] %v1478_v20   ;;  %v1553_v40 = vpack.c.bf16 %v2081_v35, %v2072_v23  ;;  %1598 = vst [vmem:[%s2222_s2 + $0xe8] sm:$0xff] %v1558_v33  }
 0x11f   :  { %1581 = vst [vmem:[%s2222_s2 + $0x60] sm:$0xff] %v1473_v25   ;;  %v1016_v38 = vadd.f32 %v1674_v9, %v1015_v28  ;;  %v1151_v39 = vadd.f32 %v1150_v24, %v1088_v31  ;;  %v1095_v24 = vmul.f32 %v1928_v45, %v1928_v45 }
 0x120   :  { %1597 = vst [vmem:[%s2222_s2 + $0xe0] sm:$0xff] %v1553_v40  }
 0x121   :  { %v1152_v43 = vadd.f32 %v1151_v39, %v1089_v37  ;;  %v1678_v44 = vpop.f32.mrb[28].mxu0  ;;  %v1017_v46 = vadd.f32 %v1675_v17, %v1016_v38  ;;  %v2094_v58 = vpop.f32.mrb[28].mxu1  ;;  %v1096_v37 = vmul.f32 %v1937_v52, %v1937_v52  ;;  %v1097_v38 = vmul.f32 %v1926_v42, %v1926_v42 }
 0x122   :  { %v527_v47 = vpop.f32.mrb[29].mxu0  ;;  %v2096_v1 = vpop.f32.mrb[29].mxu1  ;;  %v1093_v13 = vmul.f32 %v1678_v44, %v1678_v44 }
 0x123   :  { %v1018_v49 = vadd.f32 %v1017_v46, %v527_v47  ;;  %v1091_v51 = vmul.f32 %v527_v47, %v527_v47  ;;  %v1153_v55 = vadd.f32 %v1152_v43, %v1090_v41  ;;  %v1679_v56 = vpop.f32.mrb[30].mxu0  ;;  %v2098_v8 = vpop.f32.mrb[30].mxu1  ;;  %v1098_v41 = vmul.f32 %v1930_v50, %v1930_v50 }
 0x124   :  { %v1488_v59 = vpack.c.bf16 %v1679_v56, %v1678_v44  ;;  %v530_v61 = vpop.f32.mrb[31].mxu0  ;;  %v1568_v9 = vpack.c.bf16 %v2098_v8, %v2094_v58  ;;  %v2105_v11 = vpop.f32.mrb[31].mxu1  ;;  %v1094_v17 = vmul.f32 %v1679_v56, %v1679_v56 }
 0x125   :  { %v1154_v3 = vadd.f32 %v1153_v55, %v1091_v51  ;;  %v1483_v4 = vpack.c.bf16 %v530_v61, %v527_v47  ;;  %v1019_v6 = vadd.f32 %v1018_v49, %v530_v61  ;;  %v1092_v7 = vmul.f32 %v530_v61, %v530_v61 }
 0x126   :  { %1584 = vst [vmem:[%s2222_s2 + $0x78] sm:$0xff] %v1488_v59   ;;  %v1563_v16 = vpack.c.bf16 %v2105_v11, %v2096_v1  ;;  %1600 = vst [vmem:[%s2222_s2 + $0xf8] sm:$0xff] %v1568_v9   ;;  %v1100_v51 = vmul.f32 %v1961_v12, %v1961_v12 }
 0x127   :  { %1583 = vst [vmem:[%s2222_s2 + $0x70] sm:$0xff] %v1483_v4   ;;  %v1020_v14 = vadd.f32 %v1678_v44, %v1019_v6  ;;  %v1155_v15 = vadd.f32 %v1154_v3, %v1092_v7  ;;  %v1104_v7 = vmul.f32 %v1985_v36, %v1985_v36 }
 0x128   :  { %1599 = vst [vmem:[%s2222_s2 + $0xf0] sm:$0xff] %v1563_v16  }
 0x129   :  { %v1156_v20 = vadd.f32 %v1155_v15, %v1093_v13  ;;  %v1021_v22 = vadd.f32 %v1679_v56, %v1020_v14 }
 0x12b   :  { %v1022_v25 = vadd.f32 %v1021_v22, %v1928_v45  ;;  %v1157_v28 = vadd.f32 %v1156_v20, %v1094_v17  ;;  %v1099_v45 = vmul.f32 %v1952_v5, %v1952_v5  ;;  %v1108_v22 = vmul.f32 %v2009_v0, %v2009_v0 }
 0x12d   :  { %v1158_v31 = vadd.f32 %v1157_v28, %v1095_v24  ;;  %v1023_v33 = vadd.f32 %v1022_v25, %v1937_v52 }
 0x12f   :  { %v1024_v39 = vadd.f32 %v1926_v42, %v1023_v33  ;;  %v1159_v40 = vadd.f32 %v1158_v31, %v1096_v37  ;;  %v1101_v42 = vmul.f32 %v1950_v2, %v1950_v2 }
 0x131   :  { %v1160_v43 = vadd.f32 %v1159_v40, %v1097_v38  ;;  %v1025_v44 = vadd.f32 %v1930_v50, %v1024_v39  ;;  %v1102_v50 = vmul.f32 %v1954_v10, %v1954_v10  ;;  %v1112_v39 = vmul.f32 %v2033_v30, %v2033_v30 }
 0x133   :  { %v1026_v46 = vadd.f32 %v1025_v44, %v1952_v5  ;;  %v1161_v47 = vadd.f32 %v1160_v43, %v1098_v41  ;;  %v1103_v5 = vmul.f32 %v1976_v29, %v1976_v29 }
 0x135   :  { %v1162_v49 = vadd.f32 %v1161_v47, %v1099_v45  ;;  %v1027_v52 = vadd.f32 %v1026_v46, %v1961_v12 }
 0x137   :  { %v1028_v55 = vadd.f32 %v1950_v2, %v1027_v52  ;;  %v1163_v56 = vadd.f32 %v1162_v49, %v1100_v51  ;;  %v1105_v2 = vmul.f32 %v1974_v26, %v1974_v26  ;;  %v1116_v49 = vmul.f32 %v2057_v63, %v2057_v63 }
 0x139   :  { %v1164_v59 = vadd.f32 %v1163_v56, %v1101_v42  ;;  %v1029_v61 = vadd.f32 %v1954_v10, %v1028_v55  ;;  %v1106_v10 = vmul.f32 %v1978_v34, %v1978_v34 }
 0x13b   :  { %v1030_v3 = vadd.f32 %v1029_v61, %v1976_v29  ;;  %v1165_v4 = vadd.f32 %v1164_v59, %v1102_v50  ;;  %v1107_v29 = vmul.f32 %v2000_v57, %v2000_v57  ;;  %v1120_v61 = vmul.f32 %v2081_v35, %v2081_v35 }
 0x13d   :  { %v1166_v6 = vadd.f32 %v1165_v4, %v1103_v5  ;;  %v1031_v12 = vadd.f32 %v1030_v3, %v1985_v36 }
 0x13f   :  { %v1032_v9 = vadd.f32 %v1974_v26, %v1031_v12  ;;  %v1167_v13 = vadd.f32 %v1166_v6, %v1104_v7  ;;  %v1109_v26 = vmul.f32 %v1998_v54, %v1998_v54 }
 0x141   :  { %v1168_v14 = vadd.f32 %v1167_v13, %v1105_v2  ;;  %v1033_v15 = vadd.f32 %v1978_v34, %v1032_v9  ;;  %v1110_v34 = vmul.f32 %v2002_v62, %v2002_v62  ;;  %v1124_v9 = vmul.f32 %v2105_v11, %v2105_v11 }
 0x143   :  { %v1034_v16 = vadd.f32 %v1033_v15, %v2000_v57  ;;  %v1169_v17 = vadd.f32 %v1168_v14, %v1106_v10  ;;  %v1111_v57 = vmul.f32 %v2024_v21, %v2024_v21 }
 0x145   :  { %v1170_v20 = vadd.f32 %v1169_v17, %v1107_v29  ;;  %v1035_v36 = vadd.f32 %v1034_v16, %v2009_v0 }
 0x147   :  { %v1036_v24 = vadd.f32 %v1998_v54, %v1035_v36  ;;  %v1171_v25 = vadd.f32 %v1170_v20, %v1108_v22  ;;  %v1113_v54 = vmul.f32 %v2022_v18, %v2022_v18 }
 0x149   :  { %v1172_v28 = vadd.f32 %v1171_v25, %v1109_v26  ;;  %v1037_v31 = vadd.f32 %v2002_v62, %v1036_v24  ;;  %v1114_v62 = vmul.f32 %v2026_v27, %v2026_v27  ;;  %v990_v25 = vld [vmem:[#allocation2] sm:$0x1] }
 0x14b   :  { %v1038_v33 = vadd.f32 %v1037_v31, %v2024_v21  ;;  %v1173_v37 = vadd.f32 %v1172_v28, %v1110_v34  ;;  %v1115_v21 = vmul.f32 %v2048_v53, %v2048_v53  ;;  %v1062_v28 = vld [vmem:[#allocation3] sm:$0x1] }
 0x14d   :  { %v1174_v38 = vadd.f32 %v1173_v37, %v1111_v57  ;;  %v1039_v0 = vadd.f32 %v1038_v33, %v2033_v30 }
 0x14f   :  { %v1040_v40 = vadd.f32 %v2022_v18, %v1039_v0  ;;  %v1175_v41 = vadd.f32 %v1174_v38, %v1112_v39  ;;  %v1117_v18 = vmul.f32 %v2046_v48, %v2046_v48 }
 0x151   :  { %v1176_v43 = vadd.f32 %v1175_v41, %v1113_v54  ;;  %v1041_v44 = vadd.f32 %v2026_v27, %v1040_v40  ;;  %v1118_v27 = vmul.f32 %v2050_v60, %v2050_v60 }
 0x153   :  { %v1042_v45 = vadd.f32 %v1041_v44, %v2048_v53  ;;  %v1177_v46 = vadd.f32 %v1176_v43, %v1114_v62  ;;  %v1119_v53 = vmul.f32 %v2072_v23, %v2072_v23 }
 0x155   :  { %v1178_v47 = vadd.f32 %v1177_v46, %v1115_v21  ;;  %v1043_v30 = vadd.f32 %v1042_v45, %v2057_v63 }
 0x157   :  { %v1044_v52 = vadd.f32 %v2046_v48, %v1043_v30  ;;  %v1179_v51 = vadd.f32 %v1178_v47, %v1116_v49  ;;  %v1121_v48 = vmul.f32 %v2070_v19, %v2070_v19 }
 0x159   :  { %v1180_v42 = vadd.f32 %v1179_v51, %v1117_v18  ;;  %v1045_v55 = vadd.f32 %v2050_v60, %v1044_v52  ;;  %v1122_v60 = vmul.f32 %v2074_v32, %v2074_v32 }
 0x15b   :  { %v1046_v56 = vadd.f32 %v1045_v55, %v2072_v23  ;;  %v1181_v50 = vadd.f32 %v1180_v42, %v1118_v27  ;;  %v1123_v23 = vmul.f32 %v2096_v1, %v2096_v1 }
 0x15d   :  { %v1182_v59 = vadd.f32 %v1181_v50, %v1119_v53  ;;  %v1047_v63 = vadd.f32 %v1046_v56, %v2081_v35 }
 0x15f   :  { %v1048_v5 = vadd.f32 %v2070_v19, %v1047_v63  ;;  %v1183_v3 = vadd.f32 %v1182_v59, %v1120_v61  ;;  %v1125_v19 = vmul.f32 %v2094_v58, %v2094_v58 }
 0x161   :  { %v1184_v4 = vadd.f32 %v1183_v3, %v1121_v48  ;;  %v1049_v6 = vadd.f32 %v2074_v32, %v1048_v5  ;;  %v1126_v32 = vmul.f32 %v2098_v8, %v2098_v8 }
 0x163   :  { %v1050_v12 = vadd.f32 %v1049_v6, %v2096_v1  ;;  %v1185_v7 = vadd.f32 %v1184_v4, %v1122_v60 }
 0x165   :  { %v1186_v2 = vadd.f32 %v1185_v7, %v1123_v23  ;;  %v1051_v35 = vadd.f32 %v1050_v12, %v2105_v11 }
 0x167   :  { %v1052_v13 = vadd.f32 %v2094_v58, %v1051_v35  ;;  %v1187_v10 = vadd.f32 %v1186_v2, %v1124_v9 }
 0x169   :  { %v1053_v14 = vadd.f32 %v2098_v8, %v1052_v13  ;;  %v1188_v15 = vadd.f32 %v1187_v10, %v1125_v19 }
 0x16b   :  { %v1054_v1 = vrot.slane %v1053_v14, 4  ;;  %v1189_v29 = vadd.f32 %v1188_v15, %v1126_v32 }
 0x16d   :  { %v1055_v16 = vadd.f32 %v1054_v1, %v1053_v14  ;;  %v1190_v17 = vrot.slane %v1189_v29, 4 }
 0x16f   :  { %v1056_v20 = vrot.slane %v1055_v16, 2  ;;  %v1191_v36 = vadd.f32 %v1190_v17, %v1189_v29 }
 0x171   :  { %v1057_v22 = vadd.f32 %v1056_v20, %v1055_v16  ;;  %v1192_v11 = vrot.slane %v1191_v36, 2 }
 0x173   :  { %v1058_v26 = vrot.slane %v1057_v22, 1  ;;  %v1193_v24 = vadd.f32 %v1192_v11, %v1191_v36 }
 0x175   :  { %v1059_v34 = vadd.f32 %v1058_v26, %v1057_v22  ;;  %v1194_v58 = vrot.slane %v1193_v24, 1 }
 0x177   :  { %v1060_v31 = vadd.f32 %v1059_v34, %v990_v25  ;;  %v1195_v57 = vadd.f32 %v1194_v58, %v1193_v24 }
 0x179   :  { %1061 = vst [vmem:[#allocation2] sm:$0x1] %v1060_v31  ;;  %v1196_v33 = vadd.f32 %v1195_v57, %v1062_v28 }
 0x17b   :  { %1197 = vst [vmem:[#allocation3] sm:$0x1] %v1196_v33 }
 0x180   :  { %v1201_v8 = vld [vmem:[#allocation2] sm:$0x1] }
 0x181   :  { %1202 = vst [vmem:[%s2223_s3] sm:$0x1] %v1201_v8 }
 0x182   :  { %v1203_v37 = vld [vmem:[#allocation3] sm:$0x1] }
 0x183   :  { %1204 = vst [vmem:[%s2223_s3 + $0x1] sm:$0x1] %v1203_v37 }

// kernel: residual_forward.5
= control target key start
LH: loop header
LB: loop body
LE: loop exit
PB: predicated region body
PF: predicated region fallthrough
CT: control target
= control target key end

     0   :  { %vm899_vm0 = vcmask 1043456   ;;  %vm802_vm1 = vcmask 64512   ;;  %s2871_s6 = inlined_call_operand.vmem [shape: bf16[8,128], index: 6, kind: input, shape index: {}]   ;;  %s2872_s5 = inlined_call_operand.vmem [shape: bf16[512,8], index: 5, kind: input, shape index: {}]   ;;  %s2873_s0 = inlined_call_operand.vmem [shape: bf16[512,128], index: 0, kind: input, shape index: {}]   ;;  %s2874_s1 = inlined_call_operand.vmem [shape: f32[1,128], index: 1, kind: input, shape index: {}]   ;;  %s2875_s2 = inlined_call_operand.vmem [shape: f32[1,128], index: 2, kind: input, shape index: {}]   ;;  %s2876_s3 = inlined_call_operand.vmem [shape: f32[1,128], index: 3, kind: input, shape index: {}]   ;;  %s2877_s4 = inlined_call_operand.vmem [shape: f32[1,128], index: 4, kind: input, shape index: {}]   ;;  %s2878_s7 = inlined_call_operand.vmem [shape: f32[1,128], index: 7, kind: input, shape index: {}]   ;;  %s2879_s8 = inlined_call_operand.vmem [shape: f32[512,128], index: 8, kind: output, shape index: {}]  }
   0x1   :  { %v634_v0 = vld [vmem:[%s2871_s6] sm:$0xf]  ;;  %v1657_v4 = vld [vmem:[%s2872_s5 + $0x8] sm:$0xff]   ;;  %v1659_v6 = vld [vmem:[%s2872_s5 + $0x10] sm:$0xff]  }
   0x2   :  { %1653 = vmatprep.subr.msk.bf16.mxu0 %vm899_vm0, %v634_v0  ;;  %1654 = vmatprep.subr.msk.bf16.mxu1 %vm899_vm0, %v634_v0  ;;  %v901_v1 = vsel %vm899_vm0, %v634_v0, 0  ;;  %v1655_v2 = vld [vmem:[%s2872_s5] sm:$0xff]   ;;  %v1658_v5 = vld [vmem:[%s2872_s5 + $0x88] sm:$0xff]   ;;  %v1660_v7 = vld [vmem:[%s2872_s5 + $0x90] sm:$0xff]  }
   0x3   :  { %1586 = vmatpush3.bf16.msra.mxu0 %v901_v1  ;;  %1652 = vmatpush3.bf16.msra.mxu1 %v901_v1  ;;  %v1656_v3 = vld [vmem:[%s2872_s5 + $0x80] sm:$0xff]   ;;  %v1661_v8 = vld [vmem:[%s2872_s5 + $0x18] sm:$0xff]   ;;  %v1665_v12 = vld [vmem:[%s2872_s5 + $0x28] sm:$0xff]  }
   0x4   :  { %1587 = vmatprep.mubr.msk.bf16.mxu0 %vm802_vm1, %v1655_v2  ;;  %1619 = vmatprep.mubr.msk.bf16.mxu1 %vm802_vm1, %v1656_v3  ;;  %v1662_v9 = vld [vmem:[%s2872_s5 + $0x98] sm:$0xff]   ;;  %v1663_v10 = vld [vmem:[%s2872_s5 + $0x20] sm:$0xff]   ;;  %v1666_v13 = vld [vmem:[%s2872_s5 + $0xa8] sm:$0xff]  }
   0x5   :  { %v1664_v11 = vld [vmem:[%s2872_s5 + $0xa0] sm:$0xff]   ;;  %v1667_v14 = vld [vmem:[%s2872_s5 + $0x30] sm:$0xff]   ;;  %v1669_v16 = vld [vmem:[%s2872_s5 + $0x38] sm:$0xff]  }
   0x6   :  { %1588 = vmatmul.mubr.msk.bf16.vlgmr.msra.gmra.mrb[0].mxu0 %vm802_vm1, %v1657_v4  ;;  %1620 = vmatmul.mubr.msk.bf16.vlgmr.msra.gmra.mrb[0].mxu1 %vm802_vm1, %v1658_v5  ;;  %v1668_v15 = vld [vmem:[%s2872_s5 + $0xb0] sm:$0xff]   ;;  %v1670_v17 = vld [vmem:[%s2872_s5 + $0xb8] sm:$0xff]   ;;  %v1671_v18 = vld [vmem:[%s2872_s5 + $0x40] sm:$0xff]  }
   0x7   :  { %1591 = vmatprep.mubr.msk.bf16.mxu0 %vm802_vm1, %v1659_v6  ;;  %1623 = vmatprep.mubr.msk.bf16.mxu1 %vm802_vm1, %v1660_v7  ;;  %v1672_v19 = vld [vmem:[%s2872_s5 + $0xc0] sm:$0xff]   ;;  %v1673_v20 = vld [vmem:[%s2872_s5 + $0x48] sm:$0xff]   ;;  %v1675_v22 = vld [vmem:[%s2872_s5 + $0x50] sm:$0xff]  }
   0x8   :  { %v1674_v21 = vld [vmem:[%s2872_s5 + $0xc8] sm:$0xff]   ;;  %v1676_v23 = vld [vmem:[%s2872_s5 + $0xd0] sm:$0xff]   ;;  %v1677_v24 = vld [vmem:[%s2872_s5 + $0x58] sm:$0xff]  }
   0x9   :  { %v1678_v25 = vld [vmem:[%s2872_s5 + $0xd8] sm:$0xff]   ;;  %v1679_v26 = vld [vmem:[%s2872_s5 + $0x60] sm:$0xff]   ;;  %v1681_v28 = vld [vmem:[%s2872_s5 + $0x68] sm:$0xff]  }
   0xa   :  { %v1680_v27 = vld [vmem:[%s2872_s5 + $0xe0] sm:$0xff]   ;;  %v1682_v29 = vld [vmem:[%s2872_s5 + $0xe8] sm:$0xff]   ;;  %v1683_v30 = vld [vmem:[%s2872_s5 + $0x70] sm:$0xff]  }
   0xb   :  { %v1684_v31 = vld [vmem:[%s2872_s5 + $0xf0] sm:$0xff]   ;;  %v1685_v32 = vld [vmem:[%s2872_s5 + $0x78] sm:$0xff]   ;;  %v1521_v34 = vld [vmem:[%s2873_s0 + $0x8] sm:$0xff]  }
   0xc   :  { %v1686_v33 = vld [vmem:[%s2872_s5 + $0xf8] sm:$0xff]   ;;  %v1399_v35 = vunpack.c.l.bf16 %v1521_v34  ;;  %v1873_v36 = vld [vmem:[%s2874_s1] ss:$0 sm:$0xff]  ;;  %v1537_v39 = vld [vmem:[%s2873_s0 + $0x88] sm:$0xff]   ;;  %v1400_v49 = vunpack.c.h.bf16 %v1521_v34 }
   0xd   :  { %v1879_v38 = vld [vmem:[%s2875_s2] ss:$0 sm:$0xff]  ;;  %v1463_v43 = vunpack.c.l.bf16 %v1537_v39  ;;  %v1523_v46 = vld [vmem:[%s2873_s0 + $0x18] sm:$0xff]   ;;  %v1464_v50 = vunpack.c.h.bf16 %v1537_v39  ;;  %v1522_v59 = vld [vmem:[%s2873_s0 + $0x10] sm:$0xff]  }
   0xe   :  { %1592 = vmatmul.mubr.msk.bf16.gmra.mrb[4].mxu0 %vm802_vm1, %v1661_v8  ;;  %1624 = vmatmul.mubr.msk.bf16.gmra.mrb[4].mxu1 %vm802_vm1, %v1662_v9  ;;  %v167_v37 = vmul.f32 %v1399_v35, %v1873_v36  ;;  %v1394_v40 = vld [vmem:[%s2873_s0] sm:$0xff]   ;;  %v1539_v51 = vld [vmem:[%s2873_s0 + $0x98] sm:$0xff]   ;;  %v1407_v56 = vunpack.c.l.bf16 %v1523_v46  ;;  %v1538_v60 = vld [vmem:[%s2873_s0 + $0x90] sm:$0xff]   ;;  %v168_v63 = vmul.f32 %v1400_v49, %v1873_v36  ;;  %v1403_v7 = vunpack.c.l.bf16 %v1522_v59 }
   0xf   :  { %1595 = vmatprep.mubr.msk.bf16.mxu0 %vm802_vm1, %v1663_v10  ;;  %1627 = vmatprep.mubr.msk.bf16.mxu1 %vm802_vm1, %v1664_v11  ;;  %v1536_v41 = vld [vmem:[%s2873_s0 + $0x80] sm:$0xff]   ;;  %v1395_v44 = vunpack.c.l.bf16 %v1394_v40  ;;  %v199_v48 = vmul.f32 %v1463_v43, %v1873_v36  ;;  %v1396_v54 = vunpack.c.h.bf16 %v1394_v40  ;;  %v1471_v58 = vunpack.c.l.bf16 %v1539_v51 }
  0x10   :  { %v238_v42 = vadd.f32 %v1879_v38, %v167_v37  ;;  %v1459_v45 = vunpack.c.l.bf16 %v1536_v41  ;;  %v1901_v52 = vld [vmem:[%s2876_s3] ss:$0 sm:$0xff]  ;;  %v1460_v55 = vunpack.c.h.bf16 %v1536_v41  ;;  %v200_v0 = vmul.f32 %v1464_v50, %v1873_v36  ;;  %v1945_v37 = vld [vmem:[%s2873_s0 + $0x28] sm:$0xff]  }
  0x11   :  { %v165_v53 = vmul.f32 %v1395_v44, %v1873_v36  ;;  %v270_v62 = vadd.f32 %v1879_v38, %v199_v48  ;;  %v1918_v1 = vld [vmem:[%s2877_s4] ss:$0 sm:$0xff]  ;;  %v166_v3 = vmul.f32 %v1396_v54, %v1873_v36  ;;  %v171_v5 = vmul.f32 %v1407_v56, %v1873_v36 }
  0x12   :  { %v302_v47 = vmax.f32 %v238_v42, 0.0  ;;  %v197_v57 = vmul.f32 %v1459_v45, %v1873_v36  ;;  %v198_v4 = vmul.f32 %v1460_v55, %v1873_v36  ;;  %v1467_v8 = vunpack.c.l.bf16 %v1538_v60 }
  0x13   :  { %v236_v2 = vadd.f32 %v1879_v38, %v165_v53  ;;  %v203_v9 = vmul.f32 %v1471_v58, %v1873_v36  ;;  %v1408_v10 = vunpack.c.h.bf16 %v1523_v46  ;;  %v1472_v11 = vunpack.c.h.bf16 %v1539_v51 }
  0x14   :  { %v373_v61 = vmul.f32 %v1901_v52, %v302_v47  ;;  %v268_v6 = vadd.f32 %v1879_v38, %v197_v57  ;;  %v1415_v50 = vunpack.c.l.bf16 %v1945_v37 }
  0x16   :  { %1596 = vmatmul.mubr.msk.bf16.gmra.mrb[8].mxu0 %vm802_vm1, %v1665_v12  ;;  %1628 = vmatmul.mubr.msk.bf16.gmra.mrb[8].mxu1 %vm802_vm1, %v1666_v13  ;;  %v1927_v12 = vadd.f32 %v1918_v1, %v373_v61  ;;  %v334_v13 = vmax.f32 %v270_v62, 0.0 }
  0x17   :  { %1599 = vmatprep.mubr.msk.bf16.mxu0 %vm802_vm1, %v1667_v14  ;;  %1631 = vmatprep.mubr.msk.bf16.mxu1 %vm802_vm1, %v1668_v15  ;;  %v239_v14 = vadd.f32 %v1879_v38, %v168_v63  ;;  %v271_v15 = vadd.f32 %v1879_v38, %v200_v0 }
  0x1e   :  { %1600 = vmatmul.mubr.msk.bf16.gmra.mrb[12].mxu0 %vm802_vm1, %v1669_v16  ;;  %1632 = vmatmul.mubr.msk.bf16.gmra.mrb[12].mxu1 %vm802_vm1, %v1670_v17  ;;  %v300_v16 = vmax.f32 %v236_v2, 0.0  ;;  %v237_v17 = vadd.f32 %v1879_v38, %v166_v3 }
  0x1f   :  { %1603 = vmatprep.mubr.msk.bf16.mxu0 %vm802_vm1, %v1671_v18  ;;  %1635 = vmatprep.mubr.msk.bf16.mxu1 %vm802_vm1, %v1672_v19  ;;  %v269_v18 = vadd.f32 %v1879_v38, %v198_v4  ;;  %v242_v19 = vadd.f32 %v1879_v38, %v171_v5  ;;  %v175_v4 = vmul.f32 %v1415_v50, %v1873_v36 }
  0x21   :  { %v333_v34 = vmax.f32 %v269_v18, 0.0  ;;  %v306_v35 = vmax.f32 %v242_v19, 0.0 }
  0x23   :  { %v404_v54 = vmul.f32 %v1901_v52, %v333_v34  ;;  %v377_v55 = vmul.f32 %v1901_v52, %v306_v35  ;;  %v1527_v34 = vld [vmem:[%s2873_s0 + $0x38] sm:$0xff]  }
  0x26   :  { %1604 = vmatmul.mubr.msk.bf16.gmra.mrb[16].mxu0 %vm802_vm1, %v1673_v20  ;;  %1636 = vmatmul.mubr.msk.bf16.gmra.mrb[16].mxu1 %vm802_vm1, %v1674_v21  ;;  %v332_v20 = vmax.f32 %v268_v6, 0.0  ;;  %v169_v21 = vmul.f32 %v1403_v7, %v1873_v36  ;;  %v1985_v7 = vadd.f32 %v1918_v1, %v404_v54  ;;  %v1547_v54 = vld [vmem:[%s2873_s0 + $0xd8] sm:$0xff]  }
  0x27   :  { %1607 = vmatprep.mubr.msk.bf16.mxu0 %vm802_vm1, %v1675_v22  ;;  %1639 = vmatprep.mubr.msk.bf16.mxu1 %vm802_vm1, %v1676_v23  ;;  %v201_v22 = vmul.f32 %v1467_v8, %v1873_v36  ;;  %v1404_v23 = vunpack.c.h.bf16 %v1522_v59  ;;  %v1988_v8 = vadd.f32 %v1918_v1, %v377_v55 }
  0x28   :  { %v403_v39 = vmul.f32 %v1901_v52, %v332_v20  ;;  %v240_v40 = vadd.f32 %v1879_v38, %v169_v21  ;;  %v1540_v20 = vld [vmem:[%s2873_s0 + $0xa0] sm:$0xff]  }
  0x29   :  { %v272_v41 = vadd.f32 %v1879_v38, %v201_v22  ;;  %v170_v42 = vmul.f32 %v1404_v23, %v1873_v36  ;;  %v246_v23 = vadd.f32 %v1879_v38, %v175_v4  ;;  %v1476_v50 = vunpack.c.h.bf16 %v1540_v20 }
  0x2a   :  { %v1967_v56 = vadd.f32 %v1918_v1, %v403_v39  ;;  %v304_v57 = vmax.f32 %v240_v40, 0.0 }
  0x2b   :  { %v336_v58 = vmax.f32 %v272_v41, 0.0  ;;  %v241_v59 = vadd.f32 %v1879_v38, %v170_v42  ;;  %v310_v42 = vmax.f32 %v246_v23, 0.0 }
  0x2d   :  { %v381_v4 = vmul.f32 %v1901_v52, %v310_v42 }
  0x2e   :  { %1608 = vmatmul.mubr.msk.bf16.gmra.mrb[20].mxu0 %vm802_vm1, %v1677_v24  ;;  %1640 = vmatmul.mubr.msk.bf16.gmra.mrb[20].mxu1 %vm802_vm1, %v1678_v25  ;;  %v274_v24 = vadd.f32 %v1879_v38, %v203_v9  ;;  %v172_v25 = vmul.f32 %v1408_v10, %v1873_v36  ;;  %v1541_v9 = vld [vmem:[%s2873_s0 + $0xa8] sm:$0xff]  }
  0x2f   :  { %1611 = vmatprep.mubr.msk.bf16.mxu0 %vm802_vm1, %v1679_v26  ;;  %1643 = vmatprep.mubr.msk.bf16.mxu1 %vm802_vm1, %v1680_v27  ;;  %v204_v26 = vmul.f32 %v1472_v11, %v1873_v36  ;;  %v1468_v27 = vunpack.c.h.bf16 %v1538_v60  ;;  %v375_v11 = vmul.f32 %v1901_v52, %v304_v57  ;;  %v2067_v42 = vadd.f32 %v1918_v1, %v381_v4 }
  0x30   :  { %v338_v43 = vmax.f32 %v274_v24, 0.0  ;;  %v243_v44 = vadd.f32 %v1879_v38, %v172_v25  ;;  %v1479_v24 = vunpack.c.l.bf16 %v1541_v9 }
  0x31   :  { %v275_v45 = vadd.f32 %v1879_v38, %v204_v26  ;;  %v202_v46 = vmul.f32 %v1468_v27, %v1873_v36 }
  0x32   :  { %v409_v60 = vmul.f32 %v1901_v52, %v338_v43  ;;  %v307_v61 = vmax.f32 %v243_v44, 0.0  ;;  %v207_v43 = vmul.f32 %v1479_v24, %v1873_v36  ;;  %v1416_v44 = vunpack.c.h.bf16 %v1945_v37 }
  0x33   :  { %v339_v62 = vmax.f32 %v275_v45, 0.0  ;;  %v273_v63 = vadd.f32 %v1879_v38, %v202_v46  ;;  %v1480_v45 = vunpack.c.h.bf16 %v1541_v9  ;;  %v1543_v46 = vld [vmem:[%s2873_s0 + $0xb8] sm:$0xff]  }
  0x34   :  { %v278_v9 = vadd.f32 %v1879_v38, %v207_v43 }
  0x35   :  { %v410_v18 = vmul.f32 %v1901_v52, %v339_v62  ;;  %v337_v19 = vmax.f32 %v273_v63, 0.0  ;;  %v1526_v62 = vld [vmem:[%s2873_s0 + $0x30] sm:$0xff]  }
  0x36   :  { %1612 = vmatmul.mubr.msk.bf16.gmra.mrb[24].mxu0 %vm802_vm1, %v1681_v28  ;;  %1644 = vmatmul.mubr.msk.bf16.gmra.mrb[24].mxu1 %vm802_vm1, %v1682_v29  ;;  %v405_v29 = vmul.f32 %v1901_v52, %v334_v13  ;;  %v407_v13 = vmul.f32 %v1901_v52, %v336_v58  ;;  %v1542_v63 = vld [vmem:[%s2873_s0 + $0xb0] sm:$0xff]   ;;  %v1419_v23 = vunpack.c.l.bf16 %v1526_v62  ;;  %v342_v43 = vmax.f32 %v278_v9, 0.0 }
  0x37   :  { %1615 = vmatprep.mubr.msk.bf16.mxu0 %vm802_vm1, %v1683_v30  ;;  %1647 = vmatprep.mubr.msk.bf16.mxu1 %vm802_vm1, %v1684_v31  ;;  %v303_v30 = vmax.f32 %v239_v14, 0.0  ;;  %v335_v31 = vmax.f32 %v271_v15, 0.0  ;;  %v305_v14 = vmax.f32 %v241_v59, 0.0  ;;  %v1524_v15 = vld [vmem:[%s2873_s0 + $0x20] sm:$0xff]   ;;  %v2028_v40 = vadd.f32 %v1918_v1, %v410_v18 }
  0x38   :  { %v1955_v47 = vadd.f32 %v1918_v1, %v405_v29  ;;  %v1411_v29 = vunpack.c.l.bf16 %v1524_v15  ;;  %v408_v41 = vmul.f32 %v1901_v52, %v337_v19  ;;  %v1483_v24 = vunpack.c.l.bf16 %v1542_v63 }
  0x39   :  { %v374_v48 = vmul.f32 %v1901_v52, %v303_v30  ;;  %v406_v49 = vmul.f32 %v1901_v52, %v335_v31  ;;  %v2014_v30 = vadd.f32 %v1918_v1, %v375_v11  ;;  %v2017_v31 = vadd.f32 %v1918_v1, %v407_v13 }
  0x3a   :  { %v176_v11 = vmul.f32 %v1416_v44, %v1873_v36  ;;  %v208_v13 = vmul.f32 %v1480_v45, %v1873_v36 }
  0x3b   :  { %v1974_v2 = vadd.f32 %v1918_v1, %v374_v48  ;;  %v1977_v3 = vadd.f32 %v1918_v1, %v406_v49  ;;  %v173_v48 = vmul.f32 %v1411_v29, %v1873_v36  ;;  %v1412_v49 = vunpack.c.h.bf16 %v1524_v15 }
  0x3c   :  { %v247_v44 = vadd.f32 %v1879_v38, %v176_v11  ;;  %v279_v45 = vadd.f32 %v1879_v38, %v208_v13  ;;  %v1484_v13 = vunpack.c.h.bf16 %v1542_v63 }
  0x3d   :  { %v174_v15 = vmul.f32 %v1412_v49, %v1873_v36 }
  0x3e   :  { %1616 = vmatmul.mubr.msk.bf16.gmra.mrb[28].mxu0 %vm802_vm1, %v1685_v32  ;;  %1648 = vmatmul.mubr.msk.bf16.gmra.mrb[28].mxu1 %vm802_vm1, %v1686_v33  ;;  %v371_v32 = vmul.f32 %v1901_v52, %v300_v16  ;;  %v301_v33 = vmax.f32 %v237_v17, 0.0  ;;  %v2000_v16 = vadd.f32 %v1918_v1, %v409_v60  ;;  %v378_v17 = vmul.f32 %v1901_v52, %v307_v61 }
  0x3f   :  { %v2046_v60 = vadd.f32 %v1918_v1, %v408_v41  ;;  %v1487_v61 = vunpack.c.l.bf16 %v1543_v46  ;;  %v1488_v41 = vunpack.c.h.bf16 %v1543_v46  ;;  %v245_v49 = vadd.f32 %v1879_v38, %v174_v15 }
  0x40   :  { %v1961_v51 = vadd.f32 %v1918_v1, %v371_v32  ;;  %v372_v53 = vmul.f32 %v1901_v52, %v301_v33  ;;  %v376_v32 = vmul.f32 %v1901_v52, %v305_v14  ;;  %v1475_v33 = vunpack.c.l.bf16 %v1540_v20 }
  0x41   :  { %v2025_v39 = vadd.f32 %v1918_v1, %v378_v17  ;;  %v244_v14 = vadd.f32 %v1879_v38, %v173_v48  ;;  %v206_v17 = vmul.f32 %v1476_v50, %v1873_v36  ;;  %v1420_v46 = vunpack.c.h.bf16 %v1526_v62  ;;  %v2085_v62 = vld [vmem:[%s2873_s0 + $0x48] sm:$0xff]  }
  0x42   :  { %v1982_v6 = vadd.f32 %v1918_v1, %v372_v53  ;;  %v1423_v53 = vunpack.c.l.bf16 %v1527_v34  ;;  %v2040_v57 = vadd.f32 %v1918_v1, %v376_v32  ;;  %v205_v58 = vmul.f32 %v1475_v33, %v1873_v36 }
  0x43   :  { %v211_v32 = vmul.f32 %v1487_v61, %v1873_v36  ;;  %v1424_v33 = vunpack.c.h.bf16 %v1527_v34  ;;  %v308_v48 = vmax.f32 %v244_v14, 0.0  ;;  %v277_v50 = vadd.f32 %v1879_v38, %v206_v17 }
  0x44   :  { %v179_v18 = vmul.f32 %v1423_v53, %v1873_v36  ;;  %v276_v20 = vadd.f32 %v1879_v38, %v205_v58  ;;  %v177_v61 = vmul.f32 %v1419_v23, %v1873_v36  ;;  %v209_v34 = vmul.f32 %v1483_v24, %v1873_v36 }
  0x45   :  { %v282_v4 = vadd.f32 %v1879_v38, %v211_v32  ;;  %v180_v9 = vmul.f32 %v1424_v33, %v1873_v36  ;;  %v212_v11 = vmul.f32 %v1488_v41, %v1873_v36  ;;  %v413_v15 = vmul.f32 %v1901_v52, %v342_v43 }
  0x46   :  { %v250_v53 = vadd.f32 %v1879_v38, %v179_v18  ;;  %v340_v58 = vmax.f32 %v276_v20, 0.0  ;;  %v311_v17 = vmax.f32 %v247_v44, 0.0  ;;  %v343_v29 = vmax.f32 %v279_v45, 0.0 }
  0x47   :  { %v379_v18 = vmul.f32 %v1901_v52, %v308_v48  ;;  %v309_v20 = vmax.f32 %v245_v49, 0.0  ;;  %v341_v23 = vmax.f32 %v277_v50, 0.0  ;;  %v248_v63 = vadd.f32 %v1879_v38, %v177_v61 }
  0x48   :  { %v314_v19 = vmax.f32 %v250_v53, 0.0  ;;  %v411_v24 = vmul.f32 %v1901_v52, %v340_v58  ;;  %v280_v32 = vadd.f32 %v1879_v38, %v209_v34  ;;  %v178_v33 = vmul.f32 %v1420_v46, %v1873_v36 }
  0x49   :  { %v346_v41 = vmax.f32 %v282_v4, 0.0  ;;  %v251_v43 = vadd.f32 %v1879_v38, %v180_v9  ;;  %v283_v44 = vadd.f32 %v1879_v38, %v212_v11  ;;  %v210_v45 = vmul.f32 %v1484_v13, %v1873_v36 }
  0x4a   :  { %v2095_v48 = vadd.f32 %v1918_v1, %v413_v15  ;;  %v382_v49 = vmul.f32 %v1901_v52, %v311_v17  ;;  %v414_v50 = vmul.f32 %v1901_v52, %v343_v29  ;;  %v1431_v53 = vunpack.c.l.bf16 %v2085_v62 }
  0x4b   :  { %v2101_v58 = vadd.f32 %v1918_v1, %v379_v18  ;;  %v380_v61 = vmul.f32 %v1901_v52, %v309_v20  ;;  %v412_v34 = vmul.f32 %v1901_v52, %v341_v23  ;;  %v385_v46 = vmul.f32 %v1901_v52, %v314_v19 }
  0x4c   :  { %v2107_v4 = vadd.f32 %v1918_v1, %v411_v24  ;;  %v312_v9 = vmax.f32 %v248_v63, 0.0  ;;  %v344_v11 = vmax.f32 %v280_v32, 0.0  ;;  %v249_v13 = vadd.f32 %v1879_v38, %v178_v33 }
  0x4d   :  { %v417_v29 = vmul.f32 %v1901_v52, %v346_v41  ;;  %v315_v15 = vmax.f32 %v251_v43, 0.0  ;;  %v347_v17 = vmax.f32 %v283_v44, 0.0  ;;  %v281_v18 = vadd.f32 %v1879_v38, %v210_v45  ;;  %v1545_v41 = vld [vmem:[%s2873_s0 + $0xc8] sm:$0xff]   ;;  %v1544_v43 = vld [vmem:[%s2873_s0 + $0xc0] sm:$0xff]  }
  0x4e   :  { %v2114_v20 = vadd.f32 %v1918_v1, %v382_v49  ;;  %v2117_v19 = vadd.f32 %v1918_v1, %v414_v50  ;;  %v183_v23 = vmul.f32 %v1431_v53, %v1873_v36  ;;  %v2122_v63 = vadd.f32 %v1918_v1, %v380_v61  ;;  %v1528_v50 = vld [vmem:[%s2873_s0 + $0x40] sm:$0xff]  }
  0x4f   :  { %v2125_v32 = vadd.f32 %v1918_v1, %v412_v34  ;;  %v2128_v33 = vadd.f32 %v1918_v1, %v385_v46  ;;  %v383_v44 = vmul.f32 %v1901_v52, %v312_v9  ;;  %v415_v45 = vmul.f32 %v1901_v52, %v344_v11 }
  0x50   :  { %v313_v49 = vmax.f32 %v249_v13, 0.0  ;;  %v2140_v53 = vadd.f32 %v1918_v1, %v417_v29  ;;  %v386_v61 = vmul.f32 %v1901_v52, %v315_v15  ;;  %v418_v34 = vmul.f32 %v1901_v52, %v347_v17 }
  0x51   :  { %v345_v46 = vmax.f32 %v281_v18, 0.0  ;;  %v254_v13 = vadd.f32 %v1879_v38, %v183_v23  ;;  %v1495_v24 = vunpack.c.l.bf16 %v1545_v41  ;;  %v1427_v59 = vunpack.c.l.bf16 %v1528_v50  ;;  %v1531_v23 = vld [vmem:[%s2873_s0 + $0x58] sm:$0xff]  }
  0x52   :  { %v2154_v17 = vadd.f32 %v1918_v1, %v383_v44  ;;  %v2157_v18 = vadd.f32 %v1918_v1, %v415_v45  ;;  %v384_v9 = vmul.f32 %v1901_v52, %v313_v49  ;;  %v1491_v37 = vunpack.c.l.bf16 %v1544_v43 }
  0x53   :  { %v2165_v29 = vadd.f32 %v1918_v1, %v386_v61  ;;  %v2168_v15 = vadd.f32 %v1918_v1, %v418_v34  ;;  %v416_v44 = vmul.f32 %v1901_v52, %v345_v46  ;;  %v318_v11 = vmax.f32 %v254_v13, 0.0 }
  0x54   :  { %2895 = vst [vmem:[#allocation2_spill] sm:$0xff] %v2157_v18  ;;  %v215_v45 = vmul.f32 %v1495_v24, %v1873_v36  ;;  %v1432_v49 = vunpack.c.h.bf16 %v2085_v62  ;;  %v1496_v55 = vunpack.c.h.bf16 %v1545_v41  ;;  %v181_v14 = vmul.f32 %v1427_v59, %v1873_v36 }
  0x55   :  { %2896 = vst [vmem:[#allocation3_spill] sm:$0xff] %v2165_v29  ;;  %2897 = vst [vmem:[#allocation4_spill] sm:$0xff] %v2168_v15  ;;  %v1428_v35 = vunpack.c.h.bf16 %v1528_v50  ;;  %v1492_v61 = vunpack.c.h.bf16 %v1544_v43  ;;  %v1439_v27 = vunpack.c.l.bf16 %v1531_v23  ;;  %v2180_v46 = vadd.f32 %v1918_v1, %v384_v9  ;;  %v1530_v43 = vld [vmem:[%s2873_s0 + $0x50] sm:$0xff]  }
  0x56   :  { %v213_v24 = vmul.f32 %v1491_v37, %v1873_v36  ;;  %v2186_v13 = vadd.f32 %v1918_v1, %v416_v44  ;;  %v1503_v59 = vunpack.c.l.bf16 %v1547_v54  ;;  %v1546_v50 = vld [vmem:[%s2873_s0 + $0xd0] sm:$0xff]   ;;  %v389_v9 = vmul.f32 %v1901_v52, %v318_v11 }
  0x57   :  { %2898 = vst [vmem:[#allocation5_spill] sm:$0xff] %v2180_v46  ;;  %v286_v37 = vadd.f32 %v1879_v38, %v215_v45  ;;  %v184_v62 = vmul.f32 %v1432_v49, %v1873_v36  ;;  %v216_v41 = vmul.f32 %v1496_v55, %v1873_v36  ;;  %v252_v44 = vadd.f32 %v1879_v38, %v181_v14 }
  0x58   :  { %2899 = vst [vmem:[#allocation6_spill] sm:$0xff] %v2186_v13  ;;  %v182_v26 = vmul.f32 %v1428_v35, %v1873_v36  ;;  %v214_v34 = vmul.f32 %v1492_v61, %v1873_v36  ;;  %v187_v25 = vmul.f32 %v1439_v27, %v1873_v36  ;;  %v284_v21 = vadd.f32 %v1879_v38, %v213_v24 }
  0x59   :  { %v1435_v10 = vunpack.c.l.bf16 %v1530_v43  ;;  %v1499_v11 = vunpack.c.l.bf16 %v1546_v50  ;;  %v219_v49 = vmul.f32 %v1503_v59, %v1873_v36  ;;  %v1440_v5 = vunpack.c.h.bf16 %v1531_v23 }
  0x5a   :  { %v1504_v55 = vunpack.c.h.bf16 %v1547_v54  ;;  %v2207_v14 = vadd.f32 %v1918_v1, %v389_v9  ;;  %v350_v35 = vmax.f32 %v286_v37, 0.0  ;;  %v255_v61 = vadd.f32 %v1879_v38, %v184_v62 }
  0x5b   :  { %v287_v27 = vadd.f32 %v1879_v38, %v216_v41  ;;  %v316_v0 = vmax.f32 %v252_v44, 0.0  ;;  %v253_v22 = vadd.f32 %v1879_v38, %v182_v26  ;;  %v285_v24 = vadd.f32 %v1879_v38, %v214_v34 }
  0x5c   :  { %2900 = vst [vmem:[#allocation7_spill] sm:$0xff] %v2207_v14  ;;  %v258_v28 = vadd.f32 %v1879_v38, %v187_v25  ;;  %v348_v45 = vmax.f32 %v284_v21, 0.0  ;;  %v185_v59 = vmul.f32 %v1435_v10, %v1873_v36  ;;  %v217_v54 = vmul.f32 %v1499_v11, %v1873_v36 }
  0x5d   :  { %v1436_v23 = vunpack.c.h.bf16 %v1530_v43  ;;  %v290_v9 = vadd.f32 %v1879_v38, %v219_v49  ;;  %v188_v37 = vmul.f32 %v1440_v5, %v1873_v36  ;;  %v220_v62 = vmul.f32 %v1504_v55, %v1873_v36  ;;  %v2225_v43 = vld [vmem:[%s2873_s0 + $0x68] sm:$0xff]  }
  0x5e   :  { %v1500_v41 = vunpack.c.h.bf16 %v1546_v50  ;;  %v421_v26 = vmul.f32 %v1901_v52, %v350_v35  ;;  %v319_v34 = vmax.f32 %v255_v61, 0.0  ;;  %v351_v13 = vmax.f32 %v287_v27, 0.0 }
  0x5f   :  { %v387_v21 = vmul.f32 %v1901_v52, %v316_v0  ;;  %v317_v25 = vmax.f32 %v253_v22, 0.0  ;;  %v349_v10 = vmax.f32 %v285_v24, 0.0  ;;  %v322_v46 = vmax.f32 %v258_v28, 0.0 }
  0x60   :  { %v419_v5 = vmul.f32 %v1901_v52, %v348_v45  ;;  %v256_v50 = vadd.f32 %v1879_v38, %v185_v59  ;;  %v288_v11 = vadd.f32 %v1879_v38, %v217_v54  ;;  %v186_v49 = vmul.f32 %v1436_v23, %v1873_v36 }
  0x61   :  { %v354_v55 = vmax.f32 %v290_v9, 0.0  ;;  %v259_v35 = vadd.f32 %v1879_v38, %v188_v37  ;;  %v291_v0 = vadd.f32 %v1879_v38, %v220_v62  ;;  %v218_v28 = vmul.f32 %v1500_v41, %v1873_v36 }
  0x62   :  { %v2235_v22 = vadd.f32 %v1918_v1, %v421_v26  ;;  %v390_v61 = vmul.f32 %v1901_v52, %v319_v34  ;;  %v422_v45 = vmul.f32 %v1901_v52, %v351_v13  ;;  %v1447_v27 = vunpack.c.l.bf16 %v2225_v43 }
  0x63   :  { %v2241_v24 = vadd.f32 %v1918_v1, %v387_v21  ;;  %v388_v59 = vmul.f32 %v1901_v52, %v317_v25  ;;  %v420_v54 = vmul.f32 %v1901_v52, %v349_v10  ;;  %v393_v23 = vmul.f32 %v1901_v52, %v322_v46 }
  0x64   :  { %2901 = vst [vmem:[#allocation8_spill] sm:$0xff] %v2235_v22  ;;  %v2247_v9 = vadd.f32 %v1918_v1, %v419_v5  ;;  %v320_v37 = vmax.f32 %v256_v50, 0.0  ;;  %v352_v62 = vmax.f32 %v288_v11, 0.0  ;;  %v257_v41 = vadd.f32 %v1879_v38, %v186_v49 }
  0x65   :  { %2902 = vst [vmem:[#allocation9_spill] sm:$0xff] %v2241_v24  ;;  %v425_v13 = vmul.f32 %v1901_v52, %v354_v55  ;;  %v323_v26 = vmax.f32 %v259_v35, 0.0  ;;  %v355_v34 = vmax.f32 %v291_v0, 0.0  ;;  %v289_v21 = vadd.f32 %v1879_v38, %v218_v28  ;;  %v2273_v55 = vld [vmem:[%s2873_s0 + $0xe8] sm:$0xff]  }
  0x66   :  { %2903 = vst [vmem:[#allocation10_spill] sm:$0xff] %v2247_v9  ;;  %v2254_v25 = vadd.f32 %v1918_v1, %v390_v61  ;;  %v2257_v46 = vadd.f32 %v1918_v1, %v422_v45  ;;  %v191_v10 = vmul.f32 %v1447_v27, %v1873_v36  ;;  %v2262_v50 = vadd.f32 %v1918_v1, %v388_v59  ;;  %v2281_v45 = vld [vmem:[%s2873_s0 + $0x60] sm:$0xff]  }
  0x67   :  { %v2265_v11 = vadd.f32 %v1918_v1, %v420_v54  ;;  %v2268_v49 = vadd.f32 %v1918_v1, %v393_v23  ;;  %v391_v0 = vmul.f32 %v1901_v52, %v320_v37  ;;  %v423_v28 = vmul.f32 %v1901_v52, %v352_v62  ;;  %v2291_v37 = vld [vmem:[%s2873_s0 + $0xe0] sm:$0xff]  }
  0x68   :  { %2904 = vst [vmem:[#allocation11_spill] sm:$0xff] %v2254_v25  ;;  %2905 = vst [vmem:[#allocation12_spill] sm:$0xff] %v2257_v46  ;;  %v321_v61 = vmax.f32 %v257_v41, 0.0  ;;  %v2284_v27 = vadd.f32 %v1918_v1, %v425_v13  ;;  %v394_v59 = vmul.f32 %v1901_v52, %v323_v26  ;;  %v426_v54 = vmul.f32 %v1901_v52, %v355_v34  ;;  %v2302_v26 = vld [vmem:[%s2878_s7] ss:$0 sm:$0xff] }
  0x69   :  { %2906 = vst [vmem:[#allocation13_spill] sm:$0xff] %v2262_v50  ;;  %2907 = vst [vmem:[#allocation14_spill] sm:$0xff] %v2265_v11  ;;  %v353_v23 = vmax.f32 %v289_v21, 0.0  ;;  %v2296_v35 = vadd.f32 %v1879_v38, %v191_v10  ;;  %v1511_v13 = vunpack.c.l.bf16 %v2273_v55  ;;  %v1443_v62 = vunpack.c.l.bf16 %v2281_v45 }
  0x6a   :  { %2908 = vst [vmem:[#allocation15_spill] sm:$0xff] %v2268_v49  ;;  %2909 = vst [vmem:[#allocation16_spill] sm:$0xff] %v2284_v27  ;;  %v2309_v41 = vadd.f32 %v1918_v1, %v391_v0  ;;  %v2312_v10 = vadd.f32 %v1918_v1, %v423_v28  ;;  %v392_v44 = vmul.f32 %v1901_v52, %v321_v61  ;;  %v1507_v46 = vunpack.c.l.bf16 %v2291_v37 }
  0x6b   :  { %v2318_v34 = vadd.f32 %v1918_v1, %v394_v59  ;;  %v2321_v5 = vadd.f32 %v1918_v1, %v426_v54  ;;  %v424_v21 = vmul.f32 %v1901_v52, %v353_v23  ;;  %v326_v11 = vmax.f32 %v2296_v35, 0.0 }
  0x6c   :  { %v223_v61 = vmul.f32 %v1511_v13, %v1873_v36  ;;  %v1448_v50 = vunpack.c.h.bf16 %v2225_v43  ;;  %v189_v54 = vmul.f32 %v1443_v62, %v1873_v36  ;;  %v1512_v23 = vunpack.c.h.bf16 %v2273_v55 }
  0x6d   :  { %v221_v43 = vmul.f32 %v1507_v46, %v1873_v36  ;;  %v2912_v29 = vmax.f32 %v1961_v51, 0.0  ;;  %v2914_v46 = vmax.f32 %v1974_v2, 0.0  ;;  %v1444_v51 = vunpack.c.h.bf16 %v2281_v45 }
  0x6e   :  { %v2363_v2 = vadd.f32 %v1879_v38, %v223_v61  ;;  %v192_v45 = vmul.f32 %v1448_v50, %v1873_v36  ;;  %v2384_v61 = vadd.f32 %v1918_v1, %v392_v44 }
  0x6f   :  { %v292_v44 = vadd.f32 %v1879_v38, %v221_v43 }
  0xd9   :  { %v1589_v25 = vpop.f32.mrb[0].mxu0  ;;  %v1621_v49 = vpop.f32.mrb[0].mxu1 }
  0xda   :  { %v946_v0 = vadd.f32 %v1589_v25, %v2302_v26  ;;  %v937_v28 = vpop.f32.mrb[1].mxu0  ;;  %v1074_v9 = vadd.f32 %v1621_v49, %v2302_v26  ;;  %v1065_v27 = vpop.f32.mrb[1].mxu1  ;;  %v2910_v25 = vmax.f32 %v1927_v12, 0.0  ;;  %v2911_v49 = vmax.f32 %v1955_v47, 0.0 }
  0xdb   :  { %v938_v59 = vadd.f32 %v2302_v26, %v937_v28  ;;  %v1590_v24 = vpop.f32.mrb[2].mxu0  ;;  %v1066_v14 = vadd.f32 %v2302_v26, %v1065_v27  ;;  %v1622_v13 = vpop.f32.mrb[2].mxu1 }
  0xdc   :  { %v1194_v22 = vadd.f32 %v946_v0, %v2910_v25  ;;  %v949_v35 = vadd.f32 %v1590_v24, %v2302_v26  ;;  %v940_v15 = vpop.f32.mrb[3].mxu0  ;;  %v1226_v28 = vadd.f32 %v1074_v9, %v2911_v49  ;;  %v1077_v62 = vadd.f32 %v1622_v13, %v2302_v26  ;;  %v1068_v12 = vpop.f32.mrb[3].mxu1 }
  0xdd   :  { %v1192_v18 = vadd.f32 %v938_v59, %v2912_v29  ;;  %v941_v55 = vadd.f32 %v2302_v26, %v940_v15  ;;  %v2913_v24 = vmax.f32 %v1967_v56, 0.0  ;;  %v1069_v47 = vadd.f32 %v2302_v26, %v1068_v12 }
  0xde   :  { %1258 = vst [vmem:[%s2879_s8 + $0x10] sm:$0xff] %v1194_v22  ;;  %v1195_v0 = vadd.f32 %v949_v35, %v2914_v46  ;;  %1290 = vst [vmem:[%s2879_s8 + $0x110] sm:$0xff] %v1226_v28  ;;  %v2915_v29 = vmax.f32 %v1977_v3, 0.0  ;;  %v2916_v56 = vmax.f32 %v1982_v6, 0.0  ;;  %v1508_v22 = vunpack.c.h.bf16 %v2291_v37 }
  0xdf   :  { %v1224_v27 = vadd.f32 %v1066_v14, %v2913_v24  ;;  %1256 = vst [vmem:[%s2879_s8] sm:$0xff] %v1192_v18  ;;  %v2917_v18 = vmax.f32 %v1985_v7, 0.0  ;;  %v526_v9 = vmax.f32 %v2309_v41, 0.0  ;;  %v558_v6 = vmax.f32 %v2312_v10, 0.0 }
  0xe0   :  { %v1227_v15 = vadd.f32 %v1077_v62, %v2915_v29  ;;  %v1193_v14 = vadd.f32 %v941_v55, %v2916_v56  ;;  %1259 = vst [vmem:[%s2879_s8 + $0x18] sm:$0xff] %v1195_v0  ;;  %v2387_v7 = vadd.f32 %v1918_v1, %v424_v21  ;;  %v397_v59 = vmul.f32 %v1901_v52, %v326_v11 }
  0xe1   :  { %1288 = vst [vmem:[%s2879_s8 + $0x100] sm:$0xff] %v1224_v27  ;;  %v1225_v3 = vadd.f32 %v1069_v47, %v2917_v18  ;;  %v1593_v37 = vpop.f32.mrb[4].mxu0  ;;  %v224_v25 = vmul.f32 %v1512_v23, %v1873_v36  ;;  %v1625_v35 = vpop.f32.mrb[4].mxu1  ;;  %v260_v49 = vadd.f32 %v1879_v38, %v189_v54  ;;  %v190_v28 = vmul.f32 %v1444_v51, %v1873_v36 }
  0xe2   :  { %1291 = vst [vmem:[%s2879_s8 + $0x118] sm:$0xff] %v1227_v15  ;;  %1257 = vst [vmem:[%s2879_s8 + $0x8] sm:$0xff] %v1193_v14  ;;  %v962_v50 = vadd.f32 %v1593_v37, %v2302_v26  ;;  %v953_v13 = vpop.f32.mrb[5].mxu0  ;;  %v1090_v21 = vadd.f32 %v1625_v35, %v2302_v26  ;;  %v1081_v62 = vpop.f32.mrb[5].mxu1  ;;  %v358_v55 = vmax.f32 %v2363_v2, 0.0  ;;  %v222_v12 = vmul.f32 %v1508_v22, %v1873_v36 }
  0xe3   :  { %1289 = vst [vmem:[%s2879_s8 + $0x108] sm:$0xff] %v1225_v3  ;;  %v954_v11 = vadd.f32 %v2302_v26, %v953_v13  ;;  %v1594_v23 = vpop.f32.mrb[6].mxu0  ;;  %v2918_v24 = vmax.f32 %v1988_v8, 0.0  ;;  %v1082_v46 = vadd.f32 %v2302_v26, %v1081_v62  ;;  %v1626_v43 = vpop.f32.mrb[6].mxu1  ;;  %v2407_v47 = vadd.f32 %v1879_v38, %v192_v45 }
  0xe4   :  { %v965_v54 = vadd.f32 %v1594_v23, %v2302_v26  ;;  %v956_v0 = vpop.f32.mrb[7].mxu0  ;;  %v2919_v51 = vmax.f32 %v2000_v16, 0.0  ;;  %v2920_v15 = vmax.f32 %v2014_v30, 0.0  ;;  %v1093_v14 = vadd.f32 %v1626_v43, %v2302_v26  ;;  %v1084_v2 = vpop.f32.mrb[7].mxu1 }
  0xe5   :  { %v1198_v27 = vadd.f32 %v962_v50, %v2918_v24  ;;  %v957_v8 = vadd.f32 %v2302_v26, %v956_v0  ;;  %v2921_v22 = vmax.f32 %v2017_v31, 0.0  ;;  %v2922_v3 = vmax.f32 %v2025_v39, 0.0 }
  0xe6   :  { %v1230_v29 = vadd.f32 %v1090_v21, %v2919_v51  ;;  %v1196_v56 = vadd.f32 %v954_v11, %v2920_v15  ;;  %v1085_v16 = vadd.f32 %v2302_v26, %v1084_v2  ;;  %v2424_v30 = vadd.f32 %v1879_v38, %v224_v25  ;;  %v2439_v25 = vld [vmem:[%s2873_s0 + $0x78] sm:$0xff]  }
  0xe7   :  { %1262 = vst [vmem:[%s2879_s8 + $0x30] sm:$0xff] %v1198_v27  ;;  %v1228_v18 = vadd.f32 %v1082_v46, %v2921_v22  ;;  %v1199_v45 = vadd.f32 %v965_v54, %v2922_v3  ;;  %v2923_v37 = vmax.f32 %v2028_v40, 0.0  ;;  %v2924_v50 = vmax.f32 %v2040_v57, 0.0 }
  0xe8   :  { %1294 = vst [vmem:[%s2879_s8 + $0x130] sm:$0xff] %v1230_v29  ;;  %1260 = vst [vmem:[%s2879_s8 + $0x20] sm:$0xff] %v1196_v56  ;;  %v324_v35 = vmax.f32 %v260_v49, 0.0  ;;  %v356_v13 = vmax.f32 %v292_v44, 0.0  ;;  %v2925_v40 = vmax.f32 %v2046_v60, 0.0  ;;  %v529_v57 = vmax.f32 %v2318_v34, 0.0 }
  0xe9   :  { %v1231_v31 = vadd.f32 %v1093_v14, %v2923_v37  ;;  %v1197_v39 = vadd.f32 %v957_v8, %v2924_v50  ;;  %1292 = vst [vmem:[%s2879_s8 + $0x120] sm:$0xff] %v1228_v18  ;;  %1263 = vst [vmem:[%s2879_s8 + $0x38] sm:$0xff] %v1199_v45  ;;  %v561_v49 = vmax.f32 %v2321_v5, 0.0  ;;  %v2452_v44 = vadd.f32 %v1879_v38, %v190_v28  ;;  %v1597_v11 = vpop.f32.mrb[8].mxu0  ;;  %v1629_v27 = vpop.f32.mrb[8].mxu1  ;;  %v2487_v18 = vld [vmem:[%s2873_s0 + $0xf8] sm:$0xff]  }
  0xea   :  { %v1229_v21 = vadd.f32 %v1085_v16, %v2925_v40  ;;  %v527_v62 = vmax.f32 %v2384_v61, 0.0  ;;  %v2462_v60 = vadd.f32 %v1918_v1, %v397_v59  ;;  %v429_v23 = vmul.f32 %v1901_v52, %v358_v55  ;;  %v969_v46 = vpop.f32.mrb[9].mxu0 }
  0xeb   :  { %1295 = vst [vmem:[%s2879_s8 + $0x138] sm:$0xff] %v1231_v31  ;;  %1261 = vst [vmem:[%s2879_s8 + $0x28] sm:$0xff] %v1197_v39  ;;  %v2466_v24 = vadd.f32 %v1879_v38, %v222_v12  ;;  %v978_v28 = vadd.f32 %v1597_v11, %v2302_v26  ;;  %v327_v54 = vmax.f32 %v2407_v47, 0.0  ;;  %v359_v43 = vmax.f32 %v2424_v30, 0.0  ;;  %v1097_v38 = vpop.f32.mrb[9].mxu1  ;;  %v1598_v12 = vpop.f32.mrb[10].mxu0 }
  0xec   :  { %1293 = vst [vmem:[%s2879_s8 + $0x128] sm:$0xff] %v1229_v21  ;;  %v1455_v59 = vunpack.c.l.bf16 %v2439_v25  ;;  %v1106_v0 = vadd.f32 %v1629_v27, %v2302_v26  ;;  %v970_v55 = vadd.f32 %v2302_v26, %v969_v46  ;;  %v395_v51 = vmul.f32 %v1901_v52, %v324_v35  ;;  %v1630_v8 = vpop.f32.mrb[10].mxu1  ;;  %v972_v2 = vpop.f32.mrb[11].mxu0 }
  0xed   :  { %v427_v29 = vmul.f32 %v1901_v52, %v356_v13  ;;  %v2926_v15 = vmax.f32 %v2067_v42, 0.0  ;;  %v1098_v14 = vadd.f32 %v2302_v26, %v1097_v38  ;;  %v981_v47 = vadd.f32 %v1598_v12, %v2302_v26  ;;  %v1100_v31 = vpop.f32.mrb[11].mxu1 }
  0xee   :  { %v325_v22 = vmax.f32 %v2452_v44, 0.0  ;;  %v2927_v3 = vmax.f32 %v2095_v48, 0.0  ;;  %v2928_v16 = vmax.f32 %v2101_v58, 0.0  ;;  %v1109_v30 = vadd.f32 %v1630_v8, %v2302_v26 }
  0xef   :  { %v1202_v56 = vadd.f32 %v978_v28, %v2926_v15  ;;  %v973_v37 = vadd.f32 %v2302_v26, %v972_v2  ;;  %v2929_v50 = vmax.f32 %v2107_v4, 0.0  ;;  %v2930_v35 = vmax.f32 %v2114_v20, 0.0 }
  0xf0   :  { %v1234_v45 = vadd.f32 %v1106_v0, %v2927_v3  ;;  %v1200_v42 = vadd.f32 %v970_v55, %v2928_v16  ;;  %v1101_v48 = vadd.f32 %v2302_v26, %v1100_v31  ;;  %v195_v58 = vmul.f32 %v1455_v59, %v1873_v36  ;;  %v2519_v36 = vld [vmem:[%s2873_s0 + $0x70] sm:$0xff]  }
  0xf1   :  { %1266 = vst [vmem:[%s2879_s8 + $0x50] sm:$0xff] %v1202_v56  ;;  %v1232_v39 = vadd.f32 %v1098_v14, %v2929_v50  ;;  %v1203_v13 = vadd.f32 %v981_v47, %v2930_v35  ;;  %v2931_v40 = vmax.f32 %v2117_v19, 0.0  ;;  %v2932_v4 = vmax.f32 %v2122_v63, 0.0  ;;  %v2537_v59 = vld [vmem:[%s2873_s0 + $0xf0] sm:$0xff]   ;;  %v1633_v12 = vpop.f32.mrb[12].mxu1 }
  0xf2   :  { %1298 = vst [vmem:[%s2879_s8 + $0x150] sm:$0xff] %v1234_v45  ;;  %1264 = vst [vmem:[%s2879_s8 + $0x40] sm:$0xff] %v1200_v42  ;;  %v559_v20 = vmax.f32 %v2387_v7, 0.0  ;;  %v1519_v11 = vunpack.c.l.bf16 %v2487_v18  ;;  %v2933_v19 = vmax.f32 %v2125_v32, 0.0  ;;  %v532_v28 = vmax.f32 %v2462_v60, 0.0  ;;  %v1601_v32 = vpop.f32.mrb[12].mxu0 }
  0xf3   :  { %v1235_v21 = vadd.f32 %v1109_v30, %v2931_v40  ;;  %v1201_v44 = vadd.f32 %v973_v37, %v2932_v4  ;;  %1296 = vst [vmem:[%s2879_s8 + $0x140] sm:$0xff] %v1232_v39  ;;  %1267 = vst [vmem:[%s2879_s8 + $0x58] sm:$0xff] %v1203_v13  ;;  %v2531_v27 = vadd.f32 %v1918_v1, %v429_v23  ;;  %v357_v46 = vmax.f32 %v2466_v24, 0.0  ;;  %v985_v15 = vpop.f32.mrb[13].mxu0  ;;  %v1113_v14 = vpop.f32.mrb[13].mxu1  ;;  %v2939_v4 = vld [vmem:[#allocation3_spill] sm:$0xff] }
  0xf4   :  { %v1233_v63 = vadd.f32 %v1101_v48, %v2933_v19  ;;  %v2546_v0 = vadd.f32 %v1918_v1, %v395_v51  ;;  %v2549_v23 = vadd.f32 %v1918_v1, %v427_v29  ;;  %v398_v24 = vmul.f32 %v1901_v52, %v327_v54  ;;  %v2563_v1 = vld [vmem:[%s2875_s2] ss:$0 sm:$0xff]  ;;  %v1602_v47 = vpop.f32.mrb[14].mxu0  ;;  %v1634_v42 = vpop.f32.mrb[14].mxu1 }
  0xf5   :  { %1299 = vst [vmem:[%s2879_s8 + $0x158] sm:$0xff] %v1235_v21  ;;  %1265 = vst [vmem:[%s2879_s8 + $0x48] sm:$0xff] %v1201_v44  ;;  %v430_v55 = vmul.f32 %v1901_v52, %v359_v43  ;;  %v994_v38 = vadd.f32 %v1601_v32, %v2302_v26  ;;  %v2558_v56 = vmul.f32 %v1901_v52, %v325_v22  ;;  %v1451_v43 = vunpack.c.l.bf16 %v2519_v36  ;;  %v2574_v52 = vld [vmem:[%s2874_s1] ss:$0 sm:$0xff]  ;;  %v988_v30 = vpop.f32.mrb[15].mxu0  ;;  %v2943_v32 = vld [vmem:[#allocation5_spill] sm:$0xff] }
  0xf6   :  { %1297 = vst [vmem:[%s2879_s8 + $0x148] sm:$0xff] %v1233_v63  ;;  %v2566_v54 = vadd.f32 %v2563_v1, %v195_v58  ;;  %v1122_v51 = vadd.f32 %v1633_v12, %v2302_v26  ;;  %v986_v29 = vadd.f32 %v2302_v26, %v985_v15  ;;  %v227_v8 = vmul.f32 %v2574_v52, %v1519_v11  ;;  %v2937_v58 = vld [vmem:[#allocation2_spill] sm:$0xff]  ;;  %v2941_v11 = vld [vmem:[#allocation4_spill] sm:$0xff] }
  0xf7   :  { %v1515_v2 = vunpack.c.l.bf16 %v2537_v59  ;;  %v2934_v22 = vmax.f32 %v2128_v33, 0.0  ;;  %v1114_v45 = vadd.f32 %v2302_v26, %v1113_v14  ;;  %v997_v16 = vadd.f32 %v1602_v47, %v2302_v26  ;;  %v1116_v33 = vpop.f32.mrb[15].mxu1 }
  0xf8   :  { %v1456_v37 = vunpack.c.h.bf16 %v2439_v25  ;;  %v2935_v31 = vmax.f32 %v2140_v53, 0.0  ;;  %v2936_v39 = vmax.f32 %v2154_v17, 0.0  ;;  %v1125_v13 = vadd.f32 %v1634_v42, %v2302_v26 }
  0xf9   :  { %v1206_v3 = vadd.f32 %v994_v38, %v2934_v22  ;;  %v989_v48 = vadd.f32 %v2302_v26, %v988_v30  ;;  %v2938_v40 = vmax.f32 %v2937_v58, 0.0  ;;  %v2940_v25 = vmax.f32 %v2939_v4, 0.0  ;;  %v2622_v22 = vld [vmem:[%s2876_s3] ss:$0 sm:$0xff]  ;;  %v2947_v58 = vld [vmem:[#allocation7_spill] sm:$0xff] }
  0xfa   :  { %v1238_v50 = vadd.f32 %v1122_v51, %v2935_v31  ;;  %v1204_v35 = vadd.f32 %v986_v29, %v2936_v39  ;;  %v1117_v53 = vadd.f32 %v2302_v26, %v1116_v33  ;;  %v1520_v17 = vunpack.c.h.bf16 %v2487_v18  ;;  %v2945_v18 = vld [vmem:[#allocation6_spill] sm:$0xff]  ;;  %v1637_v31 = vpop.f32.mrb[16].mxu1 }
  0xfb   :  { %1270 = vst [vmem:[%s2879_s8 + $0x70] sm:$0xff] %v1206_v3  ;;  %v1236_v21 = vadd.f32 %v1114_v45, %v2938_v40  ;;  %v1207_v44 = vadd.f32 %v997_v16, %v2940_v25  ;;  %v2942_v19 = vmax.f32 %v2941_v11, 0.0  ;;  %v2944_v38 = vmax.f32 %v2943_v32, 0.0  ;;  %v1605_v3 = vpop.f32.mrb[16].mxu0  ;;  %v2635_v45 = vld [vmem:[%s2877_s4] ss:$0 sm:$0xff] }
  0xfc   :  { %1302 = vst [vmem:[%s2879_s8 + $0x170] sm:$0xff] %v1238_v50  ;;  %1268 = vst [vmem:[%s2879_s8 + $0x60] sm:$0xff] %v1204_v35  ;;  %v193_v15 = vmul.f32 %v2574_v52, %v1451_v43  ;;  %v225_v51 = vmul.f32 %v2574_v52, %v1515_v2  ;;  %v2946_v29 = vmax.f32 %v2945_v18, 0.0  ;;  %v564_v47 = vmax.f32 %v2531_v27, 0.0  ;;  %v1001_v50 = vpop.f32.mrb[17].mxu0 }
  0xfd   :  { %v1239_v63 = vadd.f32 %v1125_v13, %v2942_v19  ;;  %v1205_v12 = vadd.f32 %v989_v48, %v2944_v38  ;;  %1300 = vst [vmem:[%s2879_s8 + $0x160] sm:$0xff] %v1236_v21  ;;  %1271 = vst [vmem:[%s2879_s8 + $0x78] sm:$0xff] %v1207_v44  ;;  %v428_v43 = vmul.f32 %v2622_v22, %v357_v46  ;;  %v1452_v2 = vunpack.c.h.bf16 %v2519_v36  ;;  %v1129_v13 = vpop.f32.mrb[17].mxu1  ;;  %v2951_v19 = vld [vmem:[#allocation9_spill] sm:$0xff] }
  0xfe   :  { %v1237_v14 = vadd.f32 %v1117_v53, %v2946_v29  ;;  %v2638_v16 = vadd.f32 %v2635_v45, %v398_v24  ;;  %v2641_v46 = vadd.f32 %v2635_v45, %v430_v55  ;;  %v330_v36 = vmax.f32 %v2566_v54, 0.0  ;;  %v1638_v4 = vpop.f32.mrb[18].mxu1  ;;  %v2949_v53 = vld [vmem:[#allocation8_spill] sm:$0xff] }
  0xff   :  { %1303 = vst [vmem:[%s2879_s8 + $0x178] sm:$0xff] %v1239_v63  ;;  %1269 = vst [vmem:[%s2879_s8 + $0x68] sm:$0xff] %v1205_v12  ;;  %v1516_v42 = vunpack.c.h.bf16 %v2537_v59  ;;  %v1010_v30 = vadd.f32 %v1605_v3, %v2302_v26  ;;  %v298_v39 = vadd.f32 %v2563_v1, %v227_v8  ;;  %v196_v24 = vmul.f32 %v2574_v52, %v1456_v37  ;;  %v1606_v59 = vpop.f32.mrb[18].mxu0 }
 0x100   :  { %1301 = vst [vmem:[%s2879_s8 + $0x168] sm:$0xff] %v1237_v14  ;;  %v228_v35 = vmul.f32 %v2574_v52, %v1520_v17  ;;  %v1138_v55 = vadd.f32 %v1637_v31, %v2302_v26  ;;  %v1002_v54 = vadd.f32 %v2302_v26, %v1001_v50  ;;  %v2655_v48 = vadd.f32 %v2563_v1, %v193_v15  ;;  %v1004_v25 = vpop.f32.mrb[19].mxu0  ;;  %v1132_v15 = vpop.f32.mrb[19].mxu1  ;;  %v2955_v14 = vld [vmem:[#allocation11_spill] sm:$0xff]  ;;  %v2957_v50 = vld [vmem:[#allocation12_spill] sm:$0xff] }
 0x101   :  { %v2658_v33 = vadd.f32 %v2563_v1, %v225_v51  ;;  %v2948_v40 = vmax.f32 %v2947_v58, 0.0  ;;  %v1130_v8 = vadd.f32 %v2302_v26, %v1129_v13  ;;  %v1013_v37 = vadd.f32 %v1606_v59, %v2302_v26  ;;  %v2953_v51 = vld [vmem:[#allocation10_spill] sm:$0xff]  ;;  %v2959_v13 = vld [vmem:[#allocation13_spill] sm:$0xff] }
 0x102   :  { %v194_v44 = vmul.f32 %v2574_v52, %v1452_v2  ;;  %v2950_v17 = vmax.f32 %v2949_v53, 0.0  ;;  %v2952_v63 = vmax.f32 %v2951_v19, 0.0  ;;  %v1141_v38 = vadd.f32 %v1638_v4, %v2302_v26  ;;  %v1641_v19 = vpop.f32.mrb[20].mxu1 }
 0x103   :  { %v1210_v21 = vadd.f32 %v1010_v30, %v2948_v40  ;;  %v1005_v12 = vadd.f32 %v2302_v26, %v1004_v25  ;;  %v2954_v18 = vmax.f32 %v2953_v51, 0.0  ;;  %v2956_v2 = vmax.f32 %v2955_v14, 0.0 }
 0x104   :  { %v1242_v11 = vadd.f32 %v1138_v55, %v2950_v17  ;;  %v1208_v32 = vadd.f32 %v1002_v54, %v2952_v63  ;;  %v1133_v30 = vadd.f32 %v2302_v26, %v1132_v15  ;;  %v226_v31 = vmul.f32 %v2574_v52, %v1516_v42  ;;  %v2961_v52 = vld [vmem:[#allocation14_spill] sm:$0xff] }
 0x105   :  { %1274 = vst [vmem:[%s2879_s8 + $0x90] sm:$0xff] %v1210_v21  ;;  %v1240_v29 = vadd.f32 %v1130_v8, %v2954_v18  ;;  %v1211_v3 = vadd.f32 %v1013_v37, %v2956_v2  ;;  %v2958_v55 = vmax.f32 %v2957_v50, 0.0  ;;  %v2960_v59 = vmax.f32 %v2959_v13, 0.0  ;;  %v2963_v18 = vld [vmem:[#allocation15_spill] sm:$0xff] }
 0x106   :  { %1306 = vst [vmem:[%s2879_s8 + $0x190] sm:$0xff] %v1242_v11  ;;  %1272 = vst [vmem:[%s2879_s8 + $0x80] sm:$0xff] %v1208_v32  ;;  %v362_v40 = vmax.f32 %v298_v39, 0.0  ;;  %v2691_v21 = vadd.f32 %v2563_v1, %v196_v24  ;;  %v2962_v42 = vmax.f32 %v2961_v52, 0.0  ;;  %v530_v37 = vmax.f32 %v2546_v0, 0.0  ;;  %v1609_v24 = vpop.f32.mrb[20].mxu0 }
 0x107   :  { %v1243_v54 = vadd.f32 %v1141_v38, %v2958_v55  ;;  %v1209_v58 = vadd.f32 %v1005_v12, %v2960_v59  ;;  %1304 = vst [vmem:[%s2879_s8 + $0x180] sm:$0xff] %v1240_v29  ;;  %1275 = vst [vmem:[%s2879_s8 + $0x98] sm:$0xff] %v1211_v3  ;;  %v562_v4 = vmax.f32 %v2549_v23, 0.0  ;;  %v2704_v39 = vadd.f32 %v2563_v1, %v228_v35  ;;  %v1017_v63 = vpop.f32.mrb[21].mxu0  ;;  %v1145_v12 = vpop.f32.mrb[21].mxu1 }
 0x108   :  { %v1241_v8 = vadd.f32 %v1133_v30, %v2962_v42  ;;  %v2714_v25 = vadd.f32 %v2635_v45, %v2558_v56  ;;  %v2717_v53 = vadd.f32 %v2635_v45, %v428_v43  ;;  %v401_v17 = vmul.f32 %v2622_v22, %v330_v36  ;;  %v2965_v30 = vld [vmem:[#allocation16_spill] sm:$0xff] }
 0x109   :  { %1307 = vst [vmem:[%s2879_s8 + $0x198] sm:$0xff] %v1243_v54  ;;  %1273 = vst [vmem:[%s2879_s8 + $0x88] sm:$0xff] %v1209_v58  ;;  %v328_v35 = vmax.f32 %v2655_v48, 0.0  ;;  %v1026_v11 = vadd.f32 %v1609_v24, %v2302_v26  ;;  %v360_v32 = vmax.f32 %v2658_v33, 0.0  ;;  %v265_v56 = vadd.f32 %v2563_v1, %v194_v44  ;;  %v1610_v48 = vpop.f32.mrb[22].mxu0  ;;  %v1642_v44 = vpop.f32.mrb[22].mxu1 }
 0x10a   :  { %1305 = vst [vmem:[%s2879_s8 + $0x188] sm:$0xff] %v1241_v8  ;;  %v297_v38 = vadd.f32 %v2563_v1, %v226_v31  ;;  %v1154_v43 = vadd.f32 %v1641_v19, %v2302_v26  ;;  %v1018_v36 = vadd.f32 %v2302_v26, %v1017_v63  ;;  %v433_v15 = vmul.f32 %v2622_v22, %v362_v40  ;;  %v1020_v3 = vpop.f32.mrb[23].mxu0  ;;  %v1148_v59 = vpop.f32.mrb[23].mxu1 }
 0x10b   :  { %v331_v51 = vmax.f32 %v2691_v21, 0.0  ;;  %v2964_v29 = vmax.f32 %v2963_v18, 0.0  ;;  %v1146_v2 = vadd.f32 %v2302_v26, %v1145_v12  ;;  %v1029_v33 = vadd.f32 %v1610_v48, %v2302_v26 }
 0x10c   :  { %v363_v1 = vmax.f32 %v2704_v39, 0.0  ;;  %v2966_v31 = vmax.f32 %v2965_v30, 0.0  ;;  %v1212_v55 = vadd.f32 %v1018_v36, %v526_v9  ;;  %v1157_v54 = vadd.f32 %v1642_v44, %v2302_v26 }
 0x10d   :  { %v1214_v14 = vadd.f32 %v1026_v11, %v2964_v29  ;;  %v1021_v13 = vadd.f32 %v2302_v26, %v1020_v3  ;;  %v1244_v58 = vadd.f32 %v1146_v2, %v558_v6  ;;  %v1215_v40 = vadd.f32 %v1029_v33, %v529_v57 }
 0x10e   :  { %v1246_v50 = vadd.f32 %v1154_v43, %v2966_v31  ;;  %v1149_v21 = vadd.f32 %v2302_v26, %v1148_v59  ;;  %v399_v41 = vmul.f32 %v2622_v22, %v328_v35  ;;  %1276 = vst [vmem:[%s2879_s8 + $0xa0] sm:$0xff] %v1212_v55  ;;  %v1247_v9 = vadd.f32 %v1157_v54, %v561_v49 }
 0x10f   :  { %1278 = vst [vmem:[%s2879_s8 + $0xb0] sm:$0xff] %v1214_v14  ;;  %v1213_v10 = vadd.f32 %v1021_v13, %v527_v62  ;;  %v431_v34 = vmul.f32 %v2622_v22, %v360_v32  ;;  %v329_v6 = vmax.f32 %v265_v56, 0.0  ;;  %1308 = vst [vmem:[%s2879_s8 + $0x1a0] sm:$0xff] %v1244_v58  ;;  %v533_v5 = vmax.f32 %v2638_v16, 0.0  ;;  %v1613_v62 = vpop.f32.mrb[24].mxu0 }
 0x110   :  { %1310 = vst [vmem:[%s2879_s8 + $0x1b0] sm:$0xff] %v1246_v50  ;;  %1279 = vst [vmem:[%s2879_s8 + $0xb8] sm:$0xff] %v1215_v40  ;;  %v1245_v57 = vadd.f32 %v1149_v21, %v559_v20  ;;  %v565_v49 = vmax.f32 %v2641_v46, 0.0  ;;  %v361_v61 = vmax.f32 %v297_v38, 0.0  ;;  %v531_v52 = vmax.f32 %v2714_v25, 0.0  ;;  %v1645_v46 = vpop.f32.mrb[24].mxu1 }
 0x111   :  { %1311 = vst [vmem:[%s2879_s8 + $0x1b8] sm:$0xff] %v1247_v9  ;;  %1277 = vst [vmem:[%s2879_s8 + $0xa8] sm:$0xff] %v1213_v10  ;;  %v563_v42 = vmax.f32 %v2717_v53, 0.0  ;;  %v472_v7 = vadd.f32 %v2635_v45, %v401_v17  ;;  %v2783_v20 = vadd.f32 %v2635_v45, %v433_v15  ;;  %v1042_v16 = vadd.f32 %v1613_v62, %v2302_v26  ;;  %v1033_v8 = vpop.f32.mrb[25].mxu0  ;;  %v1161_v35 = vpop.f32.mrb[25].mxu1 }
 0x112   :  { %1309 = vst [vmem:[%s2879_s8 + $0x1a8] sm:$0xff] %v1245_v57  ;;  %v470_v39 = vadd.f32 %v2635_v45, %v399_v41  ;;  %v402_v24 = vmul.f32 %v2622_v22, %v331_v51  ;;  %v434_v25 = vmul.f32 %v2622_v22, %v363_v1  ;;  %v1170_v53 = vadd.f32 %v1645_v46, %v2302_v26  ;;  %v1614_v11 = vpop.f32.mrb[26].mxu0  ;;  %v1646_v43 = vpop.f32.mrb[26].mxu1 }
 0x113   :  { %v1034_v17 = vadd.f32 %v2302_v26, %v1033_v8  ;;  %v502_v19 = vadd.f32 %v2635_v45, %v431_v34  ;;  %v400_v63 = vmul.f32 %v2622_v22, %v329_v6  ;;  %v1218_v32 = vadd.f32 %v1042_v16, %v532_v28  ;;  %v1036_v36 = vpop.f32.mrb[27].mxu0  ;;  %v1164_v60 = vpop.f32.mrb[27].mxu1 }
 0x114   :  { %v1162_v56 = vadd.f32 %v2302_v26, %v1161_v35  ;;  %v1045_v38 = vadd.f32 %v1614_v11, %v2302_v26  ;;  %v432_v12 = vmul.f32 %v2622_v22, %v361_v61  ;;  %v1250_v48 = vadd.f32 %v1170_v53, %v564_v47  ;;  %v1617_v33 = vpop.f32.mrb[28].mxu0  ;;  %v1649_v30 = vpop.f32.mrb[28].mxu1 }
 0x115   :  { %v1216_v15 = vadd.f32 %v1034_v17, %v530_v37  ;;  %v1173_v51 = vadd.f32 %v1646_v43, %v2302_v26  ;;  %v1037_v18 = vadd.f32 %v2302_v26, %v1036_v36  ;;  %1282 = vst [vmem:[%s2879_s8 + $0xd0] sm:$0xff] %v1218_v32  ;;  %v1165_v22 = vadd.f32 %v2302_v26, %v1164_v60  ;;  %v1177_v13 = vpop.f32.mrb[29].mxu1 }
 0x116   :  { %v1248_v28 = vadd.f32 %v1162_v56, %v562_v4  ;;  %v1219_v29 = vadd.f32 %v1045_v38, %v533_v5  ;;  %v473_v27 = vadd.f32 %v2635_v45, %v402_v24  ;;  %1314 = vst [vmem:[%s2879_s8 + $0x1d0] sm:$0xff] %v1250_v48  ;;  %v505_v37 = vadd.f32 %v2635_v45, %v434_v25  ;;  %v1650_v10 = vpop.f32.mrb[30].mxu1 }
 0x117   :  { %1280 = vst [vmem:[%s2879_s8 + $0xc0] sm:$0xff] %v1216_v15  ;;  %v1251_v0 = vadd.f32 %v1173_v51, %v565_v49  ;;  %v1217_v47 = vadd.f32 %v1037_v18, %v531_v52  ;;  %v471_v23 = vadd.f32 %v2635_v45, %v400_v63  ;;  %v1249_v4 = vadd.f32 %v1165_v22, %v563_v42  ;;  %v1180_v62 = vpop.f32.mrb[31].mxu1 }
 0x118   :  { %1312 = vst [vmem:[%s2879_s8 + $0x1c0] sm:$0xff] %v1248_v28  ;;  %1283 = vst [vmem:[%s2879_s8 + $0xd8] sm:$0xff] %v1219_v29  ;;  %v536_v14 = vmax.f32 %v472_v7, 0.0  ;;  %v503_v2 = vadd.f32 %v2635_v45, %v432_v12  ;;  %v568_v44 = vmax.f32 %v2783_v20, 0.0  ;;  %v534_v3 = vmax.f32 %v470_v39, 0.0  ;;  %v1049_v45 = vpop.f32.mrb[29].mxu0 }
 0x119   :  { %1315 = vst [vmem:[%s2879_s8 + $0x1d8] sm:$0xff] %v1251_v0  ;;  %1281 = vst [vmem:[%s2879_s8 + $0xc8] sm:$0xff] %v1217_v47  ;;  %v1058_v1 = vadd.f32 %v1617_v33, %v2302_v26  ;;  %v566_v31 = vmax.f32 %v502_v19, 0.0  ;;  %v537_v50 = vmax.f32 %v473_v27, 0.0  ;;  %v1186_v55 = vadd.f32 %v1649_v30, %v2302_v26  ;;  %v1618_v59 = vpop.f32.mrb[30].mxu0 }
 0x11a   :  { %1313 = vst [vmem:[%s2879_s8 + $0x1c8] sm:$0xff] %v1249_v4  ;;  %v1050_v54 = vadd.f32 %v2302_v26, %v1049_v45  ;;  %v569_v58 = vmax.f32 %v505_v37, 0.0  ;;  %v535_v40 = vmax.f32 %v471_v23, 0.0  ;;  %v1178_v41 = vadd.f32 %v2302_v26, %v1177_v13  ;;  %v1052_v34 = vpop.f32.mrb[31].mxu0 }
 0x11b   :  { %v1222_v21 = vadd.f32 %v1058_v1, %v536_v14  ;;  %v1061_v9 = vadd.f32 %v1618_v59, %v2302_v26  ;;  %v567_v6 = vmax.f32 %v503_v2, 0.0  ;;  %v1254_v57 = vadd.f32 %v1186_v55, %v568_v44 }
 0x11c   :  { %v1220_v5 = vadd.f32 %v1050_v54, %v534_v3  ;;  %v1189_v49 = vadd.f32 %v1650_v10, %v2302_v26  ;;  %v1053_v61 = vadd.f32 %v2302_v26, %v1052_v34  ;;  %v1252_v52 = vadd.f32 %v1178_v41, %v566_v31 }
 0x11d   :  { %1286 = vst [vmem:[%s2879_s8 + $0xf0] sm:$0xff] %v1222_v21  ;;  %v1223_v42 = vadd.f32 %v1061_v9, %v537_v50  ;;  %v1181_v7 = vadd.f32 %v2302_v26, %v1180_v62  ;;  %1318 = vst [vmem:[%s2879_s8 + $0x1f0] sm:$0xff] %v1254_v57 }
 0x11e   :  { %1284 = vst [vmem:[%s2879_s8 + $0xe0] sm:$0xff] %v1220_v5  ;;  %v1255_v20 = vadd.f32 %v1189_v49, %v569_v58  ;;  %v1221_v16 = vadd.f32 %v1053_v61, %v535_v40  ;;  %1316 = vst [vmem:[%s2879_s8 + $0x1e0] sm:$0xff] %v1252_v52 }
 0x11f   :  { %1287 = vst [vmem:[%s2879_s8 + $0xf8] sm:$0xff] %v1223_v42  ;;  %v1253_v46 = vadd.f32 %v1181_v7, %v567_v6 }
 0x120   :  { %1319 = vst [vmem:[%s2879_s8 + $0x1f8] sm:$0xff] %v1255_v20  ;;  %1285 = vst [vmem:[%s2879_s8 + $0xe8] sm:$0xff] %v1221_v16 }
 0x121   :  { %1317 = vst [vmem:[%s2879_s8 + $0x1e8] sm:$0xff] %v1253_v46 }

</bundles_post_ra>
